<compile_context>
chip_gen: v7x
topology: tpu7x:2x2x1
jax: 0.10.0
libtpu: 0.0.40
codegen_flags: <defaults>
</compile_context>

<pallas_src>
import functools
import math

import jax
import jax.numpy as jnp
from jax.experimental import pallas as pl
from jax.experimental.pallas import tpu as pltpu

# ----------------------------- model config ---------------------------------
VOCAB = 128            # synthetic vocab (real bert-base-uncased uses 30522; gather is glue)
MAX_POS = 512
TYPE_VOCAB = 2
HIDDEN = 768
NUM_LAYERS = 12
NUM_HEADS = 12
HEAD_DIM = HIDDEN // NUM_HEADS
INTERMEDIATE = 3072
LN_EPS = 1e-12
CONV1_OUT = 128
CONV2_OUT = 64
NUM_LABELS = 6
FC_PAD = 128           # lane-dense padded classifier width (sliced to NUM_LABELS)
MASK_NEG = -1e9


def _pick_tile(dim, candidates):
    for c in candidates:
        if dim % c == 0:
            return c
    return dim


# ----------------------------- Pallas kernels -------------------------------
def _linear_kernel(x_ref, w_ref, b_ref, o_ref, acc_ref, *, activation):
    """y = x @ w + b, tiled over (M, N, K); bf16 MXU inputs, f32 accumulator."""
    k = pl.program_id(2)

    @pl.when(k == 0)
    def _():
        acc_ref[...] = jnp.zeros_like(acc_ref)

    acc_ref[...] += jnp.dot(x_ref[...], w_ref[...],
                            preferred_element_type=jnp.float32)

    @pl.when(k == pl.num_programs(2) - 1)
    def _():
        y = acc_ref[...] + b_ref[...].astype(jnp.float32)
        if activation == "gelu":
            # exact (erf) GELU, as used by bert-base
            y = 0.5 * y * (1.0 + jax.lax.erf(y * (1.0 / math.sqrt(2.0))))
        o_ref[...] = y.astype(o_ref.dtype)


def linear(x, w, b, activation=None, out_dtype=jnp.bfloat16):
    M, K = x.shape
    K2, N = w.shape
    assert K == K2, (K, K2)
    tm = _pick_tile(M, (512, 256, 128))
    tn = _pick_tile(N, (512, 256, 128))
    tk = _pick_tile(K, (512, 256))
    return pl.pallas_call(
        functools.partial(_linear_kernel, activation=activation),
        out_shape=jax.ShapeDtypeStruct((M, N), out_dtype),
        grid_spec=pltpu.PrefetchScalarGridSpec(
            num_scalar_prefetch=0,
            grid=(M // tm, N // tn, K // tk),
            in_specs=[
                pl.BlockSpec((tm, tk), lambda i, j, k: (i, k)),
                pl.BlockSpec((tk, tn), lambda i, j, k: (k, j)),
                pl.BlockSpec((1, tn), lambda i, j, k: (0, j)),
            ],
            out_specs=pl.BlockSpec((tm, tn), lambda i, j, k: (i, j)),
            scratch_shapes=[pltpu.VMEM((tm, tn), jnp.float32)],
        ),
        compiler_params=pltpu.CompilerParams(
            dimension_semantics=("parallel", "parallel", "arbitrary")),
    )(x, w, b.reshape(1, N))


def _linear_add_ln_kernel(x_ref, w_ref, b_ref, r_ref, g_ref, be_ref,
                          o_ref, acc_ref):
    """Fused: LayerNorm((x @ w + b) + residual) in the last-K epilogue."""
    k = pl.program_id(1)

    @pl.when(k == 0)
    def _():
        acc_ref[...] = jnp.zeros_like(acc_ref)

    acc_ref[...] += jnp.dot(x_ref[...], w_ref[...],
                            preferred_element_type=jnp.float32)

    @pl.when(k == pl.num_programs(1) - 1)
    def _():
        y = (acc_ref[...] + b_ref[...].astype(jnp.float32)
             + r_ref[...].astype(jnp.float32))
        mu = jnp.mean(y, axis=-1, keepdims=True)
        var = jnp.mean(jnp.square(y - mu), axis=-1, keepdims=True)
        inv = jax.lax.rsqrt(var + LN_EPS)
        o_ref[...] = ((y - mu) * inv * g_ref[...].astype(jnp.float32)
                      + be_ref[...].astype(jnp.float32)).astype(o_ref.dtype)


def linear_add_ln(x, w, b, res, gamma, beta, out_dtype=jnp.bfloat16):
    M, K = x.shape
    K2, N = w.shape
    assert K == K2, (K, K2)
    tm = _pick_tile(M, (512, 256, 128))
    tk = _pick_tile(K, (512, 256))
    return pl.pallas_call(
        _linear_add_ln_kernel,
        out_shape=jax.ShapeDtypeStruct((M, N), out_dtype),
        grid_spec=pltpu.PrefetchScalarGridSpec(
            num_scalar_prefetch=0,
            grid=(M // tm, K // tk),
            in_specs=[
                pl.BlockSpec((tm, tk), lambda i, k: (i, k)),
                pl.BlockSpec((tk, N), lambda i, k: (k, 0)),
                pl.BlockSpec((1, N), lambda i, k: (0, 0)),
                pl.BlockSpec((tm, N), lambda i, k: (i, 0)),
                pl.BlockSpec((1, N), lambda i, k: (0, 0)),
                pl.BlockSpec((1, N), lambda i, k: (0, 0)),
            ],
            out_specs=pl.BlockSpec((tm, N), lambda i, k: (i, 0)),
            scratch_shapes=[pltpu.VMEM((tm, N), jnp.float32)],
        ),
        compiler_params=pltpu.CompilerParams(
            dimension_semantics=("parallel", "arbitrary")),
    )(x, w, b.reshape(1, N), res, gamma.reshape(1, N), beta.reshape(1, N))


def _layernorm_kernel(x_ref, g_ref, b_ref, o_ref):
    x = x_ref[...].astype(jnp.float32)
    mu = jnp.mean(x, axis=-1, keepdims=True)
    var = jnp.mean(jnp.square(x - mu), axis=-1, keepdims=True)
    inv = jax.lax.rsqrt(var + LN_EPS)
    o_ref[...] = ((x - mu) * inv * g_ref[...].astype(jnp.float32)
                  + b_ref[...].astype(jnp.float32)).astype(o_ref.dtype)


def layernorm(x, gamma, beta, out_dtype=jnp.bfloat16):
    M, H = x.shape
    tm = _pick_tile(M, (512, 256, 128))
    return pl.pallas_call(
        _layernorm_kernel,
        out_shape=jax.ShapeDtypeStruct((M, H), out_dtype),
        grid_spec=pltpu.PrefetchScalarGridSpec(
            num_scalar_prefetch=0,
            grid=(M // tm,),
            in_specs=[
                pl.BlockSpec((tm, H), lambda i: (i, 0)),
                pl.BlockSpec((1, H), lambda i: (0, 0)),
                pl.BlockSpec((1, H), lambda i: (0, 0)),
            ],
            out_specs=pl.BlockSpec((tm, H), lambda i: (i, 0)),
        ),
        compiler_params=pltpu.CompilerParams(
            dimension_semantics=("parallel",)),
    )(x, gamma.reshape(1, H), beta.reshape(1, H))


def _attention_kernel(q_ref, k_ref, v_ref, m_ref, o_ref, *, scale):
    q = q_ref[0, 0]                                   # (S, DH) bf16
    k = k_ref[0, 0]
    v = v_ref[0, 0]
    s = jax.lax.dot_general(q, k, (((1,), (1,)), ((), ())),
                            preferred_element_type=jnp.float32) * scale
    s = s + m_ref[0].astype(jnp.float32)              # (1, S) additive mask
    s = s - jnp.max(s, axis=-1, keepdims=True)
    p = jnp.exp(s)
    p = p * pl.reciprocal(jnp.sum(p, axis=-1, keepdims=True), approx=True)
    o = jnp.dot(p.astype(v.dtype), v, preferred_element_type=jnp.float32)
    o_ref[0, 0] = o.astype(o_ref.dtype)


def mha(q, k, v, mask_bias):
    B, NH, S, DH = q.shape
    return pl.pallas_call(
        functools.partial(_attention_kernel, scale=1.0 / math.sqrt(DH)),
        out_shape=jax.ShapeDtypeStruct((B, NH, S, DH), q.dtype),
        grid_spec=pltpu.PrefetchScalarGridSpec(
            num_scalar_prefetch=0,
            grid=(B, NH),
            in_specs=[
                pl.BlockSpec((1, 1, S, DH), lambda b, h: (b, h, 0, 0)),
                pl.BlockSpec((1, 1, S, DH), lambda b, h: (b, h, 0, 0)),
                pl.BlockSpec((1, 1, S, DH), lambda b, h: (b, h, 0, 0)),
                pl.BlockSpec((1, 1, S), lambda b, h: (b, 0, 0)),
            ],
            out_specs=pl.BlockSpec((1, 1, S, DH), lambda b, h: (b, h, 0, 0)),
        ),
        compiler_params=pltpu.CompilerParams(
            dimension_semantics=("parallel", "parallel")),
    )(q, k, v, mask_bias)


def _cnn_head_kernel(h_ref, w1_ref, b1_ref, w2_ref, b2_ref, fw_ref, fb_ref,
                     o_ref):
    """Fused CNN head: conv1(k3,p1)+ReLU+pool(2) -> conv2(k3,p1)+ReLU+pool(2)
    -> global max over time -> Linear into a lane-dense padded slab."""

    def conv3(x_in, w_ref, b_ref):
        # x_in: (B, T, Cin); w_ref: (3, Cin, Cout); torch Conv1d(k=3, pad=1).
        Bx, T, Cin = x_in.shape
        Cout = w_ref.shape[-1]
        x2 = x_in.reshape(Bx * T, Cin).astype(jnp.bfloat16)
        z = [jnp.dot(x2, w_ref[t], preferred_element_type=jnp.float32)
             .reshape(Bx, T, Cout) for t in range(3)]
        zero = jnp.zeros((Bx, 1, Cout), jnp.float32)
        y = z[1]
        y = y + jnp.concatenate([zero, z[0][:, :T - 1, :]], axis=1)   # tap t-1
        y = y + jnp.concatenate([z[2][:, 1:, :], zero], axis=1)       # tap t+1
        return y + b_ref[...].astype(jnp.float32)

    def maxpool2(y):
        Bx, T, C = y.shape
        cols = [jnp.maximum(y[:, 2 * i, :], y[:, 2 * i + 1, :])[:, None, :]
                for i in range(T // 2)]
        return jnp.concatenate(cols, axis=1)

    x = h_ref[...]                                        # (B, S, 768) bf16
    y = jnp.maximum(conv3(x, w1_ref, b1_ref), 0.0)        # (B, S, 128)
    y = maxpool2(y)                                       # (B, S//2, 128)
    y = jnp.maximum(conv3(y, w2_ref, b2_ref), 0.0)        # (B, S//2, 64)
    # MaxPool1d(2,2) followed by max over the remaining time axis == global max
    # over time (time length is even here, so the pooling covers all positions).
    feat = jnp.max(y, axis=1)                             # (B, 64)
    logits = jnp.dot(feat.astype(jnp.bfloat16), fw_ref[...],
                     preferred_element_type=jnp.float32) \
        + fb_ref[...].astype(jnp.float32)
    o_ref[...] = logits


def cnn_head(h, p):
    B, S, H = h.shape
    assert S % 4 == 0, "head assumes seq length divisible by 4 (two MaxPool(2))"
    return pl.pallas_call(
        _cnn_head_kernel,
        out_shape=jax.ShapeDtypeStruct((B, FC_PAD), jnp.float32),
        grid_spec=pltpu.PrefetchScalarGridSpec(
            num_scalar_prefetch=0,
            grid=(1,),
            in_specs=[
                pl.BlockSpec((B, S, H), lambda i: (0, 0, 0)),
                pl.BlockSpec((3, H, CONV1_OUT), lambda i: (0, 0, 0)),
                pl.BlockSpec((1, CONV1_OUT), lambda i: (0, 0)),
                pl.BlockSpec((3, CONV1_OUT, CONV2_OUT), lambda i: (0, 0, 0)),
                pl.BlockSpec((1, CONV2_OUT), lambda i: (0, 0)),
                pl.BlockSpec((CONV2_OUT, FC_PAD), lambda i: (0, 0)),
                pl.BlockSpec((1, FC_PAD), lambda i: (0, 0)),
            ],
            out_specs=pl.BlockSpec((B, FC_PAD), lambda i: (0, 0)),
        ),
    )(h, p["conv1_w"], p["conv1_b"], p["conv2_w"], p["conv2_b"],
      p["fc_w_pad"], p["fc_b_pad"])


# ----------------------------- model forward --------------------------------
def bert_encoder_layer(hs, lp, mask_bias, B, S):
    # Fused Q/K/V projection: one (768 -> 2304) matmul, split afterwards (glue).
    qkv = linear(hs, lp["w_qkv"], lp["b_qkv"])                  # (B*S, 2304)

    def heads(t):
        return t.reshape(B, S, NUM_HEADS, HEAD_DIM).transpose(0, 2, 1, 3)

    q = heads(qkv[:, :HIDDEN])
    k = heads(qkv[:, HIDDEN:2 * HIDDEN])
    v = heads(qkv[:, 2 * HIDDEN:])
    ctx = mha(q, k, v, mask_bias)                               # (B, NH, S, DH)
    ctx = ctx.transpose(0, 2, 1, 3).reshape(B * S, HIDDEN)
    # attention output projection fused with residual add + LayerNorm
    hs = linear_add_ln(ctx, lp["wo"], lp["bo"], hs, lp["ln1_g"], lp["ln1_b"])
    inter = linear(hs, lp["wi"], lp["bi"], activation="gelu")   # (B*S, 3072)
    # FFN output projection fused with residual add + LayerNorm
    hs = linear_add_ln(inter, lp["wf"], lp["bf"], hs, lp["ln2_g"], lp["ln2_b"])
    return hs


def forward(params, input_ids, attention_mask, token_type_ids):
    B, S = input_ids.shape
    # BERT embeddings (gathers are glue; LayerNorm is a Pallas kernel).
    emb = (params["word_emb"][input_ids].astype(jnp.float32)
           + params["pos_emb"][jnp.arange(S)][None, :, :].astype(jnp.float32)
           + params["type_emb"][token_type_ids].astype(jnp.float32))
    hs = layernorm(emb.reshape(B * S, HIDDEN),
                   params["emb_ln_g"], params["emb_ln_b"])
    mask_bias = ((1.0 - attention_mask.astype(jnp.float32)) * MASK_NEG
                 ).reshape(B, 1, S)

    def body(carry, lp):
        return bert_encoder_layer(carry, lp, mask_bias, B, S), None

    hs, _ = jax.lax.scan(body, hs, params["layers"])
    last_hidden_state = hs.reshape(B, S, HIDDEN)

    # TODO(synk): dropout layer runs in inference mode (identity).
    logits_padded = cnn_head(last_hidden_state, params["head"])  # (B, 128)
    return logits_padded[:, :NUM_LABELS]                         # (B, num_classes)


# ----------------------------- parameter init -------------------------------
def init_params(key):
    cnt = [0]

    def nrm(shape, scale=0.02, dtype=jnp.bfloat16):
        cnt[0] += 1
        k = jax.random.fold_in(key, cnt[0])
        return (scale * jax.random.normal(k, shape, jnp.float32)).astype(dtype)

    L = NUM_LAYERS
    layers = {
        "w_qkv": nrm((L, HIDDEN, 3 * HIDDEN)),
        "b_qkv": jnp.zeros((L, 3 * HIDDEN), jnp.float32),
        "wo": nrm((L, HIDDEN, HIDDEN)),
        "bo": jnp.zeros((L, HIDDEN), jnp.float32),
        "ln1_g": jnp.ones((L, HIDDEN), jnp.float32),
        "ln1_b": jnp.zeros((L, HIDDEN), jnp.float32),
        "wi": nrm((L, HIDDEN, INTERMEDIATE)),
        "bi": jnp.zeros((L, INTERMEDIATE), jnp.float32),
        "wf": nrm((L, INTERMEDIATE, HIDDEN)),
        "bf": jnp.zeros((L, HIDDEN), jnp.float32),
        "ln2_g": jnp.ones((L, HIDDEN), jnp.float32),
        "ln2_b": jnp.zeros((L, HIDDEN), jnp.float32),
    }

    fc_w = (0.1 * jax.random.normal(jax.random.fold_in(key, 10_000),
                                    (CONV2_OUT, NUM_LABELS), jnp.float32))
    fc_w_pad = jnp.zeros((CONV2_OUT, FC_PAD), jnp.float32
                         ).at[:, :NUM_LABELS].set(fc_w).astype(jnp.bfloat16)
    head = {
        "conv1_w": nrm((3, HIDDEN, CONV1_OUT)),
        "conv1_b": jnp.zeros((1, CONV1_OUT), jnp.float32),
        "conv2_w": nrm((3, CONV1_OUT, CONV2_OUT), 0.05),
        "conv2_b": jnp.zeros((1, CONV2_OUT), jnp.float32),
        "fc_w_pad": fc_w_pad,
        "fc_b_pad": jnp.zeros((1, FC_PAD), jnp.float32),
    }

    return {
        "word_emb": nrm((VOCAB, HIDDEN)),
        "pos_emb": nrm((MAX_POS, HIDDEN)),
        "type_emb": nrm((TYPE_VOCAB, HIDDEN)),
        "emb_ln_g": jnp.ones((HIDDEN,), jnp.float32),
        "emb_ln_b": jnp.zeros((HIDDEN,), jnp.float32),
        "layers": layers,
        "head": head,
    }


# ----------------------------------- main ------------------------------------
if __name__ == "__main__":
    root = jax.random.PRNGKey(0)
    k_params, k_ids = jax.random.split(root)

    params = init_params(k_params)

    B, S = 2, 8
    input_ids = jax.random.randint(k_ids, (B, S), 0, VOCAB, dtype=jnp.int32)
    attention_mask = jnp.ones((B, S), jnp.int32).at[1, 6:].set(0)  # ragged mask
    token_type_ids = jnp.zeros((B, S), jnp.int32)

    fwd = jax.jit(forward)
    logits = fwd(params, input_ids, attention_mask, token_type_ids)
    jax.block_until_ready(logits)
    assert logits.shape == (B, NUM_LABELS)
    assert bool(jnp.all(jnp.isfinite(logits)))
    print("KERNEL_OK")
</pallas_src>

<mosaic_0001>
module attributes {stable_mosaic.version = 11 : i64} {
  func.func @_layernorm_kernel(%arg0: i32, %arg1: memref<16x768xf32, #tpu.memory_space<vmem>>, %arg2: memref<1x768xf32, #tpu.memory_space<vmem>>, %arg3: memref<1x768xf32, #tpu.memory_space<vmem>>, %arg4: memref<16x768xbf16, #tpu.memory_space<vmem>>) attributes {dimension_semantics = [#tpu.dimension_semantics<parallel>], iteration_bounds = array<i64: 1>, scalar_prefetch = 0 : i64, scratch_operands = 0 : i64, tpu.core_type = #tpu.core_type<tc>, window_params = [{transform_indices = @transform_0, window_bounds = array<i64: 16, 768>}, {pipeline_mode = #tpu.pipeline_mode<synchronous>, transform_indices = @transform_1, window_bounds = array<i64: 1, 768>}, {pipeline_mode = #tpu.pipeline_mode<synchronous>, transform_indices = @transform_2, window_bounds = array<i64: 1, 768>}, {transform_indices = @transform_3, window_bounds = array<i64: 16, 768>}]} {
    %c0 = arith.constant 0 : index
    %c0_0 = arith.constant 0 : index
    %0 = vector.load %arg1[%c0, %c0_0] : memref<16x768xf32, #tpu.memory_space<vmem>>, vector<16x768xf32>
    %cst = arith.constant dense<0.000000e+00> : vector<16xf32>
    %1 = vector.multi_reduction <add>, %0, %cst [1] : vector<16x768xf32> to vector<16xf32>
    %2 = vector.shape_cast %1 : vector<16xf32> to vector<16x1xf32>
    %cst_1 = arith.constant 7.680000e+02 : f32
    %3 = vector.broadcast %cst_1 : f32 to vector<16x1xf32>
    %4 = arith.divf %2, %3 : vector<16x1xf32>
    %5 = vector.broadcast %4 : vector<16x1xf32> to vector<16x768xf32>
    %6 = arith.subf %0, %5 : vector<16x768xf32>
    %7 = arith.mulf %6, %6 : vector<16x768xf32>
    %cst_2 = arith.constant dense<0.000000e+00> : vector<16xf32>
    %8 = vector.multi_reduction <add>, %7, %cst_2 [1] : vector<16x768xf32> to vector<16xf32>
    %9 = vector.shape_cast %8 : vector<16xf32> to vector<16x1xf32>
    %cst_3 = arith.constant 7.680000e+02 : f32
    %10 = vector.broadcast %cst_3 : f32 to vector<16x1xf32>
    %11 = arith.divf %9, %10 : vector<16x1xf32>
    %cst_4 = arith.constant 9.99999996E-13 : f32
    %12 = vector.broadcast %cst_4 : f32 to vector<16x1xf32>
    %13 = arith.addf %11, %12 : vector<16x1xf32>
    %14 = math.rsqrt %13 : vector<16x1xf32>
    %15 = vector.broadcast %4 : vector<16x1xf32> to vector<16x768xf32>
    %16 = arith.subf %0, %15 : vector<16x768xf32>
    %17 = vector.broadcast %14 : vector<16x1xf32> to vector<16x768xf32>
    %18 = arith.mulf %16, %17 : vector<16x768xf32>
    %c0_5 = arith.constant 0 : index
    %c0_6 = arith.constant 0 : index
    %19 = vector.load %arg2[%c0_5, %c0_6] : memref<1x768xf32, #tpu.memory_space<vmem>>, vector<1x768xf32>
    %20 = vector.broadcast %19 : vector<1x768xf32> to vector<16x768xf32>
    %21 = arith.mulf %18, %20 : vector<16x768xf32>
    %c0_7 = arith.constant 0 : index
    %c0_8 = arith.constant 0 : index
    %22 = vector.load %arg3[%c0_7, %c0_8] : memref<1x768xf32, #tpu.memory_space<vmem>>, vector<1x768xf32>
    %23 = vector.broadcast %22 : vector<1x768xf32> to vector<16x768xf32>
    %24 = arith.addf %21, %23 : vector<16x768xf32>
    %25 = arith.truncf %24 : vector<16x768xf32> to vector<16x768xbf16>
    %c0_9 = arith.constant 0 : index
    %c0_10 = arith.constant 0 : index
    %26 = vector.load %arg4[%c0_9, %c0_10] : memref<16x768xbf16, #tpu.memory_space<vmem>>, vector<16x768xbf16>
    tpu.vector_store %arg4[%c0_9, %c0_10], %25 {strides = array<i32>} : memref<16x768xbf16, #tpu.memory_space<vmem>>, vector<16x768xbf16>,
    return
  }
  func.func @transform_0(%arg0: i32) -> (i32, i32) {
    %c0_i32 = arith.constant 0 : i32
    %c0_i32_0 = arith.constant 0 : i32
    return %arg0, %c0_i32 : i32, i32
  }
  func.func @transform_1(%arg0: i32) -> (i32, i32) {
    %c0_i32 = arith.constant 0 : i32
    %c0_i32_0 = arith.constant 0 : i32
    %c0_i32_1 = arith.constant 0 : i32
    return %c0_i32, %c0_i32_0 : i32, i32
  }
  func.func @transform_2(%arg0: i32) -> (i32, i32) {
    %c0_i32 = arith.constant 0 : i32
    %c0_i32_0 = arith.constant 0 : i32
    %c0_i32_1 = arith.constant 0 : i32
    return %c0_i32, %c0_i32_0 : i32, i32
  }
  func.func @transform_3(%arg0: i32) -> (i32, i32) {
    %c0_i32 = arith.constant 0 : i32
    %c0_i32_0 = arith.constant 0 : i32
    return %arg0, %c0_i32 : i32, i32
  }
}

module attributes {stable_mosaic.version = 11 : i64} {
  func.func @_linear_kernel(%arg0: i32, %arg1: i32, %arg2: i32, %arg3: memref<16x256xbf16, #tpu.memory_space<vmem>>, %arg4: memref<256x256xbf16, #tpu.memory_space<vmem>>, %arg5: memref<1x256xf32, #tpu.memory_space<vmem>>, %arg6: memref<16x256xbf16, #tpu.memory_space<vmem>>, %arg7: memref<16x256xf32, #tpu.memory_space<vmem>>) attributes {dimension_semantics = [#tpu.dimension_semantics<parallel>, #tpu.dimension_semantics<parallel>, #tpu.dimension_semantics<arbitrary>], iteration_bounds = array<i64: 1, 9, 3>, scalar_prefetch = 0 : i64, scratch_operands = 1 : i64, tpu.core_type = #tpu.core_type<tc>, window_params = [{transform_indices = @transform_0, window_bounds = array<i64: 16, 256>}, {transform_indices = @transform_1, window_bounds = array<i64: 256, 256>}, {transform_indices = @transform_2, window_bounds = array<i64: 1, 256>}, {transform_indices = @transform_3, window_bounds = array<i64: 16, 256>}]} {
    %c0_i32 = arith.constant 0 : i32
    %0 = arith.cmpi eq, %arg2, %c0_i32 : i32
    %1 = arith.extui %0 : i1 to i32
    %c0_i32_0 = arith.constant 0 : i32
    %2 = arith.cmpi ne, %1, %c0_i32_0 : i32
    scf.if %2 {
      %cst_9 = arith.constant 0.000000e+00 : f32
      %12 = vector.broadcast %cst_9 : f32 to vector<16x256xf32>
      %c0_10 = arith.constant 0 : index
      %c0_11 = arith.constant 0 : index
      %13 = vector.load %arg7[%c0_10, %c0_11] : memref<16x256xf32, #tpu.memory_space<vmem>>, vector<16x256xf32>
      tpu.vector_store %arg7[%c0_10, %c0_11], %12 {strides = array<i32>} : memref<16x256xf32, #tpu.memory_space<vmem>>, vector<16x256xf32>,
    } else {
    }
    %c0 = arith.constant 0 : index
    %c0_1 = arith.constant 0 : index
    %3 = vector.load %arg7[%c0, %c0_1] : memref<16x256xf32, #tpu.memory_space<vmem>>, vector<16x256xf32>
    %c0_2 = arith.constant 0 : index
    %c0_3 = arith.constant 0 : index
    %4 = vector.load %arg3[%c0_2, %c0_3] : memref<16x256xbf16, #tpu.memory_space<vmem>>, vector<16x256xbf16>
    %c0_4 = arith.constant 0 : index
    %c0_5 = arith.constant 0 : index
    %5 = vector.load %arg4[%c0_4, %c0_5] : memref<256x256xbf16, #tpu.memory_space<vmem>>, vector<256x256xbf16>
    %cst = arith.constant dense<0.000000e+00> : vector<16x256xf32>
    %6 = tpu.matmul %4, %5, %cst {dimension_numbers = #tpu.dot_dimension_numbers<[1], [0], [0], [1], [0, 0, 1, 1], [], []>} : vector<16x256xbf16>, vector<256x256xbf16>, vector<16x256xf32> -> vector<16x256xf32>
    %7 = arith.addf %3, %6 : vector<16x256xf32>
    %c0_6 = arith.constant 0 : index
    %c0_7 = arith.constant 0 : index
    %8 = vector.load %arg7[%c0_6, %c0_7] : memref<16x256xf32, #tpu.memory_space<vmem>>, vector<16x256xf32>
    tpu.vector_store %arg7[%c0_6, %c0_7], %7 {strides = array<i32>} : memref<16x256xf32, #tpu.memory_space<vmem>>, vector<16x256xf32>,
    %c2_i32 = arith.constant 2 : i32
    %9 = arith.cmpi eq, %arg2, %c2_i32 : i32
    %10 = arith.extui %9 : i1 to i32
    %c0_i32_8 = arith.constant 0 : i32
    %11 = arith.cmpi ne, %10, %c0_i32_8 : i32
    scf.if %11 {
      %c0_9 = arith.constant 0 : index
      %c0_10 = arith.constant 0 : index
      %12 = vector.load %arg7[%c0_9, %c0_10] : memref<16x256xf32, #tpu.memory_space<vmem>>, vector<16x256xf32>
      %c0_11 = arith.constant 0 : index
      %c0_12 = arith.constant 0 : index
      %13 = vector.load %arg5[%c0_11, %c0_12] : memref<1x256xf32, #tpu.memory_space<vmem>>, vector<1x256xf32>
      %14 = vector.broadcast %13 : vector<1x256xf32> to vector<16x256xf32>
      %15 = arith.addf %12, %14 : vector<16x256xf32>
      %16 = arith.truncf %15 : vector<16x256xf32> to vector<16x256xbf16>
      %c0_13 = arith.constant 0 : index
      %c0_14 = arith.constant 0 : index
      %17 = vector.load %arg6[%c0_13, %c0_14] : memref<16x256xbf16, #tpu.memory_space<vmem>>, vector<16x256xbf16>
      tpu.vector_store %arg6[%c0_13, %c0_14], %16 {strides = array<i32>} : memref<16x256xbf16, #tpu.memory_space<vmem>>, vector<16x256xbf16>,
    } else {
    }
    return
  }
  func.func @transform_0(%arg0: i32, %arg1: i32, %arg2: i32) -> (i32, i32) {
    %c0_i32 = arith.constant 0 : i32
    return %arg0, %arg2 : i32, i32
  }
  func.func @transform_1(%arg0: i32, %arg1: i32, %arg2: i32) -> (i32, i32) {
    %c0_i32 = arith.constant 0 : i32
    return %arg2, %arg1 : i32, i32
  }
  func.func @transform_2(%arg0: i32, %arg1: i32, %arg2: i32) -> (i32, i32) {
    %c0_i32 = arith.constant 0 : i32
    %c0_i32_0 = arith.constant 0 : i32
    return %c0_i32, %arg1 : i32, i32
  }
  func.func @transform_3(%arg0: i32, %arg1: i32, %arg2: i32) -> (i32, i32) {
    %c0_i32 = arith.constant 0 : i32
    return %arg0, %arg1 : i32, i32
  }
}

module attributes {stable_mosaic.version = 11 : i64} {
  func.func @_attention_kernel(%arg0: i32, %arg1: i32, %arg2: memref<1x1x8x64xbf16, #tpu.memory_space<vmem>>, %arg3: memref<1x1x8x64xbf16, #tpu.memory_space<vmem>>, %arg4: memref<1x1x8x64xbf16, #tpu.memory_space<vmem>>, %arg5: memref<1x1x8xf32, #tpu.memory_space<vmem>>, %arg6: memref<1x1x8x64xbf16, #tpu.memory_space<vmem>>) attributes {dimension_semantics = [#tpu.dimension_semantics<parallel>, #tpu.dimension_semantics<parallel>], iteration_bounds = array<i64: 2, 12>, scalar_prefetch = 0 : i64, scratch_operands = 0 : i64, tpu.core_type = #tpu.core_type<tc>, window_params = [{transform_indices = @transform_0, window_bounds = array<i64: 1, 1, 8, 64>}, {transform_indices = @transform_1, window_bounds = array<i64: 1, 1, 8, 64>}, {transform_indices = @transform_2, window_bounds = array<i64: 1, 1, 8, 64>}, {transform_indices = @transform_3, window_bounds = array<i64: 1, 1, 8>}, {transform_indices = @transform_4, window_bounds = array<i64: 1, 1, 8, 64>}]} {
    %c0 = arith.constant 0 : index
    %c0_0 = arith.constant 0 : index
    %c0_1 = arith.constant 0 : index
    %c0_2 = arith.constant 0 : index
    %0 = vector.load %arg2[%c0, %c0_0, %c0_1, %c0_2] : memref<1x1x8x64xbf16, #tpu.memory_space<vmem>>, vector<1x1x8x64xbf16>
    %1 = vector.shape_cast %0 : vector<1x1x8x64xbf16> to vector<8x64xbf16>
    %c0_3 = arith.constant 0 : index
    %c0_4 = arith.constant 0 : index
    %c0_5 = arith.constant 0 : index
    %c0_6 = arith.constant 0 : index
    %2 = vector.load %arg3[%c0_3, %c0_4, %c0_5, %c0_6] : memref<1x1x8x64xbf16, #tpu.memory_space<vmem>>, vector<1x1x8x64xbf16>
    %3 = vector.shape_cast %2 : vector<1x1x8x64xbf16> to vector<8x64xbf16>
    %c0_7 = arith.constant 0 : index
    %c0_8 = arith.constant 0 : index
    %c0_9 = arith.constant 0 : index
    %c0_10 = arith.constant 0 : index
    %4 = vector.load %arg4[%c0_7, %c0_8, %c0_9, %c0_10] : memref<1x1x8x64xbf16, #tpu.memory_space<vmem>>, vector<1x1x8x64xbf16>
    %5 = vector.shape_cast %4 : vector<1x1x8x64xbf16> to vector<8x64xbf16>
    %cst = arith.constant dense<0.000000e+00> : vector<8x8xf32>
    %6 = tpu.matmul %1, %3, %cst {dimension_numbers = #tpu.dot_dimension_numbers<[1], [1], [0], [0], [0, 0, 1, 0], [], []>} : vector<8x64xbf16>, vector<8x64xbf16>, vector<8x8xf32> -> vector<8x8xf32>
    %cst_11 = arith.constant 1.250000e-01 : f32
    %7 = vector.broadcast %cst_11 : f32 to vector<8x8xf32>
    %8 = arith.mulf %6, %7 : vector<8x8xf32>
    %c0_12 = arith.constant 0 : index
    %c0_13 = arith.constant 0 : index
    %c0_14 = arith.constant 0 : index
    %9 = vector.load %arg5[%c0_12, %c0_13, %c0_14] : memref<1x1x8xf32, #tpu.memory_space<vmem>>, vector<1x1x8xf32>
    %10 = vector.shape_cast %9 : vector<1x1x8xf32> to vector<1x8xf32>
    %11 = vector.broadcast %10 : vector<1x8xf32> to vector<8x8xf32>
    %12 = arith.addf %8, %11 : vector<8x8xf32>
    %cst_15 = arith.constant dense<0xFF800000> : vector<8xf32>
    %13 = vector.multi_reduction <maximumf>, %12, %cst_15 [1] : vector<8x8xf32> to vector<8xf32>
    %14 = vector.shape_cast %13 : vector<8xf32> to vector<8x1xf32>
    %15 = vector.broadcast %14 : vector<8x1xf32> to vector<8x8xf32>
    %16 = arith.subf %12, %15 : vector<8x8xf32>
    %17 = math.exp %16 : vector<8x8xf32>
    %cst_16 = arith.constant dense<0.000000e+00> : vector<8xf32>
    %18 = vector.multi_reduction <add>, %17, %cst_16 [1] : vector<8x8xf32> to vector<8xf32>
    %19 = vector.shape_cast %18 : vector<8xf32> to vector<8x1xf32>
    %20 = tpu.reciprocal %19 {approx = true} : vector<8x1xf32> -> vector<8x1xf32>
    %21 = vector.broadcast %20 : vector<8x1xf32> to vector<8x8xf32>
    %22 = arith.mulf %17, %21 : vector<8x8xf32>
    %23 = arith.truncf %22 : vector<8x8xf32> to vector<8x8xbf16>
    %cst_17 = arith.constant dense<0.000000e+00> : vector<8x64xf32>
    %24 = tpu.matmul %23, %5, %cst_17 {dimension_numbers = #tpu.dot_dimension_numbers<[1], [0], [0], [1], [0, 0, 1, 1], [], []>} : vector<8x8xbf16>, vector<8x64xbf16>, vector<8x64xf32> -> vector<8x64xf32>
    %25 = arith.truncf %24 : vector<8x64xf32> to vector<8x64xbf16>
    %c0_18 = arith.constant 0 : index
    %c0_19 = arith.constant 0 : index
    %c0_20 = arith.constant 0 : index
    %c0_21 = arith.constant 0 : index
    %26 = vector.load %arg6[%c0_18, %c0_19, %c0_20, %c0_21] : memref<1x1x8x64xbf16, #tpu.memory_space<vmem>>, vector<1x1x8x64xbf16>
    %27 = vector.shape_cast %26 : vector<1x1x8x64xbf16> to vector<8x64xbf16>
    %28 = vector.shape_cast %25 : vector<8x64xbf16> to vector<1x1x8x64xbf16>
    tpu.vector_store %arg6[%c0_18, %c0_19, %c0_20, %c0_21], %28 {strides = array<i32>} : memref<1x1x8x64xbf16, #tpu.memory_space<vmem>>, vector<1x1x8x64xbf16>,
    return
  }
  func.func @transform_0(%arg0: i32, %arg1: i32) -> (i32, i32, i32, i32) {
    %c0_i32 = arith.constant 0 : i32
    %c0_i32_0 = arith.constant 0 : i32
    %c0_i32_1 = arith.constant 0 : i32
    return %arg0, %arg1, %c0_i32, %c0_i32_0 : i32, i32, i32, i32
  }
  func.func @transform_1(%arg0: i32, %arg1: i32) -> (i32, i32, i32, i32) {
    %c0_i32 = arith.constant 0 : i32
    %c0_i32_0 = arith.constant 0 : i32
    %c0_i32_1 = arith.constant 0 : i32
    return %arg0, %arg1, %c0_i32, %c0_i32_0 : i32, i32, i32, i32
  }
  func.func @transform_2(%arg0: i32, %arg1: i32) -> (i32, i32, i32, i32) {
    %c0_i32 = arith.constant 0 : i32
    %c0_i32_0 = arith.constant 0 : i32
    %c0_i32_1 = arith.constant 0 : i32
    return %arg0, %arg1, %c0_i32, %c0_i32_0 : i32, i32, i32, i32
  }
  func.func @transform_3(%arg0: i32, %arg1: i32) -> (i32, i32, i32) {
    %c0_i32 = arith.constant 0 : i32
    %c0_i32_0 = arith.constant 0 : i32
    %c0_i32_1 = arith.constant 0 : i32
    return %arg0, %c0_i32, %c0_i32_0 : i32, i32, i32
  }
  func.func @transform_4(%arg0: i32, %arg1: i32) -> (i32, i32, i32, i32) {
    %c0_i32 = arith.constant 0 : i32
    %c0_i32_0 = arith.constant 0 : i32
    %c0_i32_1 = arith.constant 0 : i32
    return %arg0, %arg1, %c0_i32, %c0_i32_0 : i32, i32, i32, i32
  }
}

module attributes {stable_mosaic.version = 11 : i64} {
  func.func @_linear_add_ln_kernel(%arg0: i32, %arg1: i32, %arg2: memref<16x256xbf16, #tpu.memory_space<vmem>>, %arg3: memref<256x768xbf16, #tpu.memory_space<vmem>>, %arg4: memref<1x768xf32, #tpu.memory_space<vmem>>, %arg5: memref<16x768xbf16, #tpu.memory_space<vmem>>, %arg6: memref<1x768xf32, #tpu.memory_space<vmem>>, %arg7: memref<1x768xf32, #tpu.memory_space<vmem>>, %arg8: memref<16x768xbf16, #tpu.memory_space<vmem>>, %arg9: memref<16x768xf32, #tpu.memory_space<vmem>>) attributes {dimension_semantics = [#tpu.dimension_semantics<parallel>, #tpu.dimension_semantics<arbitrary>], iteration_bounds = array<i64: 1, 3>, scalar_prefetch = 0 : i64, scratch_operands = 1 : i64, tpu.core_type = #tpu.core_type<tc>, window_params = [{transform_indices = @transform_0, window_bounds = array<i64: 16, 256>}, {transform_indices = @transform_1, window_bounds = array<i64: 256, 768>}, {pipeline_mode = #tpu.pipeline_mode<synchronous>, transform_indices = @transform_2, window_bounds = array<i64: 1, 768>}, {transform_indices = @transform_3, window_bounds = array<i64: 16, 768>}, {pipeline_mode = #tpu.pipeline_mode<synchronous>, transform_indices = @transform_4, window_bounds = array<i64: 1, 768>}, {pipeline_mode = #tpu.pipeline_mode<synchronous>, transform_indices = @transform_5, window_bounds = array<i64: 1, 768>}, {transform_indices = @transform_6, window_bounds = array<i64: 16, 768>}]} {
    %c0_i32 = arith.constant 0 : i32
    %0 = arith.cmpi eq, %arg1, %c0_i32 : i32
    %1 = arith.extui %0 : i1 to i32
    %c0_i32_0 = arith.constant 0 : i32
    %2 = arith.cmpi ne, %1, %c0_i32_0 : i32
    scf.if %2 {
      %cst_9 = arith.constant 0.000000e+00 : f32
      %12 = vector.broadcast %cst_9 : f32 to vector<16x768xf32>
      %c0_10 = arith.constant 0 : index
      %c0_11 = arith.constant 0 : index
      %13 = vector.load %arg9[%c0_10, %c0_11] : memref<16x768xf32, #tpu.memory_space<vmem>>, vector<16x768xf32>
      tpu.vector_store %arg9[%c0_10, %c0_11], %12 {strides = array<i32>} : memref<16x768xf32, #tpu.memory_space<vmem>>, vector<16x768xf32>,
    } else {
    }
    %c0 = arith.constant 0 : index
    %c0_1 = arith.constant 0 : index
    %3 = vector.load %arg9[%c0, %c0_1] : memref<16x768xf32, #tpu.memory_space<vmem>>, vector<16x768xf32>
    %c0_2 = arith.constant 0 : index
    %c0_3 = arith.constant 0 : index
    %4 = vector.load %arg2[%c0_2, %c0_3] : memref<16x256xbf16, #tpu.memory_space<vmem>>, vector<16x256xbf16>
    %c0_4 = arith.constant 0 : index
    %c0_5 = arith.constant 0 : index
    %5 = vector.load %arg3[%c0_4, %c0_5] : memref<256x768xbf16, #tpu.memory_space<vmem>>, vector<256x768xbf16>
    %cst = arith.constant dense<0.000000e+00> : vector<16x768xf32>
    %6 = tpu.matmul %4, %5, %cst {dimension_numbers = #tpu.dot_dimension_numbers<[1], [0], [0], [1], [0, 0, 1, 1], [], []>} : vector<16x256xbf16>, vector<256x768xbf16>, vector<16x768xf32> -> vector<16x768xf32>
    %7 = arith.addf %3, %6 : vector<16x768xf32>
    %c0_6 = arith.constant 0 : index
    %c0_7 = arith.constant 0 : index
    %8 = vector.load %arg9[%c0_6, %c0_7] : memref<16x768xf32, #tpu.memory_space<vmem>>, vector<16x768xf32>
    tpu.vector_store %arg9[%c0_6, %c0_7], %7 {strides = array<i32>} : memref<16x768xf32, #tpu.memory_space<vmem>>, vector<16x768xf32>,
    %c2_i32 = arith.constant 2 : i32
    %9 = arith.cmpi eq, %arg1, %c2_i32 : i32
    %10 = arith.extui %9 : i1 to i32
    %c0_i32_8 = arith.constant 0 : i32
    %11 = arith.cmpi ne, %10, %c0_i32_8 : i32
    scf.if %11 {
      %c0_9 = arith.constant 0 : index
      %c0_10 = arith.constant 0 : index
      %12 = vector.load %arg9[%c0_9, %c0_10] : memref<16x768xf32, #tpu.memory_space<vmem>>, vector<16x768xf32>
      %c0_11 = arith.constant 0 : index
      %c0_12 = arith.constant 0 : index
      %13 = vector.load %arg4[%c0_11, %c0_12] : memref<1x768xf32, #tpu.memory_space<vmem>>, vector<1x768xf32>
      %14 = vector.broadcast %13 : vector<1x768xf32> to vector<16x768xf32>
      %15 = arith.addf %12, %14 : vector<16x768xf32>
      %c0_13 = arith.constant 0 : index
      %c0_14 = arith.constant 0 : index
      %16 = vector.load %arg5[%c0_13, %c0_14] : memref<16x768xbf16, #tpu.memory_space<vmem>>, vector<16x768xbf16>
      %17 = arith.extf %16 : vector<16x768xbf16> to vector<16x768xf32>
      %18 = arith.addf %15, %17 : vector<16x768xf32>
      %cst_15 = arith.constant dense<0.000000e+00> : vector<16xf32>
      %19 = vector.multi_reduction <add>, %18, %cst_15 [1] : vector<16x768xf32> to vector<16xf32>
      %20 = vector.shape_cast %19 : vector<16xf32> to vector<16x1xf32>
      %cst_16 = arith.constant 7.680000e+02 : f32
      %21 = vector.broadcast %cst_16 : f32 to vector<16x1xf32>
      %22 = arith.divf %20, %21 : vector<16x1xf32>
      %23 = vector.broadcast %22 : vector<16x1xf32> to vector<16x768xf32>
      %24 = arith.subf %18, %23 : vector<16x768xf32>
      %25 = arith.mulf %24, %24 : vector<16x768xf32>
      %cst_17 = arith.constant dense<0.000000e+00> : vector<16xf32>
      %26 = vector.multi_reduction <add>, %25, %cst_17 [1] : vector<16x768xf32> to vector<16xf32>
      %27 = vector.shape_cast %26 : vector<16xf32> to vector<16x1xf32>
      %cst_18 = arith.constant 7.680000e+02 : f32
      %28 = vector.broadcast %cst_18 : f32 to vector<16x1xf32>
      %29 = arith.divf %27, %28 : vector<16x1xf32>
      %cst_19 = arith.constant 9.99999996E-13 : f32
      %30 = vector.broadcast %cst_19 : f32 to vector<16x1xf32>
      %31 = arith.addf %29, %30 : vector<16x1xf32>
      %32 = math.rsqrt %31 : vector<16x1xf32>
      %33 = vector.broadcast %22 : vector<16x1xf32> to vector<16x768xf32>
      %34 = arith.subf %18, %33 : vector<16x768xf32>
      %35 = vector.broadcast %32 : vector<16x1xf32> to vector<16x768xf32>
      %36 = arith.mulf %34, %35 : vector<16x768xf32>
      %c0_20 = arith.constant 0 : index
      %c0_21 = arith.constant 0 : index
      %37 = vector.load %arg6[%c0_20, %c0_21] : memref<1x768xf32, #tpu.memory_space<vmem>>, vector<1x768xf32>
      %38 = vector.broadcast %37 : vector<1x768xf32> to vector<16x768xf32>
      %39 = arith.mulf %36, %38 : vector<16x768xf32>
      %c0_22 = arith.constant 0 : index
      %c0_23 = arith.constant 0 : index
      %40 = vector.load %arg7[%c0_22, %c0_23] : memref<1x768xf32, #tpu.memory_space<vmem>>, vector<1x768xf32>
      %41 = vector.broadcast %40 : vector<1x768xf32> to vector<16x768xf32>
      %42 = arith.addf %39, %41 : vector<16x768xf32>
      %43 = arith.truncf %42 : vector<16x768xf32> to vector<16x768xbf16>
      %c0_24 = arith.constant 0 : index
      %c0_25 = arith.constant 0 : index
      %44 = vector.load %arg8[%c0_24, %c0_25] : memref<16x768xbf16, #tpu.memory_space<vmem>>, vector<16x768xbf16>
      tpu.vector_store %arg8[%c0_24, %c0_25], %43 {strides = array<i32>} : memref<16x768xbf16, #tpu.memory_space<vmem>>, vector<16x768xbf16>,
    } else {
    }
    return
  }
  func.func @transform_0(%arg0: i32, %arg1: i32) -> (i32, i32) {
    %c0_i32 = arith.constant 0 : i32
    return %arg0, %arg1 : i32, i32
  }
  func.func @transform_1(%arg0: i32, %arg1: i32) -> (i32, i32) {
    %c0_i32 = arith.constant 0 : i32
    %c0_i32_0 = arith.constant 0 : i32
    return %arg1, %c0_i32 : i32, i32
  }
  func.func @transform_2(%arg0: i32, %arg1: i32) -> (i32, i32) {
    %c0_i32 = arith.constant 0 : i32
    %c0_i32_0 = arith.constant 0 : i32
    %c0_i32_1 = arith.constant 0 : i32
    return %c0_i32, %c0_i32_0 : i32, i32
  }
  func.func @transform_3(%arg0: i32, %arg1: i32) -> (i32, i32) {
    %c0_i32 = arith.constant 0 : i32
    %c0_i32_0 = arith.constant 0 : i32
    return %arg0, %c0_i32 : i32, i32
  }
  func.func @transform_4(%arg0: i32, %arg1: i32) -> (i32, i32) {
    %c0_i32 = arith.constant 0 : i32
    %c0_i32_0 = arith.constant 0 : i32
    %c0_i32_1 = arith.constant 0 : i32
    return %c0_i32, %c0_i32_0 : i32, i32
  }
  func.func @transform_5(%arg0: i32, %arg1: i32) -> (i32, i32) {
    %c0_i32 = arith.constant 0 : i32
    %c0_i32_0 = arith.constant 0 : i32
    %c0_i32_1 = arith.constant 0 : i32
    return %c0_i32, %c0_i32_0 : i32, i32
  }
  func.func @transform_6(%arg0: i32, %arg1: i32) -> (i32, i32) {
    %c0_i32 = arith.constant 0 : i32
    %c0_i32_0 = arith.constant 0 : i32
    return %arg0, %c0_i32 : i32, i32
  }
}

module attributes {stable_mosaic.version = 11 : i64} {
  func.func @_linear_kernel(%arg0: i32, %arg1: i32, %arg2: i32, %arg3: memref<16x256xbf16, #tpu.memory_space<vmem>>, %arg4: memref<256x512xbf16, #tpu.memory_space<vmem>>, %arg5: memref<1x512xf32, #tpu.memory_space<vmem>>, %arg6: memref<16x512xbf16, #tpu.memory_space<vmem>>, %arg7: memref<16x512xf32, #tpu.memory_space<vmem>>) attributes {dimension_semantics = [#tpu.dimension_semantics<parallel>, #tpu.dimension_semantics<parallel>, #tpu.dimension_semantics<arbitrary>], iteration_bounds = array<i64: 1, 6, 3>, scalar_prefetch = 0 : i64, scratch_operands = 1 : i64, tpu.core_type = #tpu.core_type<tc>, window_params = [{transform_indices = @transform_0, window_bounds = array<i64: 16, 256>}, {transform_indices = @transform_1, window_bounds = array<i64: 256, 512>}, {transform_indices = @transform_2, window_bounds = array<i64: 1, 512>}, {transform_indices = @transform_3, window_bounds = array<i64: 16, 512>}]} {
    %c0_i32 = arith.constant 0 : i32
    %0 = arith.cmpi eq, %arg2, %c0_i32 : i32
    %1 = arith.extui %0 : i1 to i32
    %c0_i32_0 = arith.constant 0 : i32
    %2 = arith.cmpi ne, %1, %c0_i32_0 : i32
    scf.if %2 {
      %cst_9 = arith.constant 0.000000e+00 : f32
      %12 = vector.broadcast %cst_9 : f32 to vector<16x512xf32>
      %c0_10 = arith.constant 0 : index
      %c0_11 = arith.constant 0 : index
      %13 = vector.load %arg7[%c0_10, %c0_11] : memref<16x512xf32, #tpu.memory_space<vmem>>, vector<16x512xf32>
      tpu.vector_store %arg7[%c0_10, %c0_11], %12 {strides = array<i32>} : memref<16x512xf32, #tpu.memory_space<vmem>>, vector<16x512xf32>,
    } else {
    }
    %c0 = arith.constant 0 : index
    %c0_1 = arith.constant 0 : index
    %3 = vector.load %arg7[%c0, %c0_1] : memref<16x512xf32, #tpu.memory_space<vmem>>, vector<16x512xf32>
    %c0_2 = arith.constant 0 : index
    %c0_3 = arith.constant 0 : index
    %4 = vector.load %arg3[%c0_2, %c0_3] : memref<16x256xbf16, #tpu.memory_space<vmem>>, vector<16x256xbf16>
    %c0_4 = arith.constant 0 : index
    %c0_5 = arith.constant 0 : index
    %5 = vector.load %arg4[%c0_4, %c0_5] : memref<256x512xbf16, #tpu.memory_space<vmem>>, vector<256x512xbf16>
    %cst = arith.constant dense<0.000000e+00> : vector<16x512xf32>
    %6 = tpu.matmul %4, %5, %cst {dimension_numbers = #tpu.dot_dimension_numbers<[1], [0], [0], [1], [0, 0, 1, 1], [], []>} : vector<16x256xbf16>, vector<256x512xbf16>, vector<16x512xf32> -> vector<16x512xf32>
    %7 = arith.addf %3, %6 : vector<16x512xf32>
    %c0_6 = arith.constant 0 : index
    %c0_7 = arith.constant 0 : index
    %8 = vector.load %arg7[%c0_6, %c0_7] : memref<16x512xf32, #tpu.memory_space<vmem>>, vector<16x512xf32>
    tpu.vector_store %arg7[%c0_6, %c0_7], %7 {strides = array<i32>} : memref<16x512xf32, #tpu.memory_space<vmem>>, vector<16x512xf32>,
    %c2_i32 = arith.constant 2 : i32
    %9 = arith.cmpi eq, %arg2, %c2_i32 : i32
    %10 = arith.extui %9 : i1 to i32
    %c0_i32_8 = arith.constant 0 : i32
    %11 = arith.cmpi ne, %10, %c0_i32_8 : i32
    scf.if %11 {
      %c0_9 = arith.constant 0 : index
      %c0_10 = arith.constant 0 : index
      %12 = vector.load %arg7[%c0_9, %c0_10] : memref<16x512xf32, #tpu.memory_space<vmem>>, vector<16x512xf32>
      %c0_11 = arith.constant 0 : index
      %c0_12 = arith.constant 0 : index
      %13 = vector.load %arg5[%c0_11, %c0_12] : memref<1x512xf32, #tpu.memory_space<vmem>>, vector<1x512xf32>
      %14 = vector.broadcast %13 : vector<1x512xf32> to vector<16x512xf32>
      %15 = arith.addf %12, %14 : vector<16x512xf32>
      %cst_13 = arith.constant 5.000000e-01 : f32
      %16 = vector.broadcast %cst_13 : f32 to vector<16x512xf32>
      %17 = arith.mulf %16, %15 : vector<16x512xf32>
      %cst_14 = arith.constant 0.707106769 : f32
      %18 = vector.broadcast %cst_14 : f32 to vector<16x512xf32>
      %19 = arith.mulf %15, %18 : vector<16x512xf32>
      %20 = math.erf %19 : vector<16x512xf32>
      %cst_15 = arith.constant 1.000000e+00 : f32
      %21 = vector.broadcast %cst_15 : f32 to vector<16x512xf32>
      %22 = arith.addf %21, %20 : vector<16x512xf32>
      %23 = arith.mulf %17, %22 : vector<16x512xf32>
      %24 = arith.truncf %23 : vector<16x512xf32> to vector<16x512xbf16>
      %c0_16 = arith.constant 0 : index
      %c0_17 = arith.constant 0 : index
      %25 = vector.load %arg6[%c0_16, %c0_17] : memref<16x512xbf16, #tpu.memory_space<vmem>>, vector<16x512xbf16>
      tpu.vector_store %arg6[%c0_16, %c0_17], %24 {strides = array<i32>} : memref<16x512xbf16, #tpu.memory_space<vmem>>, vector<16x512xbf16>,
    } else {
    }
    return
  }
  func.func @transform_0(%arg0: i32, %arg1: i32, %arg2: i32) -> (i32, i32) {
    %c0_i32 = arith.constant 0 : i32
    return %arg0, %arg2 : i32, i32
  }
  func.func @transform_1(%arg0: i32, %arg1: i32, %arg2: i32) -> (i32, i32) {
    %c0_i32 = arith.constant 0 : i32
    return %arg2, %arg1 : i32, i32
  }
  func.func @transform_2(%arg0: i32, %arg1: i32, %arg2: i32) -> (i32, i32) {
    %c0_i32 = arith.constant 0 : i32
    %c0_i32_0 = arith.constant 0 : i32
    return %c0_i32, %arg1 : i32, i32
  }
  func.func @transform_3(%arg0: i32, %arg1: i32, %arg2: i32) -> (i32, i32) {
    %c0_i32 = arith.constant 0 : i32
    return %arg0, %arg1 : i32, i32
  }
}

module attributes {stable_mosaic.version = 11 : i64} {
  func.func @_linear_add_ln_kernel(%arg0: i32, %arg1: i32, %arg2: memref<16x512xbf16, #tpu.memory_space<vmem>>, %arg3: memref<512x768xbf16, #tpu.memory_space<vmem>>, %arg4: memref<1x768xf32, #tpu.memory_space<vmem>>, %arg5: memref<16x768xbf16, #tpu.memory_space<vmem>>, %arg6: memref<1x768xf32, #tpu.memory_space<vmem>>, %arg7: memref<1x768xf32, #tpu.memory_space<vmem>>, %arg8: memref<16x768xbf16, #tpu.memory_space<vmem>>, %arg9: memref<16x768xf32, #tpu.memory_space<vmem>>) attributes {dimension_semantics = [#tpu.dimension_semantics<parallel>, #tpu.dimension_semantics<arbitrary>], iteration_bounds = array<i64: 1, 6>, scalar_prefetch = 0 : i64, scratch_operands = 1 : i64, tpu.core_type = #tpu.core_type<tc>, window_params = [{transform_indices = @transform_0, window_bounds = array<i64: 16, 512>}, {transform_indices = @transform_1, window_bounds = array<i64: 512, 768>}, {pipeline_mode = #tpu.pipeline_mode<synchronous>, transform_indices = @transform_2, window_bounds = array<i64: 1, 768>}, {transform_indices = @transform_3, window_bounds = array<i64: 16, 768>}, {pipeline_mode = #tpu.pipeline_mode<synchronous>, transform_indices = @transform_4, window_bounds = array<i64: 1, 768>}, {pipeline_mode = #tpu.pipeline_mode<synchronous>, transform_indices = @transform_5, window_bounds = array<i64: 1, 768>}, {transform_indices = @transform_6, window_bounds = array<i64: 16, 768>}]} {
    %c0_i32 = arith.constant 0 : i32
    %0 = arith.cmpi eq, %arg1, %c0_i32 : i32
    %1 = arith.extui %0 : i1 to i32
    %c0_i32_0 = arith.constant 0 : i32
    %2 = arith.cmpi ne, %1, %c0_i32_0 : i32
    scf.if %2 {
      %cst_9 = arith.constant 0.000000e+00 : f32
      %12 = vector.broadcast %cst_9 : f32 to vector<16x768xf32>
      %c0_10 = arith.constant 0 : index
      %c0_11 = arith.constant 0 : index
      %13 = vector.load %arg9[%c0_10, %c0_11] : memref<16x768xf32, #tpu.memory_space<vmem>>, vector<16x768xf32>
      tpu.vector_store %arg9[%c0_10, %c0_11], %12 {strides = array<i32>} : memref<16x768xf32, #tpu.memory_space<vmem>>, vector<16x768xf32>,
    } else {
    }
    %c0 = arith.constant 0 : index
    %c0_1 = arith.constant 0 : index
    %3 = vector.load %arg9[%c0, %c0_1] : memref<16x768xf32, #tpu.memory_space<vmem>>, vector<16x768xf32>
    %c0_2 = arith.constant 0 : index
    %c0_3 = arith.constant 0 : index
    %4 = vector.load %arg2[%c0_2, %c0_3] : memref<16x512xbf16, #tpu.memory_space<vmem>>, vector<16x512xbf16>
    %c0_4 = arith.constant 0 : index
    %c0_5 = arith.constant 0 : index
    %5 = vector.load %arg3[%c0_4, %c0_5] : memref<512x768xbf16, #tpu.memory_space<vmem>>, vector<512x768xbf16>
    %cst = arith.constant dense<0.000000e+00> : vector<16x768xf32>
    %6 = tpu.matmul %4, %5, %cst {dimension_numbers = #tpu.dot_dimension_numbers<[1], [0], [0], [1], [0, 0, 1, 1], [], []>} : vector<16x512xbf16>, vector<512x768xbf16>, vector<16x768xf32> -> vector<16x768xf32>
    %7 = arith.addf %3, %6 : vector<16x768xf32>
    %c0_6 = arith.constant 0 : index
    %c0_7 = arith.constant 0 : index
    %8 = vector.load %arg9[%c0_6, %c0_7] : memref<16x768xf32, #tpu.memory_space<vmem>>, vector<16x768xf32>
    tpu.vector_store %arg9[%c0_6, %c0_7], %7 {strides = array<i32>} : memref<16x768xf32, #tpu.memory_space<vmem>>, vector<16x768xf32>,
    %c5_i32 = arith.constant 5 : i32
    %9 = arith.cmpi eq, %arg1, %c5_i32 : i32
    %10 = arith.extui %9 : i1 to i32
    %c0_i32_8 = arith.constant 0 : i32
    %11 = arith.cmpi ne, %10, %c0_i32_8 : i32
    scf.if %11 {
      %c0_9 = arith.constant 0 : index
      %c0_10 = arith.constant 0 : index
      %12 = vector.load %arg9[%c0_9, %c0_10] : memref<16x768xf32, #tpu.memory_space<vmem>>, vector<16x768xf32>
      %c0_11 = arith.constant 0 : index
      %c0_12 = arith.constant 0 : index
      %13 = vector.load %arg4[%c0_11, %c0_12] : memref<1x768xf32, #tpu.memory_space<vmem>>, vector<1x768xf32>
      %14 = vector.broadcast %13 : vector<1x768xf32> to vector<16x768xf32>
      %15 = arith.addf %12, %14 : vector<16x768xf32>
      %c0_13 = arith.constant 0 : index
      %c0_14 = arith.constant 0 : index
      %16 = vector.load %arg5[%c0_13, %c0_14] : memref<16x768xbf16, #tpu.memory_space<vmem>>, vector<16x768xbf16>
      %17 = arith.extf %16 : vector<16x768xbf16> to vector<16x768xf32>
      %18 = arith.addf %15, %17 : vector<16x768xf32>
      %cst_15 = arith.constant dense<0.000000e+00> : vector<16xf32>
      %19 = vector.multi_reduction <add>, %18, %cst_15 [1] : vector<16x768xf32> to vector<16xf32>
      %20 = vector.shape_cast %19 : vector<16xf32> to vector<16x1xf32>
      %cst_16 = arith.constant 7.680000e+02 : f32
      %21 = vector.broadcast %cst_16 : f32 to vector<16x1xf32>
      %22 = arith.divf %20, %21 : vector<16x1xf32>
      %23 = vector.broadcast %22 : vector<16x1xf32> to vector<16x768xf32>
      %24 = arith.subf %18, %23 : vector<16x768xf32>
      %25 = arith.mulf %24, %24 : vector<16x768xf32>
      %cst_17 = arith.constant dense<0.000000e+00> : vector<16xf32>
      %26 = vector.multi_reduction <add>, %25, %cst_17 [1] : vector<16x768xf32> to vector<16xf32>
      %27 = vector.shape_cast %26 : vector<16xf32> to vector<16x1xf32>
      %cst_18 = arith.constant 7.680000e+02 : f32
      %28 = vector.broadcast %cst_18 : f32 to vector<16x1xf32>
      %29 = arith.divf %27, %28 : vector<16x1xf32>
      %cst_19 = arith.constant 9.99999996E-13 : f32
      %30 = vector.broadcast %cst_19 : f32 to vector<16x1xf32>
      %31 = arith.addf %29, %30 : vector<16x1xf32>
      %32 = math.rsqrt %31 : vector<16x1xf32>
      %33 = vector.broadcast %22 : vector<16x1xf32> to vector<16x768xf32>
      %34 = arith.subf %18, %33 : vector<16x768xf32>
      %35 = vector.broadcast %32 : vector<16x1xf32> to vector<16x768xf32>
      %36 = arith.mulf %34, %35 : vector<16x768xf32>
      %c0_20 = arith.constant 0 : index
      %c0_21 = arith.constant 0 : index
      %37 = vector.load %arg6[%c0_20, %c0_21] : memref<1x768xf32, #tpu.memory_space<vmem>>, vector<1x768xf32>
      %38 = vector.broadcast %37 : vector<1x768xf32> to vector<16x768xf32>
      %39 = arith.mulf %36, %38 : vector<16x768xf32>
      %c0_22 = arith.constant 0 : index
      %c0_23 = arith.constant 0 : index
      %40 = vector.load %arg7[%c0_22, %c0_23] : memref<1x768xf32, #tpu.memory_space<vmem>>, vector<1x768xf32>
      %41 = vector.broadcast %40 : vector<1x768xf32> to vector<16x768xf32>
      %42 = arith.addf %39, %41 : vector<16x768xf32>
      %43 = arith.truncf %42 : vector<16x768xf32> to vector<16x768xbf16>
      %c0_24 = arith.constant 0 : index
      %c0_25 = arith.constant 0 : index
      %44 = vector.load %arg8[%c0_24, %c0_25] : memref<16x768xbf16, #tpu.memory_space<vmem>>, vector<16x768xbf16>
      tpu.vector_store %arg8[%c0_24, %c0_25], %43 {strides = array<i32>} : memref<16x768xbf16, #tpu.memory_space<vmem>>, vector<16x768xbf16>,
    } else {
    }
    return
  }
  func.func @transform_0(%arg0: i32, %arg1: i32) -> (i32, i32) {
    %c0_i32 = arith.constant 0 : i32
    return %arg0, %arg1 : i32, i32
  }
  func.func @transform_1(%arg0: i32, %arg1: i32) -> (i32, i32) {
    %c0_i32 = arith.constant 0 : i32
    %c0_i32_0 = arith.constant 0 : i32
    return %arg1, %c0_i32 : i32, i32
  }
  func.func @transform_2(%arg0: i32, %arg1: i32) -> (i32, i32) {
    %c0_i32 = arith.constant 0 : i32
    %c0_i32_0 = arith.constant 0 : i32
    %c0_i32_1 = arith.constant 0 : i32
    return %c0_i32, %c0_i32_0 : i32, i32
  }
  func.func @transform_3(%arg0: i32, %arg1: i32) -> (i32, i32) {
    %c0_i32 = arith.constant 0 : i32
    %c0_i32_0 = arith.constant 0 : i32
    return %arg0, %c0_i32 : i32, i32
  }
  func.func @transform_4(%arg0: i32, %arg1: i32) -> (i32, i32) {
    %c0_i32 = arith.constant 0 : i32
    %c0_i32_0 = arith.constant 0 : i32
    %c0_i32_1 = arith.constant 0 : i32
    return %c0_i32, %c0_i32_0 : i32, i32
  }
  func.func @transform_5(%arg0: i32, %arg1: i32) -> (i32, i32) {
    %c0_i32 = arith.constant 0 : i32
    %c0_i32_0 = arith.constant 0 : i32
    %c0_i32_1 = arith.constant 0 : i32
    return %c0_i32, %c0_i32_0 : i32, i32
  }
  func.func @transform_6(%arg0: i32, %arg1: i32) -> (i32, i32) {
    %c0_i32 = arith.constant 0 : i32
    %c0_i32_0 = arith.constant 0 : i32
    return %arg0, %c0_i32 : i32, i32
  }
}

module attributes {stable_mosaic.version = 11 : i64} {
  func.func @_cnn_head_kernel(%arg0: i32, %arg1: memref<2x8x768xbf16, #tpu.memory_space<vmem>>, %arg2: memref<3x768x128xbf16, #tpu.memory_space<vmem>>, %arg3: memref<1x128xf32, #tpu.memory_space<vmem>>, %arg4: memref<3x128x64xbf16, #tpu.memory_space<vmem>>, %arg5: memref<1x64xf32, #tpu.memory_space<vmem>>, %arg6: memref<64x128xbf16, #tpu.memory_space<vmem>>, %arg7: memref<1x128xf32, #tpu.memory_space<vmem>>, %arg8: memref<2x128xf32, #tpu.memory_space<vmem>>) attributes {dimension_semantics = [#tpu.dimension_semantics<arbitrary>], iteration_bounds = array<i64: 1>, scalar_prefetch = 0 : i64, scratch_operands = 0 : i64, tpu.core_type = #tpu.core_type<tc>, window_params = [{pipeline_mode = #tpu.pipeline_mode<synchronous>, transform_indices = @transform_0, window_bounds = array<i64: 2, 8, 768>}, {pipeline_mode = #tpu.pipeline_mode<synchronous>, transform_indices = @transform_1, window_bounds = array<i64: 3, 768, 128>}, {pipeline_mode = #tpu.pipeline_mode<synchronous>, transform_indices = @transform_2, window_bounds = array<i64: 1, 128>}, {pipeline_mode = #tpu.pipeline_mode<synchronous>, transform_indices = @transform_3, window_bounds = array<i64: 3, 128, 64>}, {pipeline_mode = #tpu.pipeline_mode<synchronous>, transform_indices = @transform_4, window_bounds = array<i64: 1, 64>}, {pipeline_mode = #tpu.pipeline_mode<synchronous>, transform_indices = @transform_5, window_bounds = array<i64: 64, 128>}, {pipeline_mode = #tpu.pipeline_mode<synchronous>, transform_indices = @transform_6, window_bounds = array<i64: 1, 128>}, {pipeline_mode = #tpu.pipeline_mode<synchronous>, transform_indices = @transform_7, window_bounds = array<i64: 2, 128>}]} {
    %c0 = arith.constant 0 : index
    %c0_0 = arith.constant 0 : index
    %c0_1 = arith.constant 0 : index
    %0 = vector.load %arg1[%c0, %c0_0, %c0_1] : memref<2x8x768xbf16, #tpu.memory_space<vmem>>, vector<2x8x768xbf16>
    %1 = vector.shape_cast %0 : vector<2x8x768xbf16> to vector<16x768xbf16>
    %c0_2 = arith.constant 0 : index
    %c0_3 = arith.constant 0 : index
    %c0_4 = arith.constant 0 : index
    %2 = vector.load %arg2[%c0_2, %c0_3, %c0_4] : memref<3x768x128xbf16, #tpu.memory_space<vmem>>, vector<1x768x128xbf16>
    %3 = vector.shape_cast %2 : vector<1x768x128xbf16> to vector<768x128xbf16>
    %cst = arith.constant dense<0.000000e+00> : vector<16x128xf32>
    %4 = tpu.matmul %1, %3, %cst {dimension_numbers = #tpu.dot_dimension_numbers<[1], [0], [0], [1], [0, 0, 1, 1], [], []>} : vector<16x768xbf16>, vector<768x128xbf16>, vector<16x128xf32> -> vector<16x128xf32>
    %5 = vector.shape_cast %4 : vector<16x128xf32> to vector<2x8x128xf32>
    %c1 = arith.constant 1 : index
    %c0_5 = arith.constant 0 : index
    %c0_6 = arith.constant 0 : index
    %6 = vector.load %arg2[%c1, %c0_5, %c0_6] : memref<3x768x128xbf16, #tpu.memory_space<vmem>>, vector<1x768x128xbf16>
    %7 = vector.shape_cast %6 : vector<1x768x128xbf16> to vector<768x128xbf16>
    %cst_7 = arith.constant dense<0.000000e+00> : vector<16x128xf32>
    %8 = tpu.matmul %1, %7, %cst_7 {dimension_numbers = #tpu.dot_dimension_numbers<[1], [0], [0], [1], [0, 0, 1, 1], [], []>} : vector<16x768xbf16>, vector<768x128xbf16>, vector<16x128xf32> -> vector<16x128xf32>
    %9 = vector.shape_cast %8 : vector<16x128xf32> to vector<2x8x128xf32>
    %c2 = arith.constant 2 : index
    %c0_8 = arith.constant 0 : index
    %c0_9 = arith.constant 0 : index
    %10 = vector.load %arg2[%c2, %c0_8, %c0_9] : memref<3x768x128xbf16, #tpu.memory_space<vmem>>, vector<1x768x128xbf16>
    %11 = vector.shape_cast %10 : vector<1x768x128xbf16> to vector<768x128xbf16>
    %cst_10 = arith.constant dense<0.000000e+00> : vector<16x128xf32>
    %12 = tpu.matmul %1, %11, %cst_10 {dimension_numbers = #tpu.dot_dimension_numbers<[1], [0], [0], [1], [0, 0, 1, 1], [], []>} : vector<16x768xbf16>, vector<768x128xbf16>, vector<16x128xf32> -> vector<16x128xf32>
    %13 = vector.shape_cast %12 : vector<16x128xf32> to vector<2x8x128xf32>
    %cst_11 = arith.constant 0.000000e+00 : f32
    %14 = vector.broadcast %cst_11 : f32 to vector<2x1x128xf32>
    %15 = vector.extract_strided_slice %5 {offsets = [0, 0, 0], sizes = [2, 7, 128], strides = [1, 1, 1]} : vector<2x8x128xf32> to vector<2x7x128xf32>
    %16 = tpu.concatenate %14, %15 in 1 : vector<2x1x128xf32>, vector<2x7x128xf32> -> vector<2x8x128xf32>
    %17 = arith.addf %9, %16 : vector<2x8x128xf32>
    %18 = vector.extract_strided_slice %13 {offsets = [0, 1, 0], sizes = [2, 7, 128], strides = [1, 1, 1]} : vector<2x8x128xf32> to vector<2x7x128xf32>
    %19 = tpu.concatenate %18, %14 in 1 : vector<2x7x128xf32>, vector<2x1x128xf32> -> vector<2x8x128xf32>
    %20 = arith.addf %17, %19 : vector<2x8x128xf32>
    %c0_12 = arith.constant 0 : index
    %c0_13 = arith.constant 0 : index
    %21 = vector.load %arg3[%c0_12, %c0_13] : memref<1x128xf32, #tpu.memory_space<vmem>>, vector<1x128xf32>
    %22 = vector.shape_cast %21 : vector<1x128xf32> to vector<1x1x128xf32>
    %23 = vector.broadcast %22 : vector<1x1x128xf32> to vector<2x8x128xf32>
    %24 = arith.addf %20, %23 : vector<2x8x128xf32>
    %cst_14 = arith.constant 0.000000e+00 : f32
    %25 = vector.broadcast %cst_14 : f32 to vector<2x8x128xf32>
    %26 = arith.maximumf %24, %25 : vector<2x8x128xf32>
    %27 = vector.extract_strided_slice %26 {offsets = [0, 0, 0], sizes = [2, 1, 128], strides = [1, 1, 1]} : vector<2x8x128xf32> to vector<2x1x128xf32>
    %28 = vector.shape_cast %27 : vector<2x1x128xf32> to vector<2x128xf32>
    %29 = vector.extract_strided_slice %26 {offsets = [0, 1, 0], sizes = [2, 1, 128], strides = [1, 1, 1]} : vector<2x8x128xf32> to vector<2x1x128xf32>
    %30 = vector.shape_cast %29 : vector<2x1x128xf32> to vector<2x128xf32>
    %31 = arith.maximumf %28, %30 : vector<2x128xf32>
    %32 = vector.shape_cast %31 : vector<2x128xf32> to vector<2x1x128xf32>
    %33 = vector.extract_strided_slice %26 {offsets = [0, 2, 0], sizes = [2, 1, 128], strides = [1, 1, 1]} : vector<2x8x128xf32> to vector<2x1x128xf32>
    %34 = vector.shape_cast %33 : vector<2x1x128xf32> to vector<2x128xf32>
    %35 = vector.extract_strided_slice %26 {offsets = [0, 3, 0], sizes = [2, 1, 128], strides = [1, 1, 1]} : vector<2x8x128xf32> to vector<2x1x128xf32>
    %36 = vector.shape_cast %35 : vector<2x1x128xf32> to vector<2x128xf32>
    %37 = arith.maximumf %34, %36 : vector<2x128xf32>
    %38 = vector.shape_cast %37 : vector<2x128xf32> to vector<2x1x128xf32>
    %39 = vector.extract_strided_slice %26 {offsets = [0, 4, 0], sizes = [2, 1, 128], strides = [1, 1, 1]} : vector<2x8x128xf32> to vector<2x1x128xf32>
    %40 = vector.shape_cast %39 : vector<2x1x128xf32> to vector<2x128xf32>
    %41 = vector.extract_strided_slice %26 {offsets = [0, 5, 0], sizes = [2, 1, 128], strides = [1, 1, 1]} : vector<2x8x128xf32> to vector<2x1x128xf32>
    %42 = vector.shape_cast %41 : vector<2x1x128xf32> to vector<2x128xf32>
    %43 = arith.maximumf %40, %42 : vector<2x128xf32>
    %44 = vector.shape_cast %43 : vector<2x128xf32> to vector<2x1x128xf32>
    %45 = vector.extract_strided_slice %26 {offsets = [0, 6, 0], sizes = [2, 1, 128], strides = [1, 1, 1]} : vector<2x8x128xf32> to vector<2x1x128xf32>
    %46 = vector.shape_cast %45 : vector<2x1x128xf32> to vector<2x128xf32>
    %47 = vector.extract_strided_slice %26 {offsets = [0, 7, 0], sizes = [2, 1, 128], strides = [1, 1, 1]} : vector<2x8x128xf32> to vector<2x1x128xf32>
    %48 = vector.shape_cast %47 : vector<2x1x128xf32> to vector<2x128xf32>
    %49 = arith.maximumf %46, %48 : vector<2x128xf32>
    %50 = vector.shape_cast %49 : vector<2x128xf32> to vector<2x1x128xf32>
    %51 = tpu.concatenate %32, %38, %44, %50 in 1 : vector<2x1x128xf32>, vector<2x1x128xf32>, vector<2x1x128xf32>, vector<2x1x128xf32> -> vector<2x4x128xf32>
    %52 = vector.shape_cast %51 : vector<2x4x128xf32> to vector<8x128xf32>
    %53 = arith.truncf %52 : vector<8x128xf32> to vector<8x128xbf16>
    %c0_15 = arith.constant 0 : index
    %c0_16 = arith.constant 0 : index
    %c0_17 = arith.constant 0 : index
    %54 = vector.load %arg4[%c0_15, %c0_16, %c0_17] : memref<3x128x64xbf16, #tpu.memory_space<vmem>>, vector<1x128x64xbf16>
    %55 = vector.shape_cast %54 : vector<1x128x64xbf16> to vector<128x64xbf16>
    %cst_18 = arith.constant dense<0.000000e+00> : vector<8x64xf32>
    %56 = tpu.matmul %53, %55, %cst_18 {dimension_numbers = #tpu.dot_dimension_numbers<[1], [0], [0], [1], [0, 0, 1, 1], [], []>} : vector<8x128xbf16>, vector<128x64xbf16>, vector<8x64xf32> -> vector<8x64xf32>
    %57 = vector.shape_cast %56 : vector<8x64xf32> to vector<2x4x64xf32>
    %c1_19 = arith.constant 1 : index
    %c0_20 = arith.constant 0 : index
    %c0_21 = arith.constant 0 : index
    %58 = vector.load %arg4[%c1_19, %c0_20, %c0_21] : memref<3x128x64xbf16, #tpu.memory_space<vmem>>, vector<1x128x64xbf16>
    %59 = vector.shape_cast %58 : vector<1x128x64xbf16> to vector<128x64xbf16>
    %cst_22 = arith.constant dense<0.000000e+00> : vector<8x64xf32>
    %60 = tpu.matmul %53, %59, %cst_22 {dimension_numbers = #tpu.dot_dimension_numbers<[1], [0], [0], [1], [0, 0, 1, 1], [], []>} : vector<8x128xbf16>, vector<128x64xbf16>, vector<8x64xf32> -> vector<8x64xf32>
    %61 = vector.shape_cast %60 : vector<8x64xf32> to vector<2x4x64xf32>
    %c2_23 = arith.constant 2 : index
    %c0_24 = arith.constant 0 : index
    %c0_25 = arith.constant 0 : index
    %62 = vector.load %arg4[%c2_23, %c0_24, %c0_25] : memref<3x128x64xbf16, #tpu.memory_space<vmem>>, vector<1x128x64xbf16>
    %63 = vector.shape_cast %62 : vector<1x128x64xbf16> to vector<128x64xbf16>
    %cst_26 = arith.constant dense<0.000000e+00> : vector<8x64xf32>
    %64 = tpu.matmul %53, %63, %cst_26 {dimension_numbers = #tpu.dot_dimension_numbers<[1], [0], [0], [1], [0, 0, 1, 1], [], []>} : vector<8x128xbf16>, vector<128x64xbf16>, vector<8x64xf32> -> vector<8x64xf32>
    %65 = vector.shape_cast %64 : vector<8x64xf32> to vector<2x4x64xf32>
    %cst_27 = arith.constant 0.000000e+00 : f32
    %66 = vector.broadcast %cst_27 : f32 to vector<2x1x64xf32>
    %67 = vector.extract_strided_slice %57 {offsets = [0, 0, 0], sizes = [2, 3, 64], strides = [1, 1, 1]} : vector<2x4x64xf32> to vector<2x3x64xf32>
    %68 = tpu.concatenate %66, %67 in 1 : vector<2x1x64xf32>, vector<2x3x64xf32> -> vector<2x4x64xf32>
    %69 = arith.addf %61, %68 : vector<2x4x64xf32>
    %70 = vector.extract_strided_slice %65 {offsets = [0, 1, 0], sizes = [2, 3, 64], strides = [1, 1, 1]} : vector<2x4x64xf32> to vector<2x3x64xf32>
    %71 = tpu.concatenate %70, %66 in 1 : vector<2x3x64xf32>, vector<2x1x64xf32> -> vector<2x4x64xf32>
    %72 = arith.addf %69, %71 : vector<2x4x64xf32>
    %c0_28 = arith.constant 0 : index
    %c0_29 = arith.constant 0 : index
    %73 = vector.load %arg5[%c0_28, %c0_29] : memref<1x64xf32, #tpu.memory_space<vmem>>, vector<1x64xf32>
    %74 = vector.shape_cast %73 : vector<1x64xf32> to vector<1x1x64xf32>
    %75 = vector.broadcast %74 : vector<1x1x64xf32> to vector<2x4x64xf32>
    %76 = arith.addf %72, %75 : vector<2x4x64xf32>
    %cst_30 = arith.constant 0.000000e+00 : f32
    %77 = vector.broadcast %cst_30 : f32 to vector<2x4x64xf32>
    %78 = arith.maximumf %76, %77 : vector<2x4x64xf32>
    %cst_31 = arith.constant dense<0xFF800000> : vector<2x64xf32>
    %79 = vector.multi_reduction <maximumf>, %78, %cst_31 [1] : vector<2x4x64xf32> to vector<2x64xf32>
    %80 = arith.truncf %79 : vector<2x64xf32> to vector<2x64xbf16>
    %c0_32 = arith.constant 0 : index
    %c0_33 = arith.constant 0 : index
    %81 = vector.load %arg6[%c0_32, %c0_33] : memref<64x128xbf16, #tpu.memory_space<vmem>>, vector<64x128xbf16>
    %cst_34 = arith.constant dense<0.000000e+00> : vector<2x128xf32>
    %82 = tpu.matmul %80, %81, %cst_34 {dimension_numbers = #tpu.dot_dimension_numbers<[1], [0], [0], [1], [0, 0, 1, 1], [], []>} : vector<2x64xbf16>, vector<64x128xbf16>, vector<2x128xf32> -> vector<2x128xf32>
    %c0_35 = arith.constant 0 : index
    %c0_36 = arith.constant 0 : index
    %83 = vector.load %arg7[%c0_35, %c0_36] : memref<1x128xf32, #tpu.memory_space<vmem>>, vector<1x128xf32>
    %84 = vector.broadcast %83 : vector<1x128xf32> to vector<2x128xf32>
    %85 = arith.addf %82, %84 : vector<2x128xf32>
    %c0_37 = arith.constant 0 : index
    %c0_38 = arith.constant 0 : index
    %86 = vector.load %arg8[%c0_37, %c0_38] : memref<2x128xf32, #tpu.memory_space<vmem>>, vector<2x128xf32>
    tpu.vector_store %arg8[%c0_37, %c0_38], %85 {strides = array<i32>} : memref<2x128xf32, #tpu.memory_space<vmem>>, vector<2x128xf32>,
    return
  }
  func.func @transform_0(%arg0: i32) -> (i32, i32, i32) {
    %c0_i32 = arith.constant 0 : i32
    %c0_i32_0 = arith.constant 0 : i32
    %c0_i32_1 = arith.constant 0 : i32
    %c0_i32_2 = arith.constant 0 : i32
    return %c0_i32, %c0_i32_0, %c0_i32_1 : i32, i32, i32
  }
  func.func @transform_1(%arg0: i32) -> (i32, i32, i32) {
    %c0_i32 = arith.constant 0 : i32
    %c0_i32_0 = arith.constant 0 : i32
    %c0_i32_1 = arith.constant 0 : i32
    %c0_i32_2 = arith.constant 0 : i32
    return %c0_i32, %c0_i32_0, %c0_i32_1 : i32, i32, i32
  }
  func.func @transform_2(%arg0: i32) -> (i32, i32) {
    %c0_i32 = arith.constant 0 : i32
    %c0_i32_0 = arith.constant 0 : i32
    %c0_i32_1 = arith.constant 0 : i32
    return %c0_i32, %c0_i32_0 : i32, i32
  }
  func.func @transform_3(%arg0: i32) -> (i32, i32, i32) {
    %c0_i32 = arith.constant 0 : i32
    %c0_i32_0 = arith.constant 0 : i32
    %c0_i32_1 = arith.constant 0 : i32
    %c0_i32_2 = arith.constant 0 : i32
    return %c0_i32, %c0_i32_0, %c0_i32_1 : i32, i32, i32
  }
  func.func @transform_4(%arg0: i32) -> (i32, i32) {
    %c0_i32 = arith.constant 0 : i32
    %c0_i32_0 = arith.constant 0 : i32
    %c0_i32_1 = arith.constant 0 : i32
    return %c0_i32, %c0_i32_0 : i32, i32
  }
  func.func @transform_5(%arg0: i32) -> (i32, i32) {
    %c0_i32 = arith.constant 0 : i32
    %c0_i32_0 = arith.constant 0 : i32
    %c0_i32_1 = arith.constant 0 : i32
    return %c0_i32, %c0_i32_0 : i32, i32
  }
  func.func @transform_6(%arg0: i32) -> (i32, i32) {
    %c0_i32 = arith.constant 0 : i32
    %c0_i32_0 = arith.constant 0 : i32
    %c0_i32_1 = arith.constant 0 : i32
    return %c0_i32, %c0_i32_0 : i32, i32
  }
  func.func @transform_7(%arg0: i32) -> (i32, i32) {
    %c0_i32 = arith.constant 0 : i32
    %c0_i32_0 = arith.constant 0 : i32
    %c0_i32_1 = arith.constant 0 : i32
    return %c0_i32, %c0_i32_0 : i32, i32
  }
}

</mosaic_0001>

<bundles_post_ra>
// kernel: forward.2
= control target key start
LH: loop header
LB: loop body
LE: loop exit
PB: predicated region body
PF: predicated region fallthrough
CT: control target
= control target key end

     0   :  { %v101_v61 = vlaneseq  ;;  %s384_s0 = inlined_call_operand.vmem [shape: f32[16,768], index: 0, kind: input, shape index: {}]   ;;  %s385_s1 = inlined_call_operand.vmem [shape: f32[1,768], index: 1, kind: input, shape index: {}]   ;;  %s386_s2 = inlined_call_operand.vmem [shape: f32[1,768], index: 2, kind: input, shape index: {}]   ;;  %s387_s3 = inlined_call_operand.vmem [shape: bf16[16,768], index: 3, kind: output, shape index: {}]  }
   0x1   :  { %v14_v0 = vld [vmem:[%s384_s0] sm:$0xff]  ;;  %v15_v1 = vld [vmem:[%s384_s0 + $0x8] sm:$0xff]  ;;  %v16_v2 = vld [vmem:[%s384_s0 + $0x10] sm:$0xff] }
   0x2   :  { %v17_v3 = vld [vmem:[%s384_s0 + $0x18] sm:$0xff]  ;;  %v26_v4 = vadd.f32 %v15_v1, %v14_v0  ;;  %v20_v5 = vld [vmem:[%s384_s0 + $0x30] sm:$0xff]  ;;  %v22_v7 = vld [vmem:[%s384_s0 + $0x40] sm:$0xff] }
   0x3   :  { %v21_v6 = vld [vmem:[%s384_s0 + $0x38] sm:$0xff]  ;;  %v18_v10 = vld [vmem:[%s384_s0 + $0x20] sm:$0xff]  ;;  %v23_v11 = vld [vmem:[%s384_s0 + $0x48] sm:$0xff] }
   0x4   :  { %v27_v8 = vadd.f32 %v26_v4, %v16_v2  ;;  %v33_v9 = vadd.f32 %v21_v6, %v20_v5  ;;  %v19_v14 = vld [vmem:[%s384_s0 + $0x28] sm:$0xff]  ;;  %v24_v15 = vld [vmem:[%s384_s0 + $0x50] sm:$0xff]  ;;  %v25_v18 = vld [vmem:[%s384_s0 + $0x58] sm:$0xff] }
   0x6   :  { %v28_v12 = vadd.f32 %v27_v8, %v17_v3  ;;  %v34_v13 = vadd.f32 %v33_v9, %v22_v7 }
   0x8   :  { %v29_v16 = vadd.f32 %v28_v12, %v18_v10  ;;  %v35_v17 = vadd.f32 %v34_v13, %v23_v11 }
   0xa   :  { %v30_v19 = vadd.f32 %v29_v16, %v19_v14  ;;  %v36_v20 = vadd.f32 %v35_v17, %v24_v15 }
   0xc   :  { %31 = vadd.xlane.f32.xlu0 %v30_v19  ;;  %v37_v21 = vadd.f32 %v36_v20, %v25_v18 }
  0x10   :  { %38 = vadd.xlane.f32.xlu0 %v37_v21 }
  0x99   :  { %v32_v22 = vpop.xlane.xlu0 %31 }
  0x9a   :  { %v41_v23 = vmul.f32 0.0013020834, %v32_v22 }
  0x9c   :  { %v305_v24 = vsub.f32 %v14_v0, %v41_v23  ;;  %v307_v25 = vsub.f32 %v15_v1, %v41_v23  ;;  %v309_v26 = vsub.f32 %v16_v2, %v41_v23  ;;  %v311_v28 = vsub.f32 %v17_v3, %v41_v23 }
  0x9d   :  { %v39_v27 = vpop.xlane.xlu0 %38  ;;  %v317_v32 = vsub.f32 %v18_v10, %v41_v23  ;;  %v48_v38 = vsub.f32 %v19_v14, %v41_v23  ;;  %v102_v1 = vshrl.u32 %v101_v61, 7 }
  0x9e   :  { %v42_v29 = vmul.f32 0.0013020834, %v39_v27  ;;  %v55_v30 = vmul.f32 %v305_v24, %v305_v24  ;;  %v56_v31 = vmul.f32 %v307_v25, %v307_v25  ;;  %v57_v33 = vmul.f32 %v309_v26, %v309_v26 }
  0x9f   :  { %v58_v39 = vmul.f32 %v311_v28, %v311_v28  ;;  %v59_v44 = vmul.f32 %v317_v32, %v317_v32  ;;  %v60_v49 = vmul.f32 %v48_v38, %v48_v38  ;;  %v103_v4 = vsub.s32 0, %v102_v1 }
  0xa0   :  { %v67_v34 = vadd.f32 %v56_v31, %v55_v30  ;;  %v321_v35 = vsub.f32 %v20_v5, %v42_v29  ;;  %v323_v36 = vsub.f32 %v21_v6, %v42_v29  ;;  %v325_v37 = vsub.f32 %v22_v7, %v42_v29  ;;  %v99_v6 = vld [vmem:[%s385_s1] sm:$0x3f] }
  0xa1   :  { %v329_v41 = vsub.f32 %v23_v11, %v42_v29  ;;  %v337_v46 = vsub.f32 %v24_v15, %v42_v29  ;;  %v341_v51 = vsub.f32 %v25_v18, %v42_v29  ;;  %v107_v5 = vsub.s32 1, %v102_v1  ;;  %v143_v11 = vld [vmem:[%s386_s2] sm:$0x3f] }
  0xa2   :  { %v68_v40 = vadd.f32 %v67_v34, %v57_v33  ;;  %v61_v42 = vmul.f32 %v321_v35, %v321_v35  ;;  %v62_v43 = vmul.f32 %v323_v36, %v323_v36  ;;  %v63_v47 = vmul.f32 %v325_v37, %v325_v37 }
  0xa3   :  { %v64_v52 = vmul.f32 %v329_v41, %v329_v41  ;;  %v65_v55 = vmul.f32 %v337_v46, %v337_v46  ;;  %v66_v57 = vmul.f32 %v341_v51, %v341_v51  ;;  %v111_v7 = vsub.s32 2, %v102_v1 }
  0xa4   :  { %v69_v45 = vadd.f32 %v68_v40, %v58_v39  ;;  %v74_v48 = vadd.f32 %v62_v43, %v61_v42  ;;  %v115_v8 = vsub.s32 3, %v102_v1  ;;  %v119_v9 = vsub.s32 4, %v102_v1 }
  0xa5   :  { %v123_v10 = vsub.s32 5, %v102_v1  ;;  %v104_v12 = vrot.slane %v99_v6, %v103_v4  ;;  %v108_v13 = vrot.slane %v99_v6, %v107_v5  ;;  %v112_v14 = vrot.slane %v99_v6, %v111_v7 }
  0xa6   :  { %v70_v50 = vadd.f32 %v69_v45, %v59_v44  ;;  %v75_v53 = vadd.f32 %v74_v48, %v63_v47  ;;  %v116_v15 = vrot.slane %v99_v6, %v115_v8  ;;  %v120_v16 = vrot.slane %v99_v6, %v119_v9 }
  0xa7   :  { %v124_v17 = vrot.slane %v99_v6, %v123_v10  ;;  %v148_v19 = vrot.slane %v143_v11, %v103_v4  ;;  %v152_v20 = vrot.slane %v143_v11, %v107_v5  ;;  %v156_v21 = vrot.slane %v143_v11, %v111_v7 }
  0xa8   :  { %v71_v54 = vadd.f32 %v70_v50, %v60_v49  ;;  %v76_v56 = vadd.f32 %v75_v53, %v64_v52  ;;  %v160_v22 = vrot.slane %v143_v11, %v115_v8  ;;  %v164_v31 = vrot.slane %v143_v11, %v119_v9 }
  0xa9   :  { %v168_v33 = vrot.slane %v143_v11, %v123_v10 }
  0xaa   :  { %72 = vadd.xlane.f32.xlu1 %v71_v54  ;;  %v77_v58 = vadd.f32 %v76_v56, %v65_v55 }
  0xac   :  { %v78_v59 = vadd.f32 %v77_v58, %v66_v57 }
  0xae   :  { %79 = vadd.xlane.f32.xlu1 %v78_v59 }
 0x137   :  { %v73_v60 = vpop.xlane.xlu1 %72 }
 0x138   :  { %v81_v62 = vmul.f32 0.0013020834, %v73_v60 }
 0x13a   :  { %v83_v63 = vadd.f32 1e-12, %v81_v62 }
 0x13b   :  { %v80_v0 = vpop.xlane.xlu1 %79 }
 0x13c   :  { %245 = vrsqrt.f32 %v83_v63  ;;  %v82_v2 = vmul.f32 0.0013020834, %v80_v0 }
 0x13e   :  { %v84_v3 = vadd.f32 1e-12, %v82_v2 }
 0x140   :  { %247 = vrsqrt.f32 %v84_v3 }
 0x146   :  { %v246_v18 = vpop.eup %245 }
 0x147   :  { %v87_v23 = vmul.f32 %v246_v18, %v305_v24  ;;  %v88_v27 = vmul.f32 %v246_v18, %v307_v25  ;;  %v89_v29 = vmul.f32 %v246_v18, %v309_v26  ;;  %v90_v30 = vmul.f32 %v246_v18, %v311_v28 }
 0x148   :  { %v91_v34 = vmul.f32 %v246_v18, %v317_v32  ;;  %v92_v39 = vmul.f32 %v246_v18, %v48_v38 }
 0x149   :  { %v131_v40 = vmul.f32 %v104_v12, %v87_v23  ;;  %v132_v42 = vmul.f32 %v108_v13, %v88_v27  ;;  %v133_v43 = vmul.f32 %v112_v14, %v89_v29  ;;  %v134_v44 = vmul.f32 %v116_v15, %v90_v30 }
 0x14a   :  { %v248_v45 = vpop.eup %247  ;;  %v135_v47 = vmul.f32 %v120_v16, %v91_v34  ;;  %v136_v48 = vmul.f32 %v124_v17, %v92_v39 }
 0x14b   :  { %v175_v49 = vadd.f32 %v148_v19, %v131_v40  ;;  %v176_v24 = vadd.f32 %v152_v20, %v132_v42  ;;  %v177_v50 = vadd.f32 %v156_v21, %v133_v43  ;;  %v178_v25 = vadd.f32 %v160_v22, %v134_v44 }
 0x14c   :  { %v179_v52 = vadd.f32 %v164_v31, %v135_v47  ;;  %v180_v26 = vadd.f32 %v168_v33, %v136_v48  ;;  %v93_v28 = vmul.f32 %v248_v45, %v321_v35  ;;  %v94_v53 = vmul.f32 %v248_v45, %v323_v36 }
 0x14d   :  { %v239_v54 = vpack.c.bf16 %v176_v24, %v175_v49  ;;  %v240_v32 = vpack.c.bf16 %v178_v25, %v177_v50  ;;  %v95_v38 = vmul.f32 %v248_v45, %v325_v37  ;;  %v96_v55 = vmul.f32 %v248_v45, %v329_v41 }
 0x14e   :  { %v241_v56 = vpack.c.bf16 %v180_v26, %v179_v52  ;;  %v97_v57 = vmul.f32 %v248_v45, %v337_v46  ;;  %v98_v58 = vmul.f32 %v248_v45, %v341_v51  ;;  %v137_v59 = vmul.f32 %v104_v12, %v93_v28 }
 0x14f   :  { %223 = vst [vmem:[%s387_s3] sm:$0xff] %v239_v54  ;;  %224 = vst [vmem:[%s387_s3 + $0x8] sm:$0xff] %v240_v32  ;;  %v138_v35 = vmul.f32 %v108_v13, %v94_v53  ;;  %v139_v36 = vmul.f32 %v112_v14, %v95_v38  ;;  %v140_v60 = vmul.f32 %v116_v15, %v96_v55 }
 0x150   :  { %225 = vst [vmem:[%s387_s3 + $0x10] sm:$0xff] %v241_v56  ;;  %v141_v37 = vmul.f32 %v120_v16, %v97_v57  ;;  %v142_v41 = vmul.f32 %v124_v17, %v98_v58  ;;  %v181_v46 = vadd.f32 %v148_v19, %v137_v59 }
 0x151   :  { %v182_v51 = vadd.f32 %v152_v20, %v138_v35  ;;  %v183_v61 = vadd.f32 %v156_v21, %v139_v36  ;;  %v184_v62 = vadd.f32 %v160_v22, %v140_v60 }
 0x152   :  { %v185_v63 = vadd.f32 %v164_v31, %v141_v37  ;;  %v186_v0 = vadd.f32 %v168_v33, %v142_v41 }
 0x153   :  { %v242_v1 = vpack.c.bf16 %v182_v51, %v181_v46  ;;  %v243_v2 = vpack.c.bf16 %v184_v62, %v183_v61 }
 0x154   :  { %v244_v3 = vpack.c.bf16 %v186_v0, %v185_v63 }
 0x155   :  { %226 = vst [vmem:[%s387_s3 + $0x18] sm:$0xff] %v242_v1  ;;  %227 = vst [vmem:[%s387_s3 + $0x20] sm:$0xff] %v243_v2 }
 0x156   :  { %228 = vst [vmem:[%s387_s3 + $0x28] sm:$0xff] %v244_v3 }

// kernel: closed_call.16
= control target key start
LH: loop header
LB: loop body
LE: loop exit
PB: predicated region body
PF: predicated region fallthrough
CT: control target
= control target key end

     0   :  { %s1214_s12 = smov 0   ;;  %s1216_s13 = smov 0   ;;  %s1501_s0 = inlined_call_operand.vmem [shape: bf16[16,768], index: 0, kind: input, shape index: {}]   ;;  %s1502_s1 = inlined_call_operand.vmem [shape: bf16[768,2304], index: 1, kind: input, shape index: {}]   ;;  %s1503_s2 = inlined_call_operand.vmem [shape: f32[1,2304], index: 2, kind: input, shape index: {}]   ;;  %s1504_s3 = inlined_call_operand.vmem [shape: bf16[16,2304], index: 3, kind: output, shape index: {}]  }
   0x1   :  { %s1218_s14 = smov 0   ;;  %s1220_s15 = smov 0  }
   0x2   :  { %s1222_s16 = smov 0   ;;  %s1224_s17 = smov 0  }
   0x3   :  { %s1226_s18 = smov 0   ;;  %s1228_s19 = smov 0  }
   0x4   :  { %s1230_s20 = smov 0   ;;  %s1232_s21 = smov 0  }
   0x5   :  { %s1234_s22 = smov 0  }
   0x6 LB: > { %s900_s23 = sadd.s32 4294967295, %s1191_s22   ;;  %s25_s24 = sadd.s32 1, %s1183_s20  ;;  %s1191_s22 = sphi %s1234_s22, %s13_s22   ;;  %s1187_s21 = sphi %s1232_s21, %s1525_s21   ;;  %s1183_s20 = sphi %s1230_s20, %s1524_s20   ;;  %s1179_s19 = sphi %s1228_s19, %s1523_s19   ;;  %s1175_s18 = sphi %s1226_s18, %s1522_s18   ;;  %s1171_s17 = sphi %s1224_s17, %s1521_s17   ;;  %s1167_s16 = sphi %s1222_s16, %s1520_s16   ;;  %s1163_s15 = sphi %s1220_s15, %s1519_s15   ;;  %s1159_s14 = sphi %s1218_s14, %s1518_s14   ;;  %s1155_s13 = sphi %s1216_s13, %s1517_s13   ;;  %s1151_s12 = sphi %s1214_s12, %s1516_s12  }
   0x7   : > { %p26_p0 = scmp.ge.s32.totalorder %s25_s24, 3  ;;  %s28_s25 = sadd.s32 1, %s1187_s21 }
   0x8   : > { %s41_s26 = sadd.s32 1, %s1171_s17  ;;  %p48_p1 = scmp.ne.s32.totalorder %s1171_s17, %s1167_s16 }
   0x9   : > { %s1527_s24 = smov (%p26_p0, %s25_s24), 0  ;;  %s1529_s25 = smov (!%p26_p0, %s28_s25), %s1187_s21 }
   0xa   : > { %1507 = sst [smem:[#allocation6_spill]] %s1527_s24  ;;  %s37_s27 = ssub.s32 %s1183_s20, %s1527_s24 }
   0xb   : > { %p49_p2 = scmp.eq.s32.totalorder %s1191_s22, 0  ;;  %p30_p3 = scmp.ge.s32.totalorder %s1529_s25, 9 }
   0xc   : > { %p39_p4 = scmp.eq.s32.totalorder %s37_s27, 0  ;;  %s69_s29 = sadd.s32 1, %s1163_s15 }
   0xd   : > { %p1281_p5 = por %p49_p2, %p48_p1  ;;  %s1531_s25 = smov (%p30_p3, %s1529_s25), 0 }
   0xe   : > { %1509 = sst [smem:[#allocation7_spill]] %s1531_s25  ;;  %s65_s4 = ssub.s32 %s1187_s21, %s1531_s25 }
   0xf   : > { %s1289_s30 = scalar_select %p39_p4, %s1171_s17, %s41_s26  }
  0x10   : > { %p76_p6 = scmp.ne.s32.totalorder %s1163_s15, %s1159_s14  ;;  %s66_s5 = sor.u32 %s65_s4, %s37_s27 }
  0x11   : > { %1510 = sst [smem:[#allocation8_spill]] %s1289_s30  ;;  %p121_p7 = scmp.eq.s32.totalorder %s65_s4, 0 }
  0x12   : > { %p67_p8 = scmp.eq.s32.totalorder %s66_s5, 0  ;;  %p1295_p9 = por %p76_p6, %p49_p2 }
  0x13   : > { %s123_s7 = sadd.s32 1, %s1155_s13  ;;  %p133_p10 = scmp.ne.s32.totalorder %s1155_s13, %s1151_s12 }
  0x14   : > { %s1303_s8 = scalar_select %p67_p8, %s1163_s15, %s69_s29  }
  0x15   : > { %s1306_s9 = scalar_select %p121_p7, %s1155_s13, %s123_s7  }
  0x16   : > { %p134_p11 = scmp.eq.s32.totalorder %s900_s23, 26  ;;  %p903_p13 = scmp.ge.s32.totalorder %s1191_s22, 27 }
  0x18   : > { %p1308_p12 = por %p134_p11, %p133_p10  ;;  %156 = sbr.rel (%p903_p13) target bundleno = 62 (0x3e), region = 16 }
  0x1f   : > { %159 = sbr.rel (!%p1281_p5) target bundleno = 38 (0x26), region = 20  ;;  %s161_s11 = sand.u32 (%p1281_p5), 1, %s1171_s17  }
  0x20   : > { %s960_s26 = sshll.u32 (%p1281_p5), %s1183_s20, 3  ;;  %s904_s27 = sshll.u32 (%p1281_p5), %s161_s11, 4 }
  0x21   : > { %s169_s5 = scalar_lea.vmem (%p1281_p5), %s1501_s0, %s960_s26  ;;  %s163_s23 = scalar_lea.vmem (%p1281_p5), [#allocation3], %s904_s27 }
  0x22   : > { %v199_v0 = vld [vmem:[%s169_s5] sm:$0xff] (%p1281_p5)  ;;  %v201_v1 = vld [vmem:[%s169_s5 + $0x18] sm:$0xff] (%p1281_p5) }
  0x23   : > { %200 = vst [vmem:[%s163_s23] sm:$0xff] (%p1281_p5), %v199_v0  ;;  %202 = vst [vmem:[%s163_s23 + $0x8] sm:$0xff] (%p1281_p5), %v201_v1 }
  0x26 PF: > { %208 = sbr.rel (!%p1295_p9) target bundleno = 62 (0x3e), region = 58  ;;  %s210_s28 = sand.u32 (%p1295_p9), 1, %s1163_s15  }
  0x27   : > { %s909_s7 = sshll.u32 (%p1295_p9), %s1187_s21, 1  ;;  %s907_s25 = sshll.u32 (%p1295_p9), %s210_s28, 8 }
  0x28   : > { %s964_s11 = smul.u32 (%p1295_p9), 576, %s1183_s20  ;;  %s1333_s6 = scalar_lea.vmem (%p1295_p9), [#allocation4], %s907_s25 }
  0x2a   : > { %s216_s24 = sadd.s32 (%p1295_p9), %s964_s11, %s909_s7 }
  0x2b   : > { %s911_s30 = sshll.u32 (%p1295_p9), %s216_s24, 2 }
  0x2c   : > { %s1328_s4 = scalar_lea.vmem (%p1295_p9), %s1502_s1, %s911_s30 }
  0x2d   : > { %v308_v2 = vld [vmem:[%s1328_s4] sm:$0xff]  ;;  %v310_v3 = vld [vmem:[%s1328_s4 + $0x48] sm:$0xff]  ;;  %v312_v4 = vld [vmem:[%s1328_s4 + $0x90] sm:$0xff] }
  0x2e   : > { %309 = vst [vmem:[%s1333_s6] sm:$0xff] %v308_v2  ;;  %311 = vst [vmem:[%s1333_s6 + $0x8] sm:$0xff] %v310_v3  ;;  %v314_v5 = vld [vmem:[%s1328_s4 + $0xd8] sm:$0xff]  ;;  %v316_v6 = vld [vmem:[%s1328_s4 + $0x120] sm:$0xff] }
  0x2f   : > { %313 = vst [vmem:[%s1333_s6 + $0x10] sm:$0xff] %v312_v4  ;;  %v318_v7 = vld [vmem:[%s1328_s4 + $0x168] sm:$0xff]  ;;  %315 = vst [vmem:[%s1333_s6 + $0x18] sm:$0xff] %v314_v5  ;;  %v320_v8 = vld [vmem:[%s1328_s4 + $0x1b0] sm:$0xff] }
  0x30   : > { %317 = vst [vmem:[%s1333_s6 + $0x20] sm:$0xff] %v316_v6  ;;  %319 = vst [vmem:[%s1333_s6 + $0x28] sm:$0xff] %v318_v7  ;;  %v322_v9 = vld [vmem:[%s1328_s4 + $0x1f8] sm:$0xff]  ;;  %v324_v10 = vld [vmem:[%s1328_s4 + $0x240] sm:$0xff] }
  0x31   : > { %321 = vst [vmem:[%s1333_s6 + $0x30] sm:$0xff] %v320_v8  ;;  %323 = vst [vmem:[%s1333_s6 + $0x38] sm:$0xff] %v322_v9  ;;  %v326_v11 = vld [vmem:[%s1328_s4 + $0x288] sm:$0xff]  ;;  %v328_v12 = vld [vmem:[%s1328_s4 + $0x2d0] sm:$0xff] }
  0x32   : > { %325 = vst [vmem:[%s1333_s6 + $0x40] sm:$0xff] %v324_v10  ;;  %v330_v13 = vld [vmem:[%s1328_s4 + $0x318] sm:$0xff]  ;;  %327 = vst [vmem:[%s1333_s6 + $0x48] sm:$0xff] %v326_v11  ;;  %v332_v14 = vld [vmem:[%s1328_s4 + $0x360] sm:$0xff] }
  0x33   : > { %329 = vst [vmem:[%s1333_s6 + $0x50] sm:$0xff] %v328_v12  ;;  %331 = vst [vmem:[%s1333_s6 + $0x58] sm:$0xff] %v330_v13  ;;  %v334_v15 = vld [vmem:[%s1328_s4 + $0x3a8] sm:$0xff]  ;;  %v336_v16 = vld [vmem:[%s1328_s4 + $0x3f0] sm:$0xff] }
  0x34   : > { %333 = vst [vmem:[%s1333_s6 + $0x60] sm:$0xff] %v332_v14  ;;  %335 = vst [vmem:[%s1333_s6 + $0x68] sm:$0xff] %v334_v15  ;;  %v338_v17 = vld [vmem:[%s1328_s4 + $0x438] sm:$0xff]  ;;  %v340_v18 = vld [vmem:[%s1328_s4 + $0x480] sm:$0xff] }
  0x35   : > { %337 = vst [vmem:[%s1333_s6 + $0x70] sm:$0xff] %v336_v16  ;;  %v342_v19 = vld [vmem:[%s1328_s4 + $0x4c8] sm:$0xff]  ;;  %339 = vst [vmem:[%s1333_s6 + $0x78] sm:$0xff] %v338_v17  ;;  %v344_v20 = vld [vmem:[%s1328_s4 + $0x510] sm:$0xff] }
  0x36   : > { %341 = vst [vmem:[%s1333_s6 + $0x80] sm:$0xff] %v340_v18  ;;  %343 = vst [vmem:[%s1333_s6 + $0x88] sm:$0xff] %v342_v19  ;;  %v346_v21 = vld [vmem:[%s1328_s4 + $0x558] sm:$0xff]  ;;  %v348_v22 = vld [vmem:[%s1328_s4 + $0x5a0] sm:$0xff] }
  0x37   : > { %345 = vst [vmem:[%s1333_s6 + $0x90] sm:$0xff] %v344_v20  ;;  %347 = vst [vmem:[%s1333_s6 + $0x98] sm:$0xff] %v346_v21  ;;  %v350_v23 = vld [vmem:[%s1328_s4 + $0x5e8] sm:$0xff]  ;;  %v352_v24 = vld [vmem:[%s1328_s4 + $0x630] sm:$0xff] }
  0x38   : > { %349 = vst [vmem:[%s1333_s6 + $0xa0] sm:$0xff] %v348_v22  ;;  %v354_v25 = vld [vmem:[%s1328_s4 + $0x678] sm:$0xff]  ;;  %351 = vst [vmem:[%s1333_s6 + $0xa8] sm:$0xff] %v350_v23  ;;  %v356_v26 = vld [vmem:[%s1328_s4 + $0x6c0] sm:$0xff] }
  0x39   : > { %353 = vst [vmem:[%s1333_s6 + $0xb0] sm:$0xff] %v352_v24  ;;  %355 = vst [vmem:[%s1333_s6 + $0xb8] sm:$0xff] %v354_v25  ;;  %v358_v27 = vld [vmem:[%s1328_s4 + $0x708] sm:$0xff]  ;;  %v360_v28 = vld [vmem:[%s1328_s4 + $0x750] sm:$0xff] }
  0x3a   : > { %357 = vst [vmem:[%s1333_s6 + $0xc0] sm:$0xff] %v356_v26  ;;  %359 = vst [vmem:[%s1333_s6 + $0xc8] sm:$0xff] %v358_v27  ;;  %v362_v29 = vld [vmem:[%s1328_s4 + $0x798] sm:$0xff]  ;;  %v364_v30 = vld [vmem:[%s1328_s4 + $0x7e0] sm:$0xff] }
  0x3b   : > { %361 = vst [vmem:[%s1333_s6 + $0xd0] sm:$0xff] %v360_v28  ;;  %v366_v31 = vld [vmem:[%s1328_s4 + $0x828] sm:$0xff]  ;;  %363 = vst [vmem:[%s1333_s6 + $0xd8] sm:$0xff] %v362_v29  ;;  %v368_v32 = vld [vmem:[%s1328_s4 + $0x870] sm:$0xff] }
  0x3c   : > { %365 = vst [vmem:[%s1333_s6 + $0xe0] sm:$0xff] %v364_v30  ;;  %367 = vst [vmem:[%s1333_s6 + $0xe8] sm:$0xff] %v366_v31  ;;  %v370_v33 = vld [vmem:[%s1328_s4 + $0x8b8] sm:$0xff] }
  0x3d   : > { %369 = vst [vmem:[%s1333_s6 + $0xf0] sm:$0xff] %v368_v32  ;;  %371 = vst [vmem:[%s1333_s6 + $0xf8] sm:$0xff] %v370_v33 }
  0x3e PF: > { %p912_p0 = scmp.ge.s32.totalorder %s1191_s22, 1  ;;  %p384_p1 = scmp.lt.s32.totalorder %s1191_s22, 28 }
  0x40   : > { %p385_p2 = pnand %p912_p0, %p384_p1 }
  0x41   : > { %s391_s24 = sand.u32 (!%p385_p2), 1, %s1167_s16   ;;  %s398_s25 = sand.u32 (!%p385_p2), 1, %s1159_s14  }
  0x42   : > { %388 = sbr.rel (%p385_p2) target bundleno = 383 (0x17f), region = 100  ;;  %s1400_s30 = sshll.u32 (!%p385_p2), %s391_s24, 4 }
  0x43   : > { %s914_s27 = sshll.u32 (!%p385_p2), %s398_s25, 8  ;;  %s425_s5 = sand.u32 (!%p385_p2), 1, %s1151_s12  }
  0x44   : > { %s916_s23 = sshll.u32 (!%p385_p2), %s1179_s19, 1  ;;  %s915_s28 = sshll.u32 (!%p385_p2), %s425_s5, 4 }
  0x45   : > { %p433_p3 = scmp.lt.s32.totalorder (!%p385_p2), %s916_s23, 17  ;;  %s393_s26 = scalar_lea.vmem (!%p385_p2), [#allocation3], %s1400_s30 }
  0x46   : > { %s1411_s4 = scalar_lea.vmem (!%p385_p2), [#allocation4], %s914_s27  ;;  %s1413_s16 = scalar_lea.vmem (!%p385_p2), [#allocation5], %s915_s28 }
  0x47   : > { %p917_p4 = scmp.ne.s32.totalorder (!%p385_p2), %s1175_s18, 0 }
  0x49   : > { %s1533_s23 = smov (!%p433_p3, %s916_s23), 17  ;;  %442 = sbr.rel (%p917_p4) target bundleno = 80 (0x50), region = 112 }
  0x4a   : > { %s435_s29 = scalar_lea.vmem %s1503_s2, %s1533_s23  ;;  %v1193_v34 = vmov (!%p917_p4), 0.0  }
  0x4b   : > { %443 = vst [vmem:[#allocation2] sm:$0xff] (!%p917_p4), %v1193_v34  ;;  %444 = vst [vmem:[#allocation2 + $0x8] sm:$0xff] (!%p917_p4), %v1193_v34 }
  0x4c   : > { %445 = vst [vmem:[#allocation2 + $0x10] sm:$0xff] (!%p917_p4), %v1193_v34  ;;  %446 = vst [vmem:[#allocation2 + $0x18] sm:$0xff] (!%p917_p4), %v1193_v34 }
  0x50 PF: > { %v1054_v35 = vld [vmem:[%s1411_s4 + $0x4] ss:$8 sps:$4 sm:$0xff]   ;;  %v1056_v36 = vld [vmem:[%s1411_s4] ss:$8 sps:$4 sm:$0xff]   ;;  %v1057_v37 = vld [vmem:[%s1411_s4 + $0x14] ss:$8 sps:$4 sm:$0xff]  }
  0x51   : > { %655 = vmatprep.subr.bf16.mxu0 %v1054_v35  ;;  %v1059_v38 = vld [vmem:[%s1411_s4 + $0x10] ss:$8 sps:$4 sm:$0xff]   ;;  %v1060_v39 = vld [vmem:[%s1411_s4 + $0x24] ss:$8 sps:$4 sm:$0xff]   ;;  %v1062_v40 = vld [vmem:[%s1411_s4 + $0x20] ss:$8 sps:$4 sm:$0xff]  }
  0x52   : > { %656 = vmatpush1.bf16.msra.mxu0 %v1056_v36  ;;  %v1063_v41 = vld [vmem:[%s1411_s4 + $0x34] ss:$8 sps:$4 sm:$0xff]   ;;  %v1065_v42 = vld [vmem:[%s1411_s4 + $0x30] ss:$8 sps:$4 sm:$0xff]   ;;  %v1066_v43 = vld [vmem:[%s1411_s4 + $0x44] ss:$8 sps:$4 sm:$0xff]  }
  0x53   : > { %657 = vmatprep.subr.bf16.mxu0 %v1057_v37  ;;  %v1068_v44 = vld [vmem:[%s1411_s4 + $0x40] ss:$8 sps:$4 sm:$0xff]   ;;  %v1069_v45 = vld [vmem:[%s1411_s4 + $0x54] ss:$8 sps:$4 sm:$0xff]   ;;  %v1071_v46 = vld [vmem:[%s1411_s4 + $0x50] ss:$8 sps:$4 sm:$0xff]  }
  0x54   : > { %v1072_v47 = vld [vmem:[%s1411_s4 + $0x64] ss:$8 sps:$4 sm:$0xff]   ;;  %v1074_v49 = vld [vmem:[%s1411_s4 + $0x60] ss:$8 sps:$4 sm:$0xff]   ;;  %v1075_v50 = vld [vmem:[%s1411_s4 + $0x74] ss:$8 sps:$4 sm:$0xff]  }
  0x55   : > { %v1104_v48 = vld [vmem:[%s393_s26 + $0x4] ss:$8 sps:$4 sm:$0xff]   ;;  %v1077_v51 = vld [vmem:[%s1411_s4 + $0x70] ss:$8 sps:$4 sm:$0xff]   ;;  %v1080_v53 = vld [vmem:[%s1411_s4 + $0x80] ss:$8 sps:$4 sm:$0xff]  }
  0x56   : > { %658 = vmatpush1.bf16.msra.mxu0 %v1059_v38  ;;  %687 = vmatprep.mubr.bf16.mxu0 %v1104_v48  ;;  %v1078_v52 = vld [vmem:[%s1411_s4 + $0x84] ss:$8 sps:$4 sm:$0xff]   ;;  %v1081_v54 = vld [vmem:[%s1411_s4 + $0x94] ss:$8 sps:$4 sm:$0xff]   ;;  %v1083_v55 = vld [vmem:[%s1411_s4 + $0x90] ss:$8 sps:$4 sm:$0xff]  }
  0x57   : > { %659 = vmatprep.subr.bf16.mxu0 %v1060_v39  ;;  %v1084_v56 = vld [vmem:[%s1411_s4 + $0xa4] ss:$8 sps:$4 sm:$0xff]   ;;  %v1086_v57 = vld [vmem:[%s1411_s4 + $0xa0] ss:$8 sps:$4 sm:$0xff]   ;;  %v1087_v58 = vld [vmem:[%s1411_s4 + $0xb4] ss:$8 sps:$4 sm:$0xff]  }
  0x58   : > { %v1089_v59 = vld [vmem:[%s1411_s4 + $0xb0] ss:$8 sps:$4 sm:$0xff]   ;;  %v1090_v60 = vld [vmem:[%s1411_s4 + $0xc4] ss:$8 sps:$4 sm:$0xff]   ;;  %v1092_v61 = vld [vmem:[%s1411_s4 + $0xc0] ss:$8 sps:$4 sm:$0xff]  }
  0x59   : > { %v1093_v62 = vld [vmem:[%s1411_s4 + $0xd4] ss:$8 sps:$4 sm:$0xff]   ;;  %v1095_v63 = vld [vmem:[%s1411_s4 + $0xd0] ss:$8 sps:$4 sm:$0xff]   ;;  %v1096_v0 = vld [vmem:[%s1411_s4 + $0xe4] ss:$8 sps:$4 sm:$0xff]  }
  0x5a   : > { %660 = vmatpush1.bf16.msra.mxu0 %v1062_v40  ;;  %v1098_v1 = vld [vmem:[%s1411_s4 + $0xe0] ss:$8 sps:$4 sm:$0xff]   ;;  %v1099_v2 = vld [vmem:[%s1411_s4 + $0xf4] ss:$8 sps:$4 sm:$0xff]   ;;  %v1101_v3 = vld [vmem:[%s1411_s4 + $0xf0] ss:$8 sps:$4 sm:$0xff]  }
  0x5b   : > { %661 = vmatprep.subr.bf16.mxu0 %v1063_v41  ;;  %v1102_v4 = vld [vmem:[%s393_s26] ss:$8 sps:$4 sm:$0xff]   ;;  %p952_p5 = scmp.ne.s32.totalorder %s1175_s18, 2 }
  0x5c   : > { %v447_v5 = vld [vmem:[#allocation2] sm:$0xff]  ;;  %v448_v6 = vld [vmem:[#allocation2 + $0x8] sm:$0xff]  ;;  %v449_v8 = vld [vmem:[#allocation2 + $0x10] sm:$0xff]  ;;  %v716_v17 = vlaneseq (!%p952_p5) }
  0x5d   : > { %v450_v11 = vld [vmem:[#allocation2 + $0x18] sm:$0xff]  ;;  %v714_v19 = vld [vmem:[%s435_s29] sm:$0x3] (!%p952_p5) }
  0x5e   : > { %662 = vmatpush1.bf16.msra.mxu0 %v1065_v42  ;;  %v717_v18 = vshrl.u32 (!%p952_p5), %v716_v17, 7 }
  0x5f   : > { %663 = vmatprep.subr.bf16.mxu0 %v1066_v43 }
  0x60   : > { %v718_v21 = vsub.s32 (!%p952_p5), 0, %v717_v18  ;;  %v722_v22 = vsub.s32 (!%p952_p5), 1, %v717_v18 }
  0x62   : > { %664 = vmatpush1.bf16.msra.mxu0 %v1068_v44  ;;  %v719_v26 = vrot.slane (!%p952_p5), %v714_v19, %v718_v21  ;;  %v723_v27 = vrot.slane (!%p952_p5), %v714_v19, %v722_v22 }
  0x63   : > { %665 = vmatprep.subr.bf16.mxu0 %v1069_v45 }
  0x66   : > { %666 = vmatpush1.bf16.msra.mxu0 %v1071_v46 }
  0x67   : > { %667 = vmatprep.subr.bf16.mxu0 %v1072_v47 }
  0x6a   : > { %668 = vmatpush1.bf16.msra.mxu0 %v1074_v49 }
  0x6b   : > { %669 = vmatprep.subr.bf16.mxu0 %v1075_v50 }
  0x6e   : > { %670 = vmatpush1.bf16.msra.mxu0 %v1077_v51 }
  0x6f   : > { %671 = vmatprep.subr.bf16.mxu0 %v1078_v52 }
  0x72   : > { %672 = vmatpush1.bf16.msra.mxu0 %v1080_v53 }
  0x73   : > { %673 = vmatprep.subr.bf16.mxu0 %v1081_v54 }
  0x76   : > { %674 = vmatpush1.bf16.msra.mxu0 %v1083_v55 }
  0x77   : > { %675 = vmatprep.subr.bf16.mxu0 %v1084_v56 }
  0x7a   : > { %676 = vmatpush1.bf16.msra.mxu0 %v1086_v57 }
  0x7b   : > { %677 = vmatprep.subr.bf16.mxu0 %v1087_v58 }
  0x7e   : > { %678 = vmatpush1.bf16.msra.mxu0 %v1089_v59 }
  0x7f   : > { %679 = vmatprep.subr.bf16.mxu0 %v1090_v60 }
  0x82   : > { %680 = vmatpush1.bf16.msra.mxu0 %v1092_v61 }
  0x83   : > { %681 = vmatprep.subr.bf16.mxu0 %v1093_v62 }
  0x86   : > { %682 = vmatpush1.bf16.msra.mxu0 %v1095_v63 }
  0x87   : > { %683 = vmatprep.subr.bf16.mxu0 %v1096_v0 }
  0x8a   : > { %684 = vmatpush1.bf16.msra.mxu0 %v1098_v1 }
  0x8b   : > { %685 = vmatprep.subr.bf16.mxu0 %v1099_v2 }
  0x8e   : > { %686 = vmatpush1.bf16.msra.mxu0 %v1101_v3 }
  0x91   : > { %688 = vmatmul.mubr.bf16.vlgmr.msra.gmra.mrb[0].mxu0 %v1102_v4 }
 0x164   : > { %v689_v7 = vpop.f32.mrb[0].mxu0  ;;  %709 = sbr.rel (%p952_p5) target bundleno = 375 (0x177), region = 116 }
 0x165   : > { %v698_v9 = vadd.f32 %v689_v7, %v447_v5  ;;  %v691_v10 = vpop.f32.mrb[1].mxu0 }
 0x166   : > { %v699_v12 = vadd.f32 %v691_v10, %v448_v6  ;;  %v693_v13 = vpop.f32.mrb[2].mxu0 }
 0x167   : > { %702 = vst [vmem:[#allocation2] sm:$0xff] %v698_v9  ;;  %v700_v14 = vadd.f32 %v693_v13, %v449_v8  ;;  %v695_v15 = vpop.f32.mrb[3].mxu0 }
 0x168   : > { %703 = vst [vmem:[#allocation2 + $0x8] sm:$0xff] %v699_v12  ;;  %v701_v16 = vadd.f32 %v695_v15, %v450_v11 }
 0x169   : > { %704 = vst [vmem:[#allocation2 + $0x10] sm:$0xff] %v700_v14 }
 0x16a   : > { %705 = vst [vmem:[#allocation2 + $0x18] sm:$0xff] %v701_v16 }
 0x16e   : > { %v710_v20 = vld [vmem:[#allocation2] sm:$0xff] }
 0x16f   : > { %v711_v23 = vld [vmem:[#allocation2 + $0x8] sm:$0xff]  ;;  %v726_v28 = vadd.f32 %v719_v26, %v710_v20 }
 0x170   : > { %v712_v24 = vld [vmem:[#allocation2 + $0x10] sm:$0xff]  ;;  %v727_v29 = vadd.f32 %v723_v27, %v711_v23 }
 0x171   : > { %v713_v25 = vld [vmem:[#allocation2 + $0x18] sm:$0xff]  ;;  %v728_v30 = vadd.f32 %v719_v26, %v712_v24 }
 0x172   : > { %v729_v31 = vadd.f32 %v723_v27, %v713_v25  ;;  %v961_v32 = vpack.c.bf16 %v727_v29, %v726_v28 }
 0x174   : > { %v962_v33 = vpack.c.bf16 %v729_v31, %v728_v30  ;;  %742 = vst [vmem:[%s1413_s16] sm:$0xff] %v961_v32 }
 0x176   : > { %743 = vst [vmem:[%s1413_s16 + $0x8] sm:$0xff] %v962_v33 }
 0x177 PF: > { %750 = sbr.rel (!%p1308_p12) target bundleno = 383 (0x17f), region = 120  ;;  %s963_s18 = sshll.u32 (%p1308_p12), %s1179_s19, 3 }
 0x178   : > { %s756_s25 = scalar_lea.vmem (%p1308_p12), %s1504_s3, %s963_s18 }
 0x17b   : > { %v786_v34 = vld [vmem:[%s1413_s16] sm:$0xff] (%p1308_p12) }
 0x17c   : > { %787 = vst [vmem:[%s756_s25] sm:$0xff] (%p1308_p12), %v786_v34 }
 0x17d   : > { %v788_v35 = vld [vmem:[%s1413_s16 + $0x8] sm:$0xff] (%p1308_p12) }
 0x17e   : > { %789 = vst [vmem:[%s756_s25 + $0x48] sm:$0xff] %v788_v35 }
 0x17f PF: > { %s13_s22 = sadd.s32 1, %s1191_s22   ;;  %s1513_s10 = sld [smem:[#allocation8_spill]] }
 0x180   : > { %p10_p6 = scmp.ge.s32.totalorder %s13_s22, 29   ;;  %s1514_s30 = sld [smem:[#allocation6_spill]] }
 0x181   : > { %s1515_s27 = sld [smem:[#allocation7_spill]]  ;;  %s1516_s12 = smov %s1155_s13 }
 0x182   : > { %s1517_s13 = smov %s1306_s9  ;;  %s1518_s14 = smov %s1163_s15 }
 0x183   : > { %s1519_s15 = smov %s1303_s8  ;;  %s1520_s16 = smov %s1171_s17 }
 0x184   : > { %s1522_s18 = smov %s1183_s20  ;;  %s1523_s19 = smov %s1187_s21 }
 0x185   : > { %s1521_s17 = smov %s1513_s10  ;;  %12 = sbr.rel (!%p10_p6) target bundleno = 6 (0x6), region = 200 }
 0x186   : > { %s1524_s20 = smov %s1514_s30 }
 0x187   : > { %s1525_s21 = smov %s1515_s27 }

// kernel: closed_call.17
= control target key start
LH: loop header
LB: loop body
LE: loop exit
PB: predicated region body
PF: predicated region fallthrough
CT: control target
= control target key end

     0   :  { %s703_s15 = smov 0   ;;  %s705_s16 = smov 0   ;;  %s772_s0 = inlined_call_operand.vmem [shape: bf16[2,12,8,64], index: 0, kind: input, shape index: {}]   ;;  %s773_s1 = inlined_call_operand.vmem [shape: bf16[2,12,8,64], index: 1, kind: input, shape index: {}]   ;;  %s774_s2 = inlined_call_operand.vmem [shape: bf16[2,12,8,64], index: 2, kind: input, shape index: {}]   ;;  %s775_s3 = inlined_call_operand.vmem [shape: f32[2,1,8], index: 3, kind: input, shape index: {}]   ;;  %s776_s4 = inlined_call_operand.vmem [shape: bf16[2,12,8,64], index: 4, kind: output, shape index: {}]  }
   0x1   :  { %s707_s17 = smov 0   ;;  %s709_s18 = smov 0  }
   0x2   :  { %s711_s19 = smov 0  }
   0x3 LB: > { %s23_s20 = sadd.s32 1, %s666_s17  ;;  %s26_s21 = sadd.s32 1, %s670_s18  ;;  %s674_s19 = sphi %s711_s19, %s14_s19   ;;  %s670_s18 = sphi %s709_s18, %s780_s18   ;;  %s666_s17 = sphi %s707_s17, %s779_s17   ;;  %s662_s16 = sphi %s705_s16, %s778_s16   ;;  %s658_s15 = sphi %s703_s15, %s777_s15  }
   0x4   : > { %p24_p0 = scmp.ge.s32.totalorder %s23_s20, 12  ;;  %p563_p1 = scmp.ge.s32.totalorder %s674_s19, 1 }
   0x5   : > { %p219_p2 = scmp.lt.s32.totalorder %s674_s19, 25 }
   0x6   : > { %s782_s20 = smov (%p24_p0, %s23_s20), 0  ;;  %s784_s21 = smov (!%p24_p0, %s26_s21), %s670_s18 }
   0x7   : > { %p220_p3 = pnand %p563_p1, %p219_p2  ;;  %p28_p4 = scmp.ge.s32.totalorder %s784_s21, 2 }
   0x8   : > { %p270_p5 = scmp.lt.s32.totalorder (!%p220_p3), %s662_s16, 1  ;;  %p272_p6 = scmp.lt.s32.totalorder (!%p220_p3), %s658_s15, 11  ;;  %v676_v0 = vmov (!%p220_p3), 0.0   ;;  %vm677_vm0 = vmmov (!%p220_p3), 0   ;;  %vm309_vm1 = vcmask (!%p220_p3), 523264   ;;  %vm365_vm2 = vcmask (!%p220_p3), 64512  }
   0x9   : > { %s786_s21 = smov (%p28_p4, %s784_s21), 0  ;;  %223 = sbr.rel (%p220_p3) target bundleno = 778 (0x30a), region = 36 }
   0xa   : > { %577 = vmatprep.subr.bf16.mxu0 (!%p220_p3), %v676_v0  ;;  %579 = vmatprep.mubr.msk.bf16.mxu0 (!%p220_p3), %vm677_vm0, %v676_v0  ;;  %vm381_vm3 = vcmask (!%p220_p3), 1043456   ;;  %vm426_vm4 = vcmask (!%p220_p3), 519168  }
   0xb   : > { %583 = vmatprep.subr.bf16.mxu1 (!%p220_p3), %v676_v0  ;;  %585 = vmatprep.mubr.msk.bf16.mxu1 (!%p220_p3), %vm677_vm0, %v676_v0 }
  0x10   : > { %s788_s16 = smov (!%p270_p5, %s662_s16), 1  ;;  %s790_s15 = smov (!%p272_p6, %s658_s15), 11 }
  0x11   : > { %s589_s22 = smul.u32 12, %s788_s16  ;;  %s296_s7 = scalar_lea.vmem %s775_s3, %s788_s16 }
  0x12   : > { %v569_v5 = vld [vmem:[%s296_s7] ss:$0 sm:$0xff] }
  0x13   : > { %s275_s23 = sadd.s32 %s589_s22, %s790_s15 }
  0x14   : > { %s733_s24 = sshll.u32 %s275_s23, 2 }
  0x15   : > { %s285_s27 = scalar_lea.vmem %s773_s1, %s733_s24  ;;  %s277_s30 = scalar_lea.vmem %s772_s0, %s733_s24 }
  0x16   : > { %v307_v1 = vld [vmem:[%s285_s27] sm:$0xf]  ;;  %s293_s10 = scalar_lea.vmem %s774_s2, %s733_s24  ;;  %s304_s13 = scalar_lea.vmem %s776_s4, %s733_s24 }
  0x17   : > { %v314_v2 = vsel %vm309_vm1, %v307_v1, 0  ;;  %v306_v3 = vld [vmem:[%s277_s30] sm:$0xf] }
  0x18   : > { %578 = vmatpush3.bf16.xpose.msra.mxu0 %v314_v2  ;;  %v308_v17 = vld [vmem:[%s293_s10] sm:$0xf] }
  0x19   : > { %v383_v18 = vsel %vm381_vm3, %v308_v17, 0 }
  0x1a   : > { %584 = vmatpush3.bf16.msra.mxu1 %v383_v18 }
  0x1f   : > { %580 = vmatmul.mubr.msk.bf16.vlgmr.msra.gmra.mrb[0].mxu0 %vm309_vm1, %v306_v3 }
  0xf2   : > { %v350_v4 = vpop.f32.mrb[0].mxu0 }
  0xf3   : > { %v356_v6 = vmul.f32 0.125, %v350_v4  ;;  %v581_v7 = vpop.f32.mrb[1].mxu0 }
  0xf4   : > { %v353_v8 = vpop.f32.mrb[2].mxu0 }
  0xf5   : > { %v582_v9 = vpop.f32.mrb[3].mxu0  ;;  %v364_v10 = vadd.f32 %v569_v5, %v356_v6 }
  0xf7   : > { %v366_v11 = vsel %vm365_vm2, %v364_v10, -inf }
  0xf8   : > { %367 = vmax.xlane.f32.xlu0 %v366_v11 }
 0x185   : > { %v368_v12 = vpop.xlane.xlu0 %367 }
 0x186   : > { %v369_v13 = vsub.f32 %v364_v10, %v368_v12 }
 0x188   : > { %v370_v14 = vmul.f32 1.442695, %v369_v13 }
 0x18a   : > { %632 = vpow2.f32 %v370_v14 }
 0x194   : > { %v633_v15 = vpop.eup %632 }
 0x195   : > { %v372_v16 = vsel %vm365_vm2, %v633_v15, 0.0 }
 0x196   : > { %373 = vadd.xlane.f32.xlu0 %v372_v16 }
 0x223   : > { %v374_v19 = vpop.xlane.xlu0 %373 }
 0x224   : > { %634 = vrcp.f32 %v374_v19 }
 0x22e   : > { %v635_v20 = vpop.eup %634 }
 0x22f   : > { %v376_v21 = vmul.f32 %v635_v20, %v633_v15 }
 0x231   : > { %v377_v22 = vpack.c.bf16 %v376_v21, %v376_v21 }
 0x233   : > { %586 = vmatmul.mubr.msk.bf16.vlgmr.msra.gmra.mrb[0].mxu1 %vm365_vm2, %v377_v22 }
 0x306   : > { %v419_v23 = vpop.f32.mrb[0].mxu1 }
 0x307   : > { %v425_v24 = vpack.c.bf16 %v419_v23, %v419_v23  ;;  %v587_v25 = vpop.f32.mrb[1].mxu1 }
 0x308   : > { %v422_v26 = vpop.f32.mrb[2].mxu1 }
 0x309   : > { %427 = vst.msk [vmem:[%s304_s13] sm:$0xf] %vm426_vm4, %v425_v24  ;;  %v588_v27 = vpop.f32.mrb[3].mxu1 }
 0x30a PF: > { %s14_s19 = sadd.s32 1, %s674_s19   ;;  %s777_s15 = smov %s666_s17 }
 0x30b   : > { %p11_p7 = scmp.ge.s32.totalorder %s14_s19, 26   ;;  %s778_s16 = smov %s670_s18 }
 0x30c   : > { %s779_s17 = smov %s782_s20  ;;  %s780_s18 = smov %s786_s21 }
 0x30d   :  { %13 = sbr.rel (!%p11_p7) target bundleno = 3 (0x3), region = 75 }

// kernel: closed_call.19
= control target key start
LH: loop header
LB: loop body
LE: loop exit
PB: predicated region body
PF: predicated region fallthrough
CT: control target
= control target key end

     0   :  { %s1611_s12 = smov 0   ;;  %s1613_s13 = smov 0   ;;  %s1998_s0 = inlined_call_operand.vmem [shape: bf16[16,768], index: 0, kind: input, shape index: {}]   ;;  %s1999_s1 = inlined_call_operand.vmem [shape: bf16[768,3072], index: 1, kind: input, shape index: {}]   ;;  %s2000_s2 = inlined_call_operand.vmem [shape: f32[1,3072], index: 2, kind: input, shape index: {}]   ;;  %s2001_s3 = inlined_call_operand.vmem [shape: bf16[16,3072], index: 3, kind: output, shape index: {}]  }
   0x1   :  { %s1615_s14 = smov 0   ;;  %s1617_s15 = smov 0  }
   0x2   :  { %s1619_s16 = smov 0   ;;  %s1621_s17 = smov 0  }
   0x3   :  { %s1623_s18 = smov 0   ;;  %s1625_s19 = smov 0  }
   0x4   :  { %s1627_s20 = smov 0   ;;  %s1629_s21 = smov 0  }
   0x5   :  { %s1631_s22 = smov 0  }
   0x6 LB: > { %s1197_s23 = sadd.s32 4294967295, %s1588_s22   ;;  %s25_s24 = sadd.s32 1, %s1580_s20  ;;  %s1588_s22 = sphi %s1631_s22, %s13_s22   ;;  %s1584_s21 = sphi %s1629_s21, %s2022_s21   ;;  %s1580_s20 = sphi %s1627_s20, %s2021_s20   ;;  %s1576_s19 = sphi %s1625_s19, %s2020_s19   ;;  %s1572_s18 = sphi %s1623_s18, %s2019_s18   ;;  %s1568_s17 = sphi %s1621_s17, %s2018_s17   ;;  %s1564_s16 = sphi %s1619_s16, %s2017_s16   ;;  %s1560_s15 = sphi %s1617_s15, %s2016_s15   ;;  %s1556_s14 = sphi %s1615_s14, %s2015_s14   ;;  %s1552_s13 = sphi %s1613_s13, %s2014_s13   ;;  %s1548_s12 = sphi %s1611_s12, %s2013_s12  }
   0x7   : > { %p26_p0 = scmp.ge.s32.totalorder %s25_s24, 3  ;;  %s28_s25 = sadd.s32 1, %s1584_s21 }
   0x8   : > { %s41_s26 = sadd.s32 1, %s1568_s17  ;;  %p48_p1 = scmp.ne.s32.totalorder %s1568_s17, %s1564_s16 }
   0x9   : > { %s2024_s24 = smov (%p26_p0, %s25_s24), 0  ;;  %s2026_s25 = smov (!%p26_p0, %s28_s25), %s1584_s21 }
   0xa   : > { %2004 = sst [smem:[#allocation6_spill]] %s2024_s24  ;;  %s37_s27 = ssub.s32 %s1580_s20, %s2024_s24 }
   0xb   : > { %p49_p2 = scmp.eq.s32.totalorder %s1588_s22, 0  ;;  %p30_p3 = scmp.ge.s32.totalorder %s2026_s25, 6 }
   0xc   : > { %p39_p4 = scmp.eq.s32.totalorder %s37_s27, 0  ;;  %s69_s29 = sadd.s32 1, %s1560_s15 }
   0xd   : > { %p1678_p5 = por %p49_p2, %p48_p1  ;;  %s2028_s25 = smov (%p30_p3, %s2026_s25), 0 }
   0xe   : > { %2006 = sst [smem:[#allocation7_spill]] %s2028_s25  ;;  %s65_s4 = ssub.s32 %s1584_s21, %s2028_s25 }
   0xf   : > { %s1686_s30 = scalar_select %p39_p4, %s1568_s17, %s41_s26  }
  0x10   : > { %p76_p6 = scmp.ne.s32.totalorder %s1560_s15, %s1556_s14  ;;  %s66_s5 = sor.u32 %s65_s4, %s37_s27 }
  0x11   : > { %2007 = sst [smem:[#allocation8_spill]] %s1686_s30  ;;  %p121_p7 = scmp.eq.s32.totalorder %s65_s4, 0 }
  0x12   : > { %p67_p8 = scmp.eq.s32.totalorder %s66_s5, 0  ;;  %p1692_p9 = por %p76_p6, %p49_p2 }
  0x13   : > { %s123_s7 = sadd.s32 1, %s1552_s13  ;;  %p133_p10 = scmp.ne.s32.totalorder %s1552_s13, %s1548_s12 }
  0x14   : > { %s1700_s8 = scalar_select %p67_p8, %s1560_s15, %s69_s29  }
  0x15   : > { %s1703_s9 = scalar_select %p121_p7, %s1552_s13, %s123_s7  }
  0x16   : > { %p134_p11 = scmp.eq.s32.totalorder %s1197_s23, 17  ;;  %p1200_p13 = scmp.ge.s32.totalorder %s1588_s22, 18 }
  0x18   : > { %p1705_p12 = por %p134_p11, %p133_p10  ;;  %156 = sbr.rel (%p1200_p13) target bundleno = 78 (0x4e), region = 16 }
  0x1f   : > { %159 = sbr.rel (!%p1678_p5) target bundleno = 38 (0x26), region = 20  ;;  %s161_s11 = sand.u32 (%p1678_p5), 1, %s1568_s17  }
  0x20   : > { %s1291_s26 = sshll.u32 (%p1678_p5), %s1580_s20, 3  ;;  %s1201_s27 = sshll.u32 (%p1678_p5), %s161_s11, 4 }
  0x21   : > { %s169_s5 = scalar_lea.vmem (%p1678_p5), %s1998_s0, %s1291_s26  ;;  %s163_s23 = scalar_lea.vmem (%p1678_p5), [#allocation3], %s1201_s27 }
  0x22   : > { %v199_v0 = vld [vmem:[%s169_s5] sm:$0xff] (%p1678_p5)  ;;  %v201_v1 = vld [vmem:[%s169_s5 + $0x18] sm:$0xff] (%p1678_p5) }
  0x23   : > { %200 = vst [vmem:[%s163_s23] sm:$0xff] (%p1678_p5), %v199_v0  ;;  %202 = vst [vmem:[%s163_s23 + $0x8] sm:$0xff] (%p1678_p5), %v201_v1 }
  0x26 PF: > { %208 = sbr.rel (!%p1692_p9) target bundleno = 78 (0x4e), region = 58  ;;  %s210_s28 = sand.u32 (%p1692_p9), 1, %s1560_s15  }
  0x27   : > { %s1206_s7 = sshll.u32 (%p1692_p9), %s1584_s21, 2  ;;  %s1204_s25 = sshll.u32 (%p1692_p9), %s210_s28, 9 }
  0x28   : > { %s1297_s11 = smul.u32 (%p1692_p9), 768, %s1580_s20  ;;  %s1730_s6 = scalar_lea.vmem (%p1692_p9), [#allocation4], %s1204_s25 }
  0x2a   : > { %s216_s24 = sadd.s32 (%p1692_p9), %s1297_s11, %s1206_s7 }
  0x2b   : > { %s1208_s30 = sshll.u32 (%p1692_p9), %s216_s24, 2 }
  0x2c   : > { %s1725_s4 = scalar_lea.vmem (%p1692_p9), %s1999_s1, %s1208_s30 }
  0x2d   : > { %v231_v2 = vld [vmem:[%s1725_s4] sm:$0xff]  ;;  %v233_v3 = vld [vmem:[%s1725_s4 + $0x8] sm:$0xff] }
  0x2e   : > { %v235_v4 = vld [vmem:[%s1725_s4 + $0x60] sm:$0xff]  ;;  %232 = vst [vmem:[%s1730_s6] sm:$0xff] %v231_v2  ;;  %234 = vst [vmem:[%s1730_s6 + $0x8] sm:$0xff] %v233_v3  ;;  %v237_v5 = vld [vmem:[%s1725_s4 + $0x68] sm:$0xff] }
  0x2f   : > { %236 = vst [vmem:[%s1730_s6 + $0x10] sm:$0xff] %v235_v4  ;;  %v239_v6 = vld [vmem:[%s1725_s4 + $0xc0] sm:$0xff]  ;;  %v241_v7 = vld [vmem:[%s1725_s4 + $0xc8] sm:$0xff]  ;;  %238 = vst [vmem:[%s1730_s6 + $0x18] sm:$0xff] %v237_v5 }
  0x30   : > { %240 = vst [vmem:[%s1730_s6 + $0x20] sm:$0xff] %v239_v6  ;;  %242 = vst [vmem:[%s1730_s6 + $0x28] sm:$0xff] %v241_v7  ;;  %v243_v8 = vld [vmem:[%s1725_s4 + $0x120] sm:$0xff]  ;;  %v245_v9 = vld [vmem:[%s1725_s4 + $0x128] sm:$0xff] }
  0x31   : > { %v247_v10 = vld [vmem:[%s1725_s4 + $0x180] sm:$0xff]  ;;  %244 = vst [vmem:[%s1730_s6 + $0x30] sm:$0xff] %v243_v8  ;;  %246 = vst [vmem:[%s1730_s6 + $0x38] sm:$0xff] %v245_v9  ;;  %v249_v11 = vld [vmem:[%s1725_s4 + $0x188] sm:$0xff] }
  0x32   : > { %248 = vst [vmem:[%s1730_s6 + $0x40] sm:$0xff] %v247_v10  ;;  %v251_v12 = vld [vmem:[%s1725_s4 + $0x1e0] sm:$0xff]  ;;  %v253_v13 = vld [vmem:[%s1725_s4 + $0x1e8] sm:$0xff]  ;;  %250 = vst [vmem:[%s1730_s6 + $0x48] sm:$0xff] %v249_v11 }
  0x33   : > { %252 = vst [vmem:[%s1730_s6 + $0x50] sm:$0xff] %v251_v12  ;;  %254 = vst [vmem:[%s1730_s6 + $0x58] sm:$0xff] %v253_v13  ;;  %v255_v14 = vld [vmem:[%s1725_s4 + $0x240] sm:$0xff]  ;;  %v257_v15 = vld [vmem:[%s1725_s4 + $0x248] sm:$0xff] }
  0x34   : > { %v259_v16 = vld [vmem:[%s1725_s4 + $0x2a0] sm:$0xff]  ;;  %256 = vst [vmem:[%s1730_s6 + $0x60] sm:$0xff] %v255_v14  ;;  %258 = vst [vmem:[%s1730_s6 + $0x68] sm:$0xff] %v257_v15  ;;  %v261_v17 = vld [vmem:[%s1725_s4 + $0x2a8] sm:$0xff] }
  0x35   : > { %260 = vst [vmem:[%s1730_s6 + $0x70] sm:$0xff] %v259_v16  ;;  %v263_v18 = vld [vmem:[%s1725_s4 + $0x300] sm:$0xff]  ;;  %v265_v19 = vld [vmem:[%s1725_s4 + $0x308] sm:$0xff]  ;;  %262 = vst [vmem:[%s1730_s6 + $0x78] sm:$0xff] %v261_v17 }
  0x36   : > { %264 = vst [vmem:[%s1730_s6 + $0x80] sm:$0xff] %v263_v18  ;;  %266 = vst [vmem:[%s1730_s6 + $0x88] sm:$0xff] %v265_v19  ;;  %v267_v20 = vld [vmem:[%s1725_s4 + $0x360] sm:$0xff]  ;;  %v269_v21 = vld [vmem:[%s1725_s4 + $0x368] sm:$0xff] }
  0x37   : > { %v271_v22 = vld [vmem:[%s1725_s4 + $0x3c0] sm:$0xff]  ;;  %268 = vst [vmem:[%s1730_s6 + $0x90] sm:$0xff] %v267_v20  ;;  %270 = vst [vmem:[%s1730_s6 + $0x98] sm:$0xff] %v269_v21  ;;  %v273_v23 = vld [vmem:[%s1725_s4 + $0x3c8] sm:$0xff] }
  0x38   : > { %272 = vst [vmem:[%s1730_s6 + $0xa0] sm:$0xff] %v271_v22  ;;  %v275_v24 = vld [vmem:[%s1725_s4 + $0x420] sm:$0xff]  ;;  %v277_v25 = vld [vmem:[%s1725_s4 + $0x428] sm:$0xff]  ;;  %274 = vst [vmem:[%s1730_s6 + $0xa8] sm:$0xff] %v273_v23 }
  0x39   : > { %276 = vst [vmem:[%s1730_s6 + $0xb0] sm:$0xff] %v275_v24  ;;  %278 = vst [vmem:[%s1730_s6 + $0xb8] sm:$0xff] %v277_v25  ;;  %v279_v26 = vld [vmem:[%s1725_s4 + $0x480] sm:$0xff]  ;;  %v281_v27 = vld [vmem:[%s1725_s4 + $0x488] sm:$0xff] }
  0x3a   : > { %v283_v28 = vld [vmem:[%s1725_s4 + $0x4e0] sm:$0xff]  ;;  %280 = vst [vmem:[%s1730_s6 + $0xc0] sm:$0xff] %v279_v26  ;;  %282 = vst [vmem:[%s1730_s6 + $0xc8] sm:$0xff] %v281_v27  ;;  %v285_v29 = vld [vmem:[%s1725_s4 + $0x4e8] sm:$0xff] }
  0x3b   : > { %284 = vst [vmem:[%s1730_s6 + $0xd0] sm:$0xff] %v283_v28  ;;  %v287_v30 = vld [vmem:[%s1725_s4 + $0x540] sm:$0xff]  ;;  %v289_v31 = vld [vmem:[%s1725_s4 + $0x548] sm:$0xff]  ;;  %286 = vst [vmem:[%s1730_s6 + $0xd8] sm:$0xff] %v285_v29 }
  0x3c   : > { %288 = vst [vmem:[%s1730_s6 + $0xe0] sm:$0xff] %v287_v30  ;;  %290 = vst [vmem:[%s1730_s6 + $0xe8] sm:$0xff] %v289_v31  ;;  %v291_v32 = vld [vmem:[%s1725_s4 + $0x5a0] sm:$0xff]  ;;  %v293_v33 = vld [vmem:[%s1725_s4 + $0x5a8] sm:$0xff] }
  0x3d   : > { %v295_v34 = vld [vmem:[%s1725_s4 + $0x600] sm:$0xff]  ;;  %292 = vst [vmem:[%s1730_s6 + $0xf0] sm:$0xff] %v291_v32  ;;  %294 = vst [vmem:[%s1730_s6 + $0xf8] sm:$0xff] %v293_v33  ;;  %v297_v35 = vld [vmem:[%s1725_s4 + $0x608] sm:$0xff] }
  0x3e   : > { %296 = vst [vmem:[%s1730_s6 + $0x100] sm:$0xff] %v295_v34  ;;  %v299_v36 = vld [vmem:[%s1725_s4 + $0x660] sm:$0xff]  ;;  %v301_v37 = vld [vmem:[%s1725_s4 + $0x668] sm:$0xff]  ;;  %298 = vst [vmem:[%s1730_s6 + $0x108] sm:$0xff] %v297_v35 }
  0x3f   : > { %300 = vst [vmem:[%s1730_s6 + $0x110] sm:$0xff] %v299_v36  ;;  %302 = vst [vmem:[%s1730_s6 + $0x118] sm:$0xff] %v301_v37  ;;  %v303_v38 = vld [vmem:[%s1725_s4 + $0x6c0] sm:$0xff]  ;;  %v305_v39 = vld [vmem:[%s1725_s4 + $0x6c8] sm:$0xff] }
  0x40   : > { %v307_v40 = vld [vmem:[%s1725_s4 + $0x720] sm:$0xff]  ;;  %304 = vst [vmem:[%s1730_s6 + $0x120] sm:$0xff] %v303_v38  ;;  %306 = vst [vmem:[%s1730_s6 + $0x128] sm:$0xff] %v305_v39  ;;  %v309_v41 = vld [vmem:[%s1725_s4 + $0x728] sm:$0xff] }
  0x41   : > { %308 = vst [vmem:[%s1730_s6 + $0x130] sm:$0xff] %v307_v40  ;;  %v311_v42 = vld [vmem:[%s1725_s4 + $0x780] sm:$0xff]  ;;  %v313_v43 = vld [vmem:[%s1725_s4 + $0x788] sm:$0xff]  ;;  %310 = vst [vmem:[%s1730_s6 + $0x138] sm:$0xff] %v309_v41 }
  0x42   : > { %312 = vst [vmem:[%s1730_s6 + $0x140] sm:$0xff] %v311_v42  ;;  %314 = vst [vmem:[%s1730_s6 + $0x148] sm:$0xff] %v313_v43  ;;  %v315_v44 = vld [vmem:[%s1725_s4 + $0x7e0] sm:$0xff]  ;;  %v317_v45 = vld [vmem:[%s1725_s4 + $0x7e8] sm:$0xff] }
  0x43   : > { %v319_v46 = vld [vmem:[%s1725_s4 + $0x840] sm:$0xff]  ;;  %316 = vst [vmem:[%s1730_s6 + $0x150] sm:$0xff] %v315_v44  ;;  %318 = vst [vmem:[%s1730_s6 + $0x158] sm:$0xff] %v317_v45  ;;  %v321_v47 = vld [vmem:[%s1725_s4 + $0x848] sm:$0xff] }
  0x44   : > { %320 = vst [vmem:[%s1730_s6 + $0x160] sm:$0xff] %v319_v46  ;;  %v323_v48 = vld [vmem:[%s1725_s4 + $0x8a0] sm:$0xff]  ;;  %v325_v49 = vld [vmem:[%s1725_s4 + $0x8a8] sm:$0xff]  ;;  %322 = vst [vmem:[%s1730_s6 + $0x168] sm:$0xff] %v321_v47 }
  0x45   : > { %324 = vst [vmem:[%s1730_s6 + $0x170] sm:$0xff] %v323_v48  ;;  %326 = vst [vmem:[%s1730_s6 + $0x178] sm:$0xff] %v325_v49  ;;  %v327_v50 = vld [vmem:[%s1725_s4 + $0x900] sm:$0xff]  ;;  %v329_v51 = vld [vmem:[%s1725_s4 + $0x908] sm:$0xff] }
  0x46   : > { %v331_v52 = vld [vmem:[%s1725_s4 + $0x960] sm:$0xff]  ;;  %328 = vst [vmem:[%s1730_s6 + $0x180] sm:$0xff] %v327_v50  ;;  %330 = vst [vmem:[%s1730_s6 + $0x188] sm:$0xff] %v329_v51  ;;  %v333_v53 = vld [vmem:[%s1725_s4 + $0x968] sm:$0xff] }
  0x47   : > { %332 = vst [vmem:[%s1730_s6 + $0x190] sm:$0xff] %v331_v52  ;;  %v335_v54 = vld [vmem:[%s1725_s4 + $0x9c0] sm:$0xff]  ;;  %v337_v55 = vld [vmem:[%s1725_s4 + $0x9c8] sm:$0xff]  ;;  %334 = vst [vmem:[%s1730_s6 + $0x198] sm:$0xff] %v333_v53 }
  0x48   : > { %336 = vst [vmem:[%s1730_s6 + $0x1a0] sm:$0xff] %v335_v54  ;;  %338 = vst [vmem:[%s1730_s6 + $0x1a8] sm:$0xff] %v337_v55  ;;  %v339_v56 = vld [vmem:[%s1725_s4 + $0xa20] sm:$0xff]  ;;  %v341_v57 = vld [vmem:[%s1725_s4 + $0xa28] sm:$0xff] }
  0x49   : > { %v343_v58 = vld [vmem:[%s1725_s4 + $0xa80] sm:$0xff]  ;;  %340 = vst [vmem:[%s1730_s6 + $0x1b0] sm:$0xff] %v339_v56  ;;  %342 = vst [vmem:[%s1730_s6 + $0x1b8] sm:$0xff] %v341_v57  ;;  %v345_v59 = vld [vmem:[%s1725_s4 + $0xa88] sm:$0xff] }
  0x4a   : > { %344 = vst [vmem:[%s1730_s6 + $0x1c0] sm:$0xff] %v343_v58  ;;  %v347_v60 = vld [vmem:[%s1725_s4 + $0xae0] sm:$0xff]  ;;  %v349_v61 = vld [vmem:[%s1725_s4 + $0xae8] sm:$0xff]  ;;  %346 = vst [vmem:[%s1730_s6 + $0x1c8] sm:$0xff] %v345_v59 }
  0x4b   : > { %348 = vst [vmem:[%s1730_s6 + $0x1d0] sm:$0xff] %v347_v60  ;;  %350 = vst [vmem:[%s1730_s6 + $0x1d8] sm:$0xff] %v349_v61  ;;  %v351_v62 = vld [vmem:[%s1725_s4 + $0xb40] sm:$0xff]  ;;  %v353_v63 = vld [vmem:[%s1725_s4 + $0xb48] sm:$0xff] }
  0x4c   : > { %v355_v0 = vld [vmem:[%s1725_s4 + $0xba0] sm:$0xff]  ;;  %352 = vst [vmem:[%s1730_s6 + $0x1e0] sm:$0xff] %v351_v62  ;;  %354 = vst [vmem:[%s1730_s6 + $0x1e8] sm:$0xff] %v353_v63  ;;  %v357_v1 = vld [vmem:[%s1725_s4 + $0xba8] sm:$0xff] }
  0x4d   : > { %356 = vst [vmem:[%s1730_s6 + $0x1f0] sm:$0xff] %v355_v0  ;;  %358 = vst [vmem:[%s1730_s6 + $0x1f8] sm:$0xff] %v357_v1 }
  0x4e PF: > { %p1209_p0 = scmp.ge.s32.totalorder %s1588_s22, 1  ;;  %p371_p1 = scmp.lt.s32.totalorder %s1588_s22, 19 }
  0x50   : > { %p372_p2 = pnand %p1209_p0, %p371_p1 }
  0x51   : > { %s378_s24 = sand.u32 (!%p372_p2), 1, %s1564_s16   ;;  %s385_s25 = sand.u32 (!%p372_p2), 1, %s1556_s14  }
  0x52   : > { %375 = sbr.rel (%p372_p2) target bundleno = 420 (0x1a4), region = 85  ;;  %s1861_s30 = sshll.u32 (!%p372_p2), %s378_s24, 4 }
  0x53   : > { %s1211_s27 = sshll.u32 (!%p372_p2), %s385_s25, 9  ;;  %s412_s5 = sand.u32 (!%p372_p2), 1, %s1548_s12  }
  0x54   : > { %s1213_s23 = sshll.u32 (!%p372_p2), %s1576_s19, 2  ;;  %s1212_s28 = sshll.u32 (!%p372_p2), %s412_s5, 5 }
  0x55   : > { %p420_p3 = scmp.lt.s32.totalorder (!%p372_p2), %s1213_s23, 23  ;;  %s380_s26 = scalar_lea.vmem (!%p372_p2), [#allocation3], %s1861_s30 }
  0x56   : > { %s1872_s4 = scalar_lea.vmem (!%p372_p2), [#allocation4], %s1211_s27  ;;  %s1874_s16 = scalar_lea.vmem (!%p372_p2), [#allocation5], %s1212_s28 }
  0x57   : > { %p1214_p4 = scmp.ne.s32.totalorder (!%p372_p2), %s1572_s18, 0 }
  0x59   : > { %s2030_s23 = smov (!%p420_p3, %s1213_s23), 23  ;;  %429 = sbr.rel (%p1214_p4) target bundleno = 96 (0x60), region = 97 }
  0x5a   : > { %s422_s29 = scalar_lea.vmem %s2000_s2, %s2030_s23  ;;  %v1590_v2 = vmov (!%p1214_p4), 0.0  }
  0x5b   : > { %430 = vst [vmem:[#allocation2] sm:$0xff] (!%p1214_p4), %v1590_v2  ;;  %431 = vst [vmem:[#allocation2 + $0x8] sm:$0xff] (!%p1214_p4), %v1590_v2 }
  0x5c   : > { %432 = vst [vmem:[#allocation2 + $0x10] sm:$0xff] (!%p1214_p4), %v1590_v2  ;;  %433 = vst [vmem:[#allocation2 + $0x18] sm:$0xff] (!%p1214_p4), %v1590_v2 }
  0x5d   : > { %434 = vst [vmem:[#allocation2 + $0x20] sm:$0xff] (!%p1214_p4), %v1590_v2  ;;  %435 = vst [vmem:[#allocation2 + $0x28] sm:$0xff] (!%p1214_p4), %v1590_v2 }
  0x5e   : > { %436 = vst [vmem:[#allocation2 + $0x30] sm:$0xff] (!%p1214_p4), %v1590_v2  ;;  %437 = vst [vmem:[#allocation2 + $0x38] sm:$0xff] (!%p1214_p4), %v1590_v2 }
  0x60 PF: > { %v1387_v3 = vld [vmem:[%s1872_s4 + $0x4] ss:$16 sps:$4 sm:$0xff]   ;;  %v1389_v4 = vld [vmem:[%s1872_s4 + $0xc] ss:$16 sps:$4 sm:$0xff]   ;;  %v1391_v5 = vld [vmem:[%s1872_s4] ss:$16 sps:$4 sm:$0xff]  }
  0x61   : > { %842 = vmatprep.subr.bf16.mxu0 %v1387_v3  ;;  %v1392_v6 = vld [vmem:[%s1872_s4 + $0x8] ss:$16 sps:$4 sm:$0xff]   ;;  %885 = vmatprep.subr.bf16.mxu1 %v1389_v4  ;;  %v1393_v7 = vld [vmem:[%s1872_s4 + $0x24] ss:$16 sps:$4 sm:$0xff]   ;;  %v1395_v8 = vld [vmem:[%s1872_s4 + $0x2c] ss:$16 sps:$4 sm:$0xff]  }
  0x62   : > { %843 = vmatpush1.bf16.msra.mxu0 %v1391_v5  ;;  %886 = vmatpush1.bf16.msra.mxu1 %v1392_v6  ;;  %v1397_v9 = vld [vmem:[%s1872_s4 + $0x20] ss:$16 sps:$4 sm:$0xff]   ;;  %v1398_v10 = vld [vmem:[%s1872_s4 + $0x28] ss:$16 sps:$4 sm:$0xff]   ;;  %v1399_v11 = vld [vmem:[%s1872_s4 + $0x44] ss:$16 sps:$4 sm:$0xff]  }
  0x63   : > { %844 = vmatprep.subr.bf16.mxu0 %v1393_v7  ;;  %887 = vmatprep.subr.bf16.mxu1 %v1395_v8  ;;  %v1401_v12 = vld [vmem:[%s1872_s4 + $0x4c] ss:$16 sps:$4 sm:$0xff]   ;;  %v1403_v13 = vld [vmem:[%s1872_s4 + $0x40] ss:$16 sps:$4 sm:$0xff]   ;;  %v1404_v14 = vld [vmem:[%s1872_s4 + $0x48] ss:$16 sps:$4 sm:$0xff]  }
  0x64   : > { %v1405_v15 = vld [vmem:[%s1872_s4 + $0x64] ss:$16 sps:$4 sm:$0xff]   ;;  %v1407_v16 = vld [vmem:[%s1872_s4 + $0x6c] ss:$16 sps:$4 sm:$0xff]   ;;  %v1409_v17 = vld [vmem:[%s1872_s4 + $0x60] ss:$16 sps:$4 sm:$0xff]  }
  0x65   : > { %v1410_v18 = vld [vmem:[%s1872_s4 + $0x68] ss:$16 sps:$4 sm:$0xff]   ;;  %v1411_v19 = vld [vmem:[%s1872_s4 + $0x84] ss:$16 sps:$4 sm:$0xff]   ;;  %v1413_v20 = vld [vmem:[%s1872_s4 + $0x8c] ss:$16 sps:$4 sm:$0xff]  }
  0x66   : > { %845 = vmatpush1.bf16.msra.mxu0 %v1397_v9  ;;  %888 = vmatpush1.bf16.msra.mxu1 %v1398_v10  ;;  %v1415_v21 = vld [vmem:[%s1872_s4 + $0x80] ss:$16 sps:$4 sm:$0xff]   ;;  %v1416_v22 = vld [vmem:[%s1872_s4 + $0x88] ss:$16 sps:$4 sm:$0xff]   ;;  %v1417_v23 = vld [vmem:[%s1872_s4 + $0xa4] ss:$16 sps:$4 sm:$0xff]  }
  0x67   : > { %846 = vmatprep.subr.bf16.mxu0 %v1399_v11  ;;  %889 = vmatprep.subr.bf16.mxu1 %v1401_v12  ;;  %v1419_v24 = vld [vmem:[%s1872_s4 + $0xac] ss:$16 sps:$4 sm:$0xff]   ;;  %v1421_v25 = vld [vmem:[%s1872_s4 + $0xa0] ss:$16 sps:$4 sm:$0xff]   ;;  %v1422_v26 = vld [vmem:[%s1872_s4 + $0xa8] ss:$16 sps:$4 sm:$0xff]  }
  0x68   : > { %v1423_v27 = vld [vmem:[%s1872_s4 + $0xc4] ss:$16 sps:$4 sm:$0xff]   ;;  %v1425_v28 = vld [vmem:[%s1872_s4 + $0xcc] ss:$16 sps:$4 sm:$0xff]   ;;  %v1427_v29 = vld [vmem:[%s1872_s4 + $0xc0] ss:$16 sps:$4 sm:$0xff]  }
  0x69   : > { %v1428_v30 = vld [vmem:[%s1872_s4 + $0xc8] ss:$16 sps:$4 sm:$0xff]   ;;  %v1429_v31 = vld [vmem:[%s1872_s4 + $0xe4] ss:$16 sps:$4 sm:$0xff]   ;;  %v1431_v32 = vld [vmem:[%s1872_s4 + $0xec] ss:$16 sps:$4 sm:$0xff]  }
  0x6a   : > { %847 = vmatpush1.bf16.msra.mxu0 %v1403_v13  ;;  %890 = vmatpush1.bf16.msra.mxu1 %v1404_v14  ;;  %v1433_v33 = vld [vmem:[%s1872_s4 + $0xe0] ss:$16 sps:$4 sm:$0xff]   ;;  %v1434_v34 = vld [vmem:[%s1872_s4 + $0xe8] ss:$16 sps:$4 sm:$0xff]   ;;  %v1435_v35 = vld [vmem:[%s1872_s4 + $0x104] ss:$16 sps:$4 sm:$0xff]  }
  0x6b   : > { %848 = vmatprep.subr.bf16.mxu0 %v1405_v15  ;;  %891 = vmatprep.subr.bf16.mxu1 %v1407_v16  ;;  %v1437_v36 = vld [vmem:[%s1872_s4 + $0x10c] ss:$16 sps:$4 sm:$0xff]   ;;  %v1439_v37 = vld [vmem:[%s1872_s4 + $0x100] ss:$16 sps:$4 sm:$0xff]   ;;  %v1440_v38 = vld [vmem:[%s1872_s4 + $0x108] ss:$16 sps:$4 sm:$0xff]  }
  0x6c   : > { %v1441_v39 = vld [vmem:[%s1872_s4 + $0x124] ss:$16 sps:$4 sm:$0xff]   ;;  %v1443_v40 = vld [vmem:[%s1872_s4 + $0x12c] ss:$16 sps:$4 sm:$0xff]   ;;  %v1445_v41 = vld [vmem:[%s1872_s4 + $0x120] ss:$16 sps:$4 sm:$0xff]  }
  0x6d   : > { %v1446_v42 = vld [vmem:[%s1872_s4 + $0x128] ss:$16 sps:$4 sm:$0xff]   ;;  %v1447_v43 = vld [vmem:[%s1872_s4 + $0x144] ss:$16 sps:$4 sm:$0xff]   ;;  %v1449_v44 = vld [vmem:[%s1872_s4 + $0x14c] ss:$16 sps:$4 sm:$0xff]  }
  0x6e   : > { %849 = vmatpush1.bf16.msra.mxu0 %v1409_v17  ;;  %892 = vmatpush1.bf16.msra.mxu1 %v1410_v18  ;;  %v1451_v45 = vld [vmem:[%s1872_s4 + $0x140] ss:$16 sps:$4 sm:$0xff]   ;;  %v1452_v46 = vld [vmem:[%s1872_s4 + $0x148] ss:$16 sps:$4 sm:$0xff]   ;;  %v1453_v47 = vld [vmem:[%s1872_s4 + $0x164] ss:$16 sps:$4 sm:$0xff]  }
  0x6f   : > { %850 = vmatprep.subr.bf16.mxu0 %v1411_v19  ;;  %893 = vmatprep.subr.bf16.mxu1 %v1413_v20  ;;  %v1455_v48 = vld [vmem:[%s1872_s4 + $0x16c] ss:$16 sps:$4 sm:$0xff]   ;;  %v1457_v50 = vld [vmem:[%s1872_s4 + $0x160] ss:$16 sps:$4 sm:$0xff]   ;;  %v1458_v51 = vld [vmem:[%s1872_s4 + $0x168] ss:$16 sps:$4 sm:$0xff]  }
  0x70   : > { %v1485_v49 = vld [vmem:[%s380_s26 + $0x4] ss:$8 sps:$4 sm:$0xff]   ;;  %v1463_v54 = vld [vmem:[%s1872_s4 + $0x180] ss:$16 sps:$4 sm:$0xff]   ;;  %v1464_v55 = vld [vmem:[%s1872_s4 + $0x188] ss:$16 sps:$4 sm:$0xff]  }
  0x71   : > { %v1459_v52 = vld [vmem:[%s1872_s4 + $0x184] ss:$16 sps:$4 sm:$0xff]   ;;  %v1461_v53 = vld [vmem:[%s1872_s4 + $0x18c] ss:$16 sps:$4 sm:$0xff]   ;;  %874 = vmatprep.mubr.bf16.mxu0 %v1485_v49  ;;  %917 = vmatprep.mubr.bf16.mxu1 %v1485_v49  ;;  %v1469_v58 = vld [vmem:[%s1872_s4 + $0x1a0] ss:$16 sps:$4 sm:$0xff]  }
  0x72   : > { %851 = vmatpush1.bf16.msra.mxu0 %v1415_v21  ;;  %894 = vmatpush1.bf16.msra.mxu1 %v1416_v22  ;;  %v1465_v56 = vld [vmem:[%s1872_s4 + $0x1a4] ss:$16 sps:$4 sm:$0xff]   ;;  %v1467_v57 = vld [vmem:[%s1872_s4 + $0x1ac] ss:$16 sps:$4 sm:$0xff]   ;;  %v1470_v59 = vld [vmem:[%s1872_s4 + $0x1a8] ss:$16 sps:$4 sm:$0xff]  }
  0x73   : > { %852 = vmatprep.subr.bf16.mxu0 %v1417_v23  ;;  %895 = vmatprep.subr.bf16.mxu1 %v1419_v24  ;;  %v1471_v60 = vld [vmem:[%s1872_s4 + $0x1c4] ss:$16 sps:$4 sm:$0xff]   ;;  %v1473_v61 = vld [vmem:[%s1872_s4 + $0x1cc] ss:$16 sps:$4 sm:$0xff]   ;;  %v1475_v62 = vld [vmem:[%s1872_s4 + $0x1c0] ss:$16 sps:$4 sm:$0xff]  }
  0x74   : > { %v1476_v63 = vld [vmem:[%s1872_s4 + $0x1c8] ss:$16 sps:$4 sm:$0xff]   ;;  %v1477_v0 = vld [vmem:[%s1872_s4 + $0x1e4] ss:$16 sps:$4 sm:$0xff]   ;;  %v1479_v1 = vld [vmem:[%s1872_s4 + $0x1ec] ss:$16 sps:$4 sm:$0xff]  }
  0x75   : > { %v1481_v2 = vld [vmem:[%s1872_s4 + $0x1e0] ss:$16 sps:$4 sm:$0xff]   ;;  %v1482_v3 = vld [vmem:[%s1872_s4 + $0x1e8] ss:$16 sps:$4 sm:$0xff]   ;;  %p1281_p5 = scmp.ne.s32.totalorder %s1572_s18, 2 }
  0x76   : > { %853 = vmatpush1.bf16.msra.mxu0 %v1421_v25  ;;  %896 = vmatpush1.bf16.msra.mxu1 %v1422_v26  ;;  %v1483_v4 = vld [vmem:[%s380_s26] ss:$8 sps:$4 sm:$0xff]  }
  0x77   : > { %854 = vmatprep.subr.bf16.mxu0 %v1423_v27  ;;  %897 = vmatprep.subr.bf16.mxu1 %v1425_v28  ;;  %v438_v5 = vld [vmem:[#allocation2] sm:$0xff]  ;;  %v440_v6 = vld [vmem:[#allocation2 + $0x10] sm:$0xff]  ;;  %v439_v7 = vld [vmem:[#allocation2 + $0x8] sm:$0xff] }
  0x78   : > { %v441_v8 = vld [vmem:[#allocation2 + $0x18] sm:$0xff]  ;;  %v442_v11 = vld [vmem:[#allocation2 + $0x20] sm:$0xff]  ;;  %v444_v12 = vld [vmem:[#allocation2 + $0x30] sm:$0xff] }
  0x79   : > { %v443_v17 = vld [vmem:[#allocation2 + $0x28] sm:$0xff]  ;;  %v445_v18 = vld [vmem:[#allocation2 + $0x38] sm:$0xff] }
  0x7a   : > { %855 = vmatpush1.bf16.msra.mxu0 %v1427_v29  ;;  %898 = vmatpush1.bf16.msra.mxu1 %v1428_v30  ;;  %v958_v29 = vlaneseq (!%p1281_p5) }
  0x7b   : > { %856 = vmatprep.subr.bf16.mxu0 %v1429_v31  ;;  %899 = vmatprep.subr.bf16.mxu1 %v1431_v32  ;;  %v956_v31 = vld [vmem:[%s422_s29] sm:$0xf] (!%p1281_p5) }
  0x7c   : > { %v959_v30 = vshrl.u32 (!%p1281_p5), %v958_v29, 7 }
  0x7e   : > { %857 = vmatpush1.bf16.msra.mxu0 %v1433_v33  ;;  %900 = vmatpush1.bf16.msra.mxu1 %v1434_v34  ;;  %v960_v33 = vsub.s32 (!%p1281_p5), 0, %v959_v30  ;;  %v964_v34 = vsub.s32 (!%p1281_p5), 1, %v959_v30 }
  0x7f   : > { %858 = vmatprep.subr.bf16.mxu0 %v1435_v35  ;;  %901 = vmatprep.subr.bf16.mxu1 %v1437_v36  ;;  %v968_v35 = vsub.s32 (!%p1281_p5), 2, %v959_v30  ;;  %v972_v36 = vsub.s32 (!%p1281_p5), 3, %v959_v30 }
  0x82   : > { %859 = vmatpush1.bf16.msra.mxu0 %v1439_v37  ;;  %902 = vmatpush1.bf16.msra.mxu1 %v1440_v38 }
  0x83   : > { %860 = vmatprep.subr.bf16.mxu0 %v1441_v39  ;;  %903 = vmatprep.subr.bf16.mxu1 %v1443_v40  ;;  %v961_v40 = vrot.slane (!%p1281_p5), %v956_v31, %v960_v33 }
  0x86   : > { %861 = vmatpush1.bf16.msra.mxu0 %v1445_v41  ;;  %904 = vmatpush1.bf16.msra.mxu1 %v1446_v42  ;;  %v965_v41 = vrot.slane (!%p1281_p5), %v956_v31, %v964_v34  ;;  %v969_v42 = vrot.slane (!%p1281_p5), %v956_v31, %v968_v35 }
  0x87   : > { %862 = vmatprep.subr.bf16.mxu0 %v1447_v43  ;;  %905 = vmatprep.subr.bf16.mxu1 %v1449_v44  ;;  %v973_v43 = vrot.slane (!%p1281_p5), %v956_v31, %v972_v36 }
  0x8a   : > { %863 = vmatpush1.bf16.msra.mxu0 %v1451_v45  ;;  %906 = vmatpush1.bf16.msra.mxu1 %v1452_v46 }
  0x8b   : > { %864 = vmatprep.subr.bf16.mxu0 %v1453_v47  ;;  %907 = vmatprep.subr.bf16.mxu1 %v1455_v48 }
  0x8e   : > { %865 = vmatpush1.bf16.msra.mxu0 %v1457_v50  ;;  %908 = vmatpush1.bf16.msra.mxu1 %v1458_v51 }
  0x8f   : > { %866 = vmatprep.subr.bf16.mxu0 %v1459_v52  ;;  %909 = vmatprep.subr.bf16.mxu1 %v1461_v53 }
  0x92   : > { %867 = vmatpush1.bf16.msra.mxu0 %v1463_v54  ;;  %910 = vmatpush1.bf16.msra.mxu1 %v1464_v55 }
  0x93   : > { %868 = vmatprep.subr.bf16.mxu0 %v1465_v56  ;;  %911 = vmatprep.subr.bf16.mxu1 %v1467_v57 }
  0x96   : > { %869 = vmatpush1.bf16.msra.mxu0 %v1469_v58  ;;  %912 = vmatpush1.bf16.msra.mxu1 %v1470_v59 }
  0x97   : > { %870 = vmatprep.subr.bf16.mxu0 %v1471_v60  ;;  %913 = vmatprep.subr.bf16.mxu1 %v1473_v61 }
  0x9a   : > { %871 = vmatpush1.bf16.msra.mxu0 %v1475_v62  ;;  %914 = vmatpush1.bf16.msra.mxu1 %v1476_v63 }
  0x9b   : > { %872 = vmatprep.subr.bf16.mxu0 %v1477_v0  ;;  %915 = vmatprep.subr.bf16.mxu1 %v1479_v1 }
  0x9e   : > { %873 = vmatpush1.bf16.msra.mxu0 %v1481_v2  ;;  %916 = vmatpush1.bf16.msra.mxu1 %v1482_v3 }
  0xa1   : > { %875 = vmatmul.mubr.bf16.vlgmr.msra.gmra.mrb[0].mxu0 %v1483_v4  ;;  %918 = vmatmul.mubr.bf16.vlgmr.msra.gmra.mrb[0].mxu1 %v1483_v4 }
 0x174   : > { %v876_v9 = vpop.f32.mrb[0].mxu0  ;;  %v919_v10 = vpop.f32.mrb[0].mxu1  ;;  %947 = sbr.rel (%p1281_p5) target bundleno = 412 (0x19c), region = 101 }
 0x175   : > { %v928_v13 = vadd.f32 %v876_v9, %v438_v5  ;;  %v930_v14 = vadd.f32 %v919_v10, %v440_v6  ;;  %v878_v15 = vpop.f32.mrb[1].mxu0  ;;  %v921_v16 = vpop.f32.mrb[1].mxu1 }
 0x176   : > { %v929_v19 = vadd.f32 %v878_v15, %v439_v7  ;;  %v931_v20 = vadd.f32 %v921_v16, %v441_v8  ;;  %v880_v21 = vpop.f32.mrb[2].mxu0  ;;  %v923_v22 = vpop.f32.mrb[2].mxu1 }
 0x177   : > { %936 = vst [vmem:[#allocation2] sm:$0xff] %v928_v13  ;;  %938 = vst [vmem:[#allocation2 + $0x10] sm:$0xff] %v930_v14  ;;  %v932_v23 = vadd.f32 %v880_v21, %v442_v11  ;;  %v934_v24 = vadd.f32 %v923_v22, %v444_v12  ;;  %v882_v25 = vpop.f32.mrb[3].mxu0  ;;  %v925_v26 = vpop.f32.mrb[3].mxu1 }
 0x178   : > { %937 = vst [vmem:[#allocation2 + $0x8] sm:$0xff] %v929_v19  ;;  %939 = vst [vmem:[#allocation2 + $0x18] sm:$0xff] %v931_v20  ;;  %v933_v27 = vadd.f32 %v882_v25, %v443_v17  ;;  %v935_v28 = vadd.f32 %v925_v26, %v445_v18 }
 0x179   : > { %940 = vst [vmem:[#allocation2 + $0x20] sm:$0xff] %v932_v23  ;;  %942 = vst [vmem:[#allocation2 + $0x30] sm:$0xff] %v934_v24 }
 0x17a   : > { %941 = vst [vmem:[#allocation2 + $0x28] sm:$0xff] %v933_v27  ;;  %943 = vst [vmem:[#allocation2 + $0x38] sm:$0xff] %v935_v28 }
 0x17e   : > { %v948_v32 = vld [vmem:[#allocation2] sm:$0xff]  ;;  %v950_v38 = vld [vmem:[#allocation2 + $0x10] sm:$0xff] }
 0x17f   : > { %v949_v37 = vld [vmem:[#allocation2 + $0x8] sm:$0xff]  ;;  %v951_v39 = vld [vmem:[#allocation2 + $0x18] sm:$0xff]  ;;  %v978_v47 = vadd.f32 %v961_v40, %v948_v32  ;;  %v980_v49 = vadd.f32 %v969_v42, %v950_v38 }
 0x180   : > { %v952_v44 = vld [vmem:[#allocation2 + $0x20] sm:$0xff]  ;;  %v954_v46 = vld [vmem:[#allocation2 + $0x30] sm:$0xff]  ;;  %v979_v48 = vadd.f32 %v965_v41, %v949_v37  ;;  %v981_v50 = vadd.f32 %v973_v43, %v951_v39 }
 0x181   : > { %v953_v45 = vld [vmem:[#allocation2 + $0x28] sm:$0xff]  ;;  %v955_v51 = vld [vmem:[#allocation2 + $0x38] sm:$0xff]  ;;  %v982_v52 = vadd.f32 %v961_v40, %v952_v44  ;;  %v994_v54 = vmul.f32 0.70710677, %v978_v47  ;;  %v984_v56 = vadd.f32 %v969_v42, %v954_v46  ;;  %v996_v57 = vmul.f32 0.70710677, %v980_v49 }
 0x182   : > { %v983_v53 = vadd.f32 %v965_v41, %v953_v45  ;;  %v995_v55 = vmul.f32 0.70710677, %v979_v48  ;;  %v997_v58 = vmul.f32 0.70710677, %v981_v50  ;;  %v985_v59 = vadd.f32 %v973_v43, %v955_v51 }
 0x183   : > { %1486 = verf.f32 %v994_v54  ;;  %v998_v60 = vmul.f32 0.70710677, %v982_v52  ;;  %v1000_v62 = vmul.f32 0.70710677, %v984_v56  ;;  %v986_v0 = vmul.f32 0.5, %v978_v47 }
 0x184   : > { %1488 = verf.f32 %v995_v55  ;;  %v999_v61 = vmul.f32 0.70710677, %v983_v53  ;;  %v1001_v63 = vmul.f32 0.70710677, %v985_v59  ;;  %v987_v2 = vmul.f32 0.5, %v979_v48 }
 0x185   : > { %1490 = verf.f32 %v996_v57  ;;  %v988_v5 = vmul.f32 0.5, %v980_v49  ;;  %v989_v8 = vmul.f32 0.5, %v981_v50  ;;  %v990_v12 = vmul.f32 0.5, %v982_v52 }
 0x186   : > { %1492 = verf.f32 %v997_v58  ;;  %v991_v16 = vmul.f32 0.5, %v983_v53  ;;  %v992_v20 = vmul.f32 0.5, %v984_v56  ;;  %v993_v25 = vmul.f32 0.5, %v985_v59 }
 0x187   : > { %1494 = verf.f32 %v998_v60 }
 0x188   : > { %1496 = verf.f32 %v999_v61 }
 0x189   : > { %1498 = verf.f32 %v1000_v62 }
 0x18a   : > { %1500 = verf.f32 %v1001_v63 }
 0x18d   : > { %v1487_v1 = vpop.eup %1486 }
 0x18e   : > { %v1489_v3 = vpop.eup %1488  ;;  %v1010_v4 = vadd.f32 1.0, %v1487_v1 }
 0x18f   : > { %v1491_v6 = vpop.eup %1490  ;;  %v1011_v7 = vadd.f32 1.0, %v1489_v3 }
 0x190   : > { %v1493_v9 = vpop.eup %1492  ;;  %v1018_v10 = vmul.f32 %v1010_v4, %v986_v0  ;;  %v1012_v11 = vadd.f32 1.0, %v1491_v6 }
 0x191   : > { %v1495_v13 = vpop.eup %1494  ;;  %v1019_v14 = vmul.f32 %v1011_v7, %v987_v2  ;;  %v1013_v15 = vadd.f32 1.0, %v1493_v9 }
 0x192   : > { %v1497_v17 = vpop.eup %1496  ;;  %v1020_v18 = vmul.f32 %v1012_v11, %v988_v5  ;;  %v1014_v19 = vadd.f32 1.0, %v1495_v13 }
 0x193   : > { %v1499_v21 = vpop.eup %1498  ;;  %v1292_v22 = vpack.c.bf16 %v1019_v14, %v1018_v10  ;;  %v1021_v23 = vmul.f32 %v1013_v15, %v989_v8  ;;  %v1015_v24 = vadd.f32 1.0, %v1497_v17 }
 0x194   : > { %v1501_v26 = vpop.eup %1500  ;;  %v1022_v27 = vmul.f32 %v1014_v19, %v990_v12  ;;  %v1016_v28 = vadd.f32 1.0, %v1499_v21 }
 0x195   : > { %1050 = vst [vmem:[%s1874_s16] sm:$0xff] %v1292_v22  ;;  %v1293_v29 = vpack.c.bf16 %v1021_v23, %v1020_v18  ;;  %v1023_v30 = vmul.f32 %v1015_v24, %v991_v16  ;;  %v1017_v31 = vadd.f32 1.0, %v1501_v26 }
 0x196   : > { %v1024_v32 = vmul.f32 %v1016_v28, %v992_v20 }
 0x197   : > { %1051 = vst [vmem:[%s1874_s16 + $0x8] sm:$0xff] %v1293_v29  ;;  %v1294_v33 = vpack.c.bf16 %v1023_v30, %v1022_v27  ;;  %v1025_v34 = vmul.f32 %v1017_v31, %v993_v25 }
 0x199   : > { %1052 = vst [vmem:[%s1874_s16 + $0x10] sm:$0xff] %v1294_v33  ;;  %v1295_v35 = vpack.c.bf16 %v1025_v34, %v1024_v32 }
 0x19b   : > { %1053 = vst [vmem:[%s1874_s16 + $0x18] sm:$0xff] %v1295_v35 }
 0x19c PF: > { %1060 = sbr.rel (!%p1705_p12) target bundleno = 420 (0x1a4), region = 105  ;;  %s1296_s18 = sshll.u32 (%p1705_p12), %s1576_s19, 4  ;;  %v1079_v36 = vld [vmem:[%s1874_s16] sm:$0xff] (%p1705_p12) }
 0x19d   : > { %s1066_s25 = scalar_lea.vmem (%p1705_p12), %s2001_s3, %s1296_s18 }
 0x19e   : > { %v1081_v37 = vld [vmem:[%s1874_s16 + $0x8] sm:$0xff] (%p1705_p12)  ;;  %1080 = vst [vmem:[%s1066_s25] sm:$0xff] (%p1705_p12), %v1079_v36 }
 0x19f   : > { %1082 = vst [vmem:[%s1066_s25 + $0x8] sm:$0xff] (%p1705_p12), %v1081_v37 }
 0x1a0   : > { %v1083_v38 = vld [vmem:[%s1874_s16 + $0x10] sm:$0xff] (%p1705_p12) }
 0x1a1   : > { %1084 = vst [vmem:[%s1066_s25 + $0x60] sm:$0xff] (%p1705_p12), %v1083_v38 }
 0x1a2   : > { %v1085_v39 = vld [vmem:[%s1874_s16 + $0x18] sm:$0xff] (%p1705_p12) }
 0x1a3   : > { %1086 = vst [vmem:[%s1066_s25 + $0x68] sm:$0xff] %v1085_v39 }
 0x1a4 PF: > { %s13_s22 = sadd.s32 1, %s1588_s22   ;;  %s2010_s19 = sld [smem:[#allocation8_spill]] }
 0x1a5   : > { %p10_p6 = scmp.ge.s32.totalorder %s13_s22, 20   ;;  %s2011_s10 = sld [smem:[#allocation6_spill]] }
 0x1a6   : > { %s2012_s30 = sld [smem:[#allocation7_spill]]  ;;  %s2013_s12 = smov %s1552_s13 }
 0x1a7   : > { %s2014_s13 = smov %s1703_s9  ;;  %s2015_s14 = smov %s1560_s15 }
 0x1a8   : > { %s2016_s15 = smov %s1700_s8  ;;  %s2017_s16 = smov %s1568_s17 }
 0x1a9   : > { %s2019_s18 = smov %s1580_s20  ;;  %12 = sbr.rel (!%p10_p6) target bundleno = 6 (0x6), region = 170 }
 0x1aa   : > { %s2018_s17 = smov %s2010_s19  ;;  %s2020_s19 = smov %s1584_s21 }
 0x1ab   : > { %s2021_s20 = smov %s2011_s10 }
 0x1ac   : > { %s2022_s21 = smov %s2012_s30 }

// kernel: closed_call.18
= control target key start
LH: loop header
LB: loop body
LE: loop exit
PB: predicated region body
PF: predicated region fallthrough
CT: control target
= control target key end

     0   :  { %s1922_s21 = smov 0   ;;  %s1924_s22 = smov 0   ;;  %s2204_s0 = inlined_call_operand.vmem [shape: bf16[16,768], index: 0, kind: input, shape index: {}]   ;;  %s2205_s1 = inlined_call_operand.vmem [shape: bf16[768,768], index: 1, kind: input, shape index: {}]   ;;  %s2206_s2 = inlined_call_operand.vmem [shape: f32[1,768], index: 2, kind: input, shape index: {}]   ;;  %s2207_s3 = inlined_call_operand.vmem [shape: bf16[16,768], index: 3, kind: input, shape index: {}]   ;;  %s2208_s4 = inlined_call_operand.vmem [shape: f32[1,768], index: 4, kind: input, shape index: {}]   ;;  %s2209_s5 = inlined_call_operand.vmem [shape: f32[1,768], index: 5, kind: input, shape index: {}]   ;;  %s2210_s6 = inlined_call_operand.vmem [shape: bf16[16,768], index: 6, kind: output, shape index: {}]  }
   0x1   :  { %s1926_s23 = smov 0   ;;  %s1928_s24 = smov 0  }
   0x2   :  { %s1930_s25 = smov 0  }
   0x3 LB: > { %s25_s26 = sadd.s32 1, %s1880_s24  ;;  %p44_p1 = scmp.ne.s32.totalorder %s1872_s22, %s1868_s21  ;;  %s1884_s25 = sphi %s1930_s25, %s16_s25   ;;  %s1880_s24 = sphi %s1928_s24, %s2214_s24   ;;  %s1876_s23 = sphi %s1926_s23, %s2213_s23   ;;  %s1872_s22 = sphi %s1924_s22, %s2212_s22   ;;  %s1868_s21 = sphi %s1922_s21, %s2211_s21  }
   0x4   : > { %p26_p0 = scmp.ge.s32.totalorder %s25_s26, 3  ;;  %p45_p2 = scmp.eq.s32.totalorder %s1884_s25, 0 }
   0x5   : > { %s37_s28 = sadd.s32 1, %s1872_s22  ;;  %p1528_p5 = scmp.ge.s32.totalorder %s1884_s25, 3 }
   0x6   : > { %s2216_s26 = smov (%p26_p0, %s25_s26), 0  ;;  %p46_p3 = por %p45_p2, %p44_p1 }
   0x7   : > { %s33_s27 = ssub.s32 %s1880_s24, %s2216_s26  ;;  %230 = sbr.rel (%p1528_p5) target bundleno = 21 (0x15), region = 32 }
   0x8   : > { %p35_p4 = scmp.eq.s32.totalorder %s33_s27, 0 }
   0xa   : > { %s1957_s29 = scalar_select %p35_p4, %s1872_s22, %s37_s28  }
   0xe   : > { %233 = sbr.rel (!%p46_p3) target bundleno = 21 (0x15), region = 36  ;;  %s235_s30 = sand.u32 (%p46_p3), 1, %s1872_s22  }
   0xf   : > { %s1646_s7 = sshll.u32 (%p46_p3), %s1880_s24, 3  ;;  %s1529_s8 = sshll.u32 (%p46_p3), %s235_s30, 4 }
  0x10   : > { %s243_s11 = scalar_lea.vmem (%p46_p3), %s2204_s0, %s1646_s7  ;;  %s237_s12 = scalar_lea.vmem (%p46_p3), [#allocation3], %s1529_s8 }
  0x11   : > { %v273_v0 = vld [vmem:[%s243_s11] sm:$0xff] (%p46_p3)  ;;  %v275_v1 = vld [vmem:[%s243_s11 + $0x18] sm:$0xff] (%p46_p3) }
  0x12   : > { %274 = vst [vmem:[%s237_s12] sm:$0xff] (%p46_p3), %v273_v0  ;;  %276 = vst [vmem:[%s237_s12 + $0x8] sm:$0xff] (%p46_p3), %v275_v1 }
  0x15 PF: > { %p1532_p6 = scmp.ge.s32.totalorder %s1884_s25, 1  ;;  %p291_p7 = scmp.lt.s32.totalorder %s1884_s25, 4 }
  0x17   : > { %p292_p8 = pnand %p1532_p6, %p291_p7 }
  0x18   : > { %s298_s13 = sand.u32 (!%p292_p8), 1, %s1868_s21   ;;  %s1534_s14 = sshll.u32 (!%p292_p8), %s1876_s23, 5 }
  0x19   : > { %295 = sbr.rel (%p292_p8) target bundleno = 730 (0x2da), region = 78  ;;  %s1969_s15 = sshll.u32 (!%p292_p8), %s298_s13, 4 }
  0x1a   : > { %p343_p9 = scmp.lt.s32.totalorder (!%p292_p8), %s1534_s14, 95  ;;  %s300_s20 = scalar_lea.vmem (!%p292_p8), [#allocation3], %s1969_s15 }
  0x1b   : > { %p1536_p10 = scmp.ne.s32.totalorder (!%p292_p8), %s1876_s23, 0 }
  0x20   : > { %s2218_s14 = smov (!%p343_p9, %s1534_s14), 95  ;;  %366 = sbr.rel (%p1536_p10) target bundleno = 40 (0x28), region = 86 }
  0x21   : > { %s1653_s16 = smul.u32 24, %s2218_s14  ;;  %v1886_v2 = vmov (!%p1536_p10), 0.0  }
  0x22   : > { %367 = vst [vmem:[#allocation2] sm:$0xff] (!%p1536_p10), %v1886_v2  ;;  %368 = vst [vmem:[#allocation2 + $0x8] sm:$0xff] (!%p1536_p10), %v1886_v2 }
  0x23   : > { %s1974_s19 = scalar_lea.vmem %s2205_s1, %s1653_s16  ;;  %369 = vst [vmem:[#allocation2 + $0x10] sm:$0xff] (!%p1536_p10), %v1886_v2  ;;  %370 = vst [vmem:[#allocation2 + $0x18] sm:$0xff] (!%p1536_p10), %v1886_v2 }
  0x24   : > { %371 = vst [vmem:[#allocation2 + $0x20] sm:$0xff] (!%p1536_p10), %v1886_v2  ;;  %372 = vst [vmem:[#allocation2 + $0x28] sm:$0xff] (!%p1536_p10), %v1886_v2 }
  0x25   : > { %373 = vst [vmem:[#allocation2 + $0x30] sm:$0xff] (!%p1536_p10), %v1886_v2  ;;  %374 = vst [vmem:[#allocation2 + $0x38] sm:$0xff] (!%p1536_p10), %v1886_v2 }
  0x26   : > { %375 = vst [vmem:[#allocation2 + $0x40] sm:$0xff] (!%p1536_p10), %v1886_v2  ;;  %376 = vst [vmem:[#allocation2 + $0x48] sm:$0xff] (!%p1536_p10), %v1886_v2 }
  0x27   : > { %377 = vst [vmem:[#allocation2 + $0x50] sm:$0xff] %v1886_v2  ;;  %378 = vst [vmem:[#allocation2 + $0x58] sm:$0xff] %v1886_v2 }
  0x28 PF: > { %v1695_v3 = vld [vmem:[%s1974_s19 + $0x4] ss:$24 sps:$4 sm:$0xff]   ;;  %v1697_v4 = vld [vmem:[%s1974_s19] ss:$24 sps:$4 sm:$0xff]   ;;  %v1698_v5 = vld [vmem:[%s1974_s19 + $0x34] ss:$24 sps:$4 sm:$0xff]  }
  0x29   : > { %979 = vmatprep.subr.bf16.mxu0 %v1695_v3  ;;  %v1700_v6 = vld [vmem:[%s1974_s19 + $0x30] ss:$24 sps:$4 sm:$0xff]   ;;  %v1701_v7 = vld [vmem:[%s1974_s19 + $0x64] ss:$24 sps:$4 sm:$0xff]   ;;  %v1703_v8 = vld [vmem:[%s1974_s19 + $0x60] ss:$24 sps:$4 sm:$0xff]  }
  0x2a   : > { %980 = vmatpush1.bf16.msra.mxu0 %v1697_v4  ;;  %v1704_v9 = vld [vmem:[%s1974_s19 + $0x94] ss:$24 sps:$4 sm:$0xff]   ;;  %v1706_v10 = vld [vmem:[%s1974_s19 + $0x90] ss:$24 sps:$4 sm:$0xff]   ;;  %v1707_v11 = vld [vmem:[%s1974_s19 + $0xc4] ss:$24 sps:$4 sm:$0xff]  }
  0x2b   : > { %981 = vmatprep.subr.bf16.mxu0 %v1698_v5  ;;  %v1709_v12 = vld [vmem:[%s1974_s19 + $0xc0] ss:$24 sps:$4 sm:$0xff]   ;;  %v1710_v13 = vld [vmem:[%s1974_s19 + $0xf4] ss:$24 sps:$4 sm:$0xff]   ;;  %v1712_v14 = vld [vmem:[%s1974_s19 + $0xf0] ss:$24 sps:$4 sm:$0xff]  }
  0x2c   : > { %v1713_v15 = vld [vmem:[%s1974_s19 + $0x124] ss:$24 sps:$4 sm:$0xff]   ;;  %v1745_v17 = vld [vmem:[%s1974_s19 + $0x8] ss:$24 sps:$4 sm:$0xff]   ;;  %v1716_v20 = vld [vmem:[%s1974_s19 + $0x154] ss:$24 sps:$4 sm:$0xff]  }
  0x2d   : > { %v1743_v16 = vld [vmem:[%s1974_s19 + $0xc] ss:$24 sps:$4 sm:$0xff]   ;;  %v1715_v18 = vld [vmem:[%s1974_s19 + $0x120] ss:$24 sps:$4 sm:$0xff]   ;;  %v1752_v21 = vld [vmem:[%s1974_s19 + $0x3c] ss:$24 sps:$4 sm:$0xff]  }
  0x2e   : > { %982 = vmatpush1.bf16.msra.mxu0 %v1700_v6  ;;  %v1996_v19 = vld [vmem:[%s300_s20 + $0x4] ss:$8 sps:$4 sm:$0xff]   ;;  %1022 = vmatprep.subr.bf16.mxu1 %v1743_v16  ;;  %v1754_v22 = vld [vmem:[%s1974_s19 + $0x38] ss:$24 sps:$4 sm:$0xff]   ;;  %v1760_v26 = vld [vmem:[%s1974_s19 + $0x68] ss:$24 sps:$4 sm:$0xff]  }
  0x2f   : > { %983 = vmatprep.subr.bf16.mxu0 %v1701_v7  ;;  %1023 = vmatpush1.bf16.msra.mxu1 %v1745_v17  ;;  %v1718_v23 = vld [vmem:[%s1974_s19 + $0x150] ss:$24 sps:$4 sm:$0xff]   ;;  %v1719_v24 = vld [vmem:[%s1974_s19 + $0x184] ss:$24 sps:$4 sm:$0xff]   ;;  %v1721_v27 = vld [vmem:[%s1974_s19 + $0x180] ss:$24 sps:$4 sm:$0xff]  }
  0x30   : > { %1011 = vmatprep.mubr.bf16.mxu0 %v1996_v19  ;;  %1054 = vmatprep.mubr.bf16.mxu1 %v1996_v19  ;;  %v1758_v25 = vld [vmem:[%s1974_s19 + $0x6c] ss:$24 sps:$4 sm:$0xff]   ;;  %v1764_v28 = vld [vmem:[%s1974_s19 + $0x9c] ss:$24 sps:$4 sm:$0xff]   ;;  %v1766_v30 = vld [vmem:[%s1974_s19 + $0x98] ss:$24 sps:$4 sm:$0xff]  }
  0x31   : > { %1024 = vmatprep.subr.bf16.mxu1 %v1752_v21  ;;  %v1722_v29 = vld [vmem:[%s1974_s19 + $0x1b4] ss:$24 sps:$4 sm:$0xff]   ;;  %v1724_v32 = vld [vmem:[%s1974_s19 + $0x1b0] ss:$24 sps:$4 sm:$0xff]   ;;  %v1725_v33 = vld [vmem:[%s1974_s19 + $0x1e4] ss:$24 sps:$4 sm:$0xff]  }
  0x32   : > { %984 = vmatpush1.bf16.msra.mxu0 %v1703_v8  ;;  %v1770_v31 = vld [vmem:[%s1974_s19 + $0xcc] ss:$24 sps:$4 sm:$0xff]   ;;  %v1772_v34 = vld [vmem:[%s1974_s19 + $0xc8] ss:$24 sps:$4 sm:$0xff]   ;;  %v1776_v35 = vld [vmem:[%s1974_s19 + $0xfc] ss:$24 sps:$4 sm:$0xff]  }
  0x33   : > { %985 = vmatprep.subr.bf16.mxu0 %v1704_v9  ;;  %1025 = vmatpush1.bf16.msra.mxu1 %v1754_v22  ;;  %v1727_v36 = vld [vmem:[%s1974_s19 + $0x1e0] ss:$24 sps:$4 sm:$0xff]   ;;  %v1728_v37 = vld [vmem:[%s1974_s19 + $0x214] ss:$24 sps:$4 sm:$0xff]   ;;  %v1730_v40 = vld [vmem:[%s1974_s19 + $0x210] ss:$24 sps:$4 sm:$0xff]  }
  0x34   : > { %1026 = vmatprep.subr.bf16.mxu1 %v1758_v25  ;;  %v1778_v38 = vld [vmem:[%s1974_s19 + $0xf8] ss:$24 sps:$4 sm:$0xff]   ;;  %v1782_v39 = vld [vmem:[%s1974_s19 + $0x12c] ss:$24 sps:$4 sm:$0xff]   ;;  %v1784_v42 = vld [vmem:[%s1974_s19 + $0x128] ss:$24 sps:$4 sm:$0xff]  }
  0x35   : > { %v1731_v41 = vld [vmem:[%s1974_s19 + $0x244] ss:$24 sps:$4 sm:$0xff]   ;;  %v1733_v44 = vld [vmem:[%s1974_s19 + $0x240] ss:$24 sps:$4 sm:$0xff]   ;;  %v1734_v45 = vld [vmem:[%s1974_s19 + $0x274] ss:$24 sps:$4 sm:$0xff]  }
  0x36   : > { %986 = vmatpush1.bf16.msra.mxu0 %v1706_v10  ;;  %v1788_v43 = vld [vmem:[%s1974_s19 + $0x15c] ss:$24 sps:$4 sm:$0xff]   ;;  %v1790_v46 = vld [vmem:[%s1974_s19 + $0x158] ss:$24 sps:$4 sm:$0xff]   ;;  %v1794_v47 = vld [vmem:[%s1974_s19 + $0x18c] ss:$24 sps:$4 sm:$0xff]  }
  0x37   : > { %987 = vmatprep.subr.bf16.mxu0 %v1707_v11  ;;  %1027 = vmatpush1.bf16.msra.mxu1 %v1760_v26  ;;  %v1736_v48 = vld [vmem:[%s1974_s19 + $0x270] ss:$24 sps:$4 sm:$0xff]   ;;  %v1737_v49 = vld [vmem:[%s1974_s19 + $0x2a4] ss:$24 sps:$4 sm:$0xff]   ;;  %v1739_v52 = vld [vmem:[%s1974_s19 + $0x2a0] ss:$24 sps:$4 sm:$0xff]  }
  0x38   : > { %1028 = vmatprep.subr.bf16.mxu1 %v1764_v28  ;;  %v1796_v50 = vld [vmem:[%s1974_s19 + $0x188] ss:$24 sps:$4 sm:$0xff]   ;;  %v1800_v51 = vld [vmem:[%s1974_s19 + $0x1bc] ss:$24 sps:$4 sm:$0xff]   ;;  %v1802_v54 = vld [vmem:[%s1974_s19 + $0x1b8] ss:$24 sps:$4 sm:$0xff]  }
  0x39   : > { %v1740_v53 = vld [vmem:[%s1974_s19 + $0x2d4] ss:$24 sps:$4 sm:$0xff]   ;;  %v1742_v56 = vld [vmem:[%s1974_s19 + $0x2d0] ss:$24 sps:$4 sm:$0xff]   ;;  %v1757_v62 = vld [vmem:[%s1974_s19 + $0x44] ss:$24 sps:$4 sm:$0xff]  }
  0x3a   : > { %988 = vmatpush1.bf16.msra.mxu0 %v1709_v12  ;;  %v1806_v55 = vld [vmem:[%s1974_s19 + $0x1ec] ss:$24 sps:$4 sm:$0xff]   ;;  %v1808_v58 = vld [vmem:[%s1974_s19 + $0x1e8] ss:$24 sps:$4 sm:$0xff]   ;;  %v1812_v60 = vld [vmem:[%s1974_s19 + $0x21c] ss:$24 sps:$4 sm:$0xff]  }
  0x3b   : > { %989 = vmatprep.subr.bf16.mxu0 %v1710_v13  ;;  %1029 = vmatpush1.bf16.msra.mxu1 %v1766_v30  ;;  %v1751_v57 = vld [vmem:[%s1974_s19 + $0x14] ss:$24 sps:$4 sm:$0xff]   ;;  %v2041_v59 = vld [vmem:[%s300_s20] ss:$8 sps:$4 sm:$0xff]   ;;  %v1769_v6 = vld [vmem:[%s1974_s19 + $0xa4] ss:$24 sps:$4 sm:$0xff]  }
  0x3c   : > { %1030 = vmatprep.subr.bf16.mxu1 %v1770_v31  ;;  %v1749_v61 = vld [vmem:[%s1974_s19 + $0x10] ss:$24 sps:$4 sm:$0xff]   ;;  %v1818_v0 = vld [vmem:[%s1974_s19 + $0x24c] ss:$24 sps:$4 sm:$0xff]   ;;  %v1755_v1 = vld [vmem:[%s1974_s19 + $0x40] ss:$24 sps:$4 sm:$0xff]  }
  0x3d   : > { %v1814_v63 = vld [vmem:[%s1974_s19 + $0x218] ss:$24 sps:$4 sm:$0xff]   ;;  %v1763_v2 = vld [vmem:[%s1974_s19 + $0x74] ss:$24 sps:$4 sm:$0xff]   ;;  %v1820_v3 = vld [vmem:[%s1974_s19 + $0x248] ss:$24 sps:$4 sm:$0xff]  }
  0x3e   : > { %990 = vmatpush1.bf16.msra.mxu0 %v1712_v14  ;;  %v1824_v4 = vld [vmem:[%s1974_s19 + $0x27c] ss:$24 sps:$4 sm:$0xff]   ;;  %v1761_v5 = vld [vmem:[%s1974_s19 + $0x70] ss:$24 sps:$4 sm:$0xff]   ;;  %v1830_v8 = vld [vmem:[%s1974_s19 + $0x2ac] ss:$24 sps:$4 sm:$0xff]  }
  0x3f   : > { %991 = vmatprep.subr.bf16.mxu0 %v1713_v15  ;;  %1031 = vmatpush1.bf16.msra.mxu1 %v1772_v34  ;;  %v1826_v7 = vld [vmem:[%s1974_s19 + $0x278] ss:$24 sps:$4 sm:$0xff]   ;;  %v1775_v10 = vld [vmem:[%s1974_s19 + $0xd4] ss:$24 sps:$4 sm:$0xff]   ;;  %v1832_v11 = vld [vmem:[%s1974_s19 + $0x2a8] ss:$24 sps:$4 sm:$0xff]  }
  0x40   : > { %1032 = vmatprep.subr.bf16.mxu1 %v1776_v35  ;;  %v1767_v9 = vld [vmem:[%s1974_s19 + $0xa0] ss:$24 sps:$4 sm:$0xff]   ;;  %v1836_v12 = vld [vmem:[%s1974_s19 + $0x2dc] ss:$24 sps:$4 sm:$0xff]   ;;  %v1773_v13 = vld [vmem:[%s1974_s19 + $0xd0] ss:$24 sps:$4 sm:$0xff]  }
  0x41   : > { %v1781_v14 = vld [vmem:[%s1974_s19 + $0x104] ss:$24 sps:$4 sm:$0xff]   ;;  %v1838_v15 = vld [vmem:[%s1974_s19 + $0x2d8] ss:$24 sps:$4 sm:$0xff]   ;;  %v1787_v17 = vld [vmem:[%s1974_s19 + $0x134] ss:$24 sps:$4 sm:$0xff]  }
  0x42   : > { %992 = vmatpush1.bf16.msra.mxu0 %v1715_v18  ;;  %v1779_v16 = vld [vmem:[%s1974_s19 + $0x100] ss:$24 sps:$4 sm:$0xff]   ;;  %v1785_v18 = vld [vmem:[%s1974_s19 + $0x130] ss:$24 sps:$4 sm:$0xff]   ;;  %v1799_v21 = vld [vmem:[%s1974_s19 + $0x194] ss:$24 sps:$4 sm:$0xff]  }
  0x43   : > { %993 = vmatprep.subr.bf16.mxu0 %v1716_v20  ;;  %1033 = vmatpush1.bf16.msra.mxu1 %v1778_v38  ;;  %v1791_v20 = vld [vmem:[%s1974_s19 + $0x160] ss:$24 sps:$4 sm:$0xff]   ;;  %v1797_v22 = vld [vmem:[%s1974_s19 + $0x190] ss:$24 sps:$4 sm:$0xff]   ;;  %v1811_v25 = vld [vmem:[%s1974_s19 + $0x1f4] ss:$24 sps:$4 sm:$0xff]  }
  0x44   : > { %1034 = vmatprep.subr.bf16.mxu1 %v1782_v39  ;;  %v1809_v26 = vld [vmem:[%s1974_s19 + $0x1f0] ss:$24 sps:$4 sm:$0xff]   ;;  %v1815_v28 = vld [vmem:[%s1974_s19 + $0x220] ss:$24 sps:$4 sm:$0xff]   ;;  %v1829_v31 = vld [vmem:[%s1974_s19 + $0x284] ss:$24 sps:$4 sm:$0xff]  }
  0x45   : > { %v1821_v30 = vld [vmem:[%s1974_s19 + $0x250] ss:$24 sps:$4 sm:$0xff]   ;;  %v1841_v35 = vld [vmem:[%s1974_s19 + $0x2e4] ss:$24 sps:$4 sm:$0xff]   ;;  %p1635_p11 = scmp.ne.s32.totalorder %s1876_s23, 2 }
  0x46   : > { %994 = vmatpush1.bf16.msra.mxu0 %v1718_v23  ;;  %v1805_v23 = vld [vmem:[%s1974_s19 + $0x1c4] ss:$24 sps:$4 sm:$0xff]   ;;  %v1833_v34 = vld [vmem:[%s1974_s19 + $0x2b0] ss:$24 sps:$4 sm:$0xff]  }
  0x47   : > { %995 = vmatprep.subr.bf16.mxu0 %v1719_v24  ;;  %1035 = vmatpush1.bf16.msra.mxu1 %v1784_v42  ;;  %v1803_v24 = vld [vmem:[%s1974_s19 + $0x1c0] ss:$24 sps:$4 sm:$0xff]   ;;  %v380_v38 = vld [vmem:[#allocation2 + $0x8] sm:$0xff] }
  0x48   : > { %1036 = vmatprep.subr.bf16.mxu1 %v1788_v43  ;;  %v386_v43 = vld [vmem:[#allocation2 + $0x38] sm:$0xff] }
  0x4a   : > { %996 = vmatpush1.bf16.msra.mxu0 %v1721_v27  ;;  %v1817_v27 = vld [vmem:[%s1974_s19 + $0x224] ss:$24 sps:$4 sm:$0xff]  }
  0x4b   : > { %997 = vmatprep.subr.bf16.mxu0 %v1722_v29  ;;  %1037 = vmatpush1.bf16.msra.mxu1 %v1790_v46  ;;  %v1823_v29 = vld [vmem:[%s1974_s19 + $0x254] ss:$24 sps:$4 sm:$0xff]  }
  0x4c   : > { %1038 = vmatprep.subr.bf16.mxu1 %v1794_v47 }
  0x4e   : > { %998 = vmatpush1.bf16.msra.mxu0 %v1724_v32  ;;  %v1827_v32 = vld [vmem:[%s1974_s19 + $0x280] ss:$24 sps:$4 sm:$0xff]  }
  0x4f   : > { %999 = vmatprep.subr.bf16.mxu0 %v1725_v33  ;;  %1039 = vmatpush1.bf16.msra.mxu1 %v1796_v50  ;;  %v1835_v33 = vld [vmem:[%s1974_s19 + $0x2b4] ss:$24 sps:$4 sm:$0xff]   ;;  %v382_v50 = vld [vmem:[#allocation2 + $0x18] sm:$0xff] }
  0x50   : > { %1040 = vmatprep.subr.bf16.mxu1 %v1800_v51 }
  0x52   : > { %1000 = vmatpush1.bf16.msra.mxu0 %v1727_v36  ;;  %v1839_v36 = vld [vmem:[%s1974_s19 + $0x2e0] ss:$24 sps:$4 sm:$0xff]  }
  0x53   : > { %1001 = vmatprep.subr.bf16.mxu0 %v1728_v37  ;;  %1041 = vmatpush1.bf16.msra.mxu1 %v1802_v54  ;;  %v379_v37 = vld [vmem:[#allocation2] sm:$0xff] }
  0x54   : > { %1042 = vmatprep.subr.bf16.mxu1 %v1806_v55  ;;  %v388_v55 = vld [vmem:[#allocation2 + $0x48] sm:$0xff] }
  0x56   : > { %1002 = vmatpush1.bf16.msra.mxu0 %v1730_v40  ;;  %v385_v40 = vld [vmem:[#allocation2 + $0x30] sm:$0xff] }
  0x57   : > { %1003 = vmatprep.subr.bf16.mxu0 %v1731_v41  ;;  %1043 = vmatpush1.bf16.msra.mxu1 %v1808_v58 }
  0x58   : > { %1044 = vmatprep.subr.bf16.mxu1 %v1812_v60 }
  0x5a   : > { %1004 = vmatpush1.bf16.msra.mxu0 %v1733_v44 }
  0x5b   : > { %1005 = vmatprep.subr.bf16.mxu0 %v1734_v45  ;;  %1045 = vmatpush1.bf16.msra.mxu1 %v1814_v63 }
  0x5c   : > { %1046 = vmatprep.subr.bf16.mxu1 %v1818_v0  ;;  %v389_v0 = vld [vmem:[#allocation2 + $0x50] sm:$0xff] }
  0x5e   : > { %1006 = vmatpush1.bf16.msra.mxu0 %v1736_v48 }
  0x5f   : > { %1007 = vmatprep.subr.bf16.mxu0 %v1737_v49  ;;  %1047 = vmatpush1.bf16.msra.mxu1 %v1820_v3  ;;  %v381_v49 = vld [vmem:[#allocation2 + $0x10] sm:$0xff]  ;;  %v390_v3 = vld [vmem:[#allocation2 + $0x58] sm:$0xff] }
  0x60   : > { %1048 = vmatprep.subr.bf16.mxu1 %v1824_v4 }
  0x62   : > { %1008 = vmatpush1.bf16.msra.mxu0 %v1739_v52  ;;  %v387_v52 = vld [vmem:[#allocation2 + $0x40] sm:$0xff] }
  0x63   : > { %1009 = vmatprep.subr.bf16.mxu0 %v1740_v53  ;;  %1049 = vmatpush1.bf16.msra.mxu1 %v1826_v7 }
  0x64   : > { %1050 = vmatprep.subr.bf16.mxu1 %v1830_v8 }
  0x66   : > { %1010 = vmatpush1.bf16.msra.mxu0 %v1742_v56 }
  0x67   : > { %1065 = vmatprep.subr.bf16.mxu0 %v1751_v57  ;;  %1051 = vmatpush1.bf16.msra.mxu1 %v1832_v11  ;;  %v1192_v11 = vld [vmem:[%s2207_s3] sm:$0xff] (!%p1635_p11) }
  0x68   : > { %1052 = vmatprep.subr.bf16.mxu1 %v1836_v12  ;;  %v1193_v12 = vld [vmem:[%s2207_s3 + $0x8] sm:$0xff] (!%p1635_p11) }
  0x69   : > { %1012 = vmatmul.mubr.bf16.vlgmr.msra.gmra.mrb[0].mxu0 %v2041_v59 }
  0x6a   : > { %1066 = vmatpush1.bf16.msra.mxu0 %v1749_v61  ;;  %1097 = vmatprep.mubr.bf16.mxu0 %v1996_v19  ;;  %v1793_v19 = vld [vmem:[%s1974_s19 + $0x164] ss:$24 sps:$4 sm:$0xff]  }
  0x6b   : > { %1067 = vmatprep.subr.bf16.mxu0 %v1757_v62  ;;  %1053 = vmatpush1.bf16.msra.mxu1 %v1838_v15  ;;  %v383_v61 = vld [vmem:[#allocation2 + $0x20] sm:$0xff]  ;;  %v384_v62 = vld [vmem:[#allocation2 + $0x28] sm:$0xff] }
  0x6e   : > { %1068 = vmatpush1.bf16.msra.mxu0 %v1755_v1  ;;  %1055 = vmatmul.mubr.bf16.vlgmr.msra.gmra.mrb[0].mxu1 %v2041_v59 }
  0x6f   : > { %1069 = vmatprep.subr.bf16.mxu0 %v1763_v2 }
  0x72   : > { %1070 = vmatpush1.bf16.msra.mxu0 %v1761_v5 }
  0x73   : > { %1071 = vmatprep.subr.bf16.mxu0 %v1769_v6 }
  0x76   : > { %1072 = vmatpush1.bf16.msra.mxu0 %v1767_v9  ;;  %v1150_v9 = vlaneseq (!%p1635_p11) }
  0x77   : > { %1073 = vmatprep.subr.bf16.mxu0 %v1775_v10 }
  0x78   : > { %v1151_v10 = vshrl.u32 (!%p1635_p11), %v1150_v9, 7 }
  0x7a   : > { %1074 = vmatpush1.bf16.msra.mxu0 %v1773_v13  ;;  %v1148_v13 = vld [vmem:[%s2206_s2] sm:$0x3f] (!%p1635_p11) }
  0x7b   : > { %1075 = vmatprep.subr.bf16.mxu0 %v1781_v14  ;;  %v1198_v14 = vunpack.c.l.bf16 (!%p1635_p11), %v1192_v11 }
  0x7e   : > { %1076 = vmatpush1.bf16.msra.mxu0 %v1779_v16  ;;  %v2098_v16 = vsub.s32 (!%p1635_p11), 0, %v1151_v10 }
  0x7f   : > { %1077 = vmatprep.subr.bf16.mxu0 %v1787_v17  ;;  %v2100_v17 = vsub.s32 (!%p1635_p11), 1, %v1151_v10 }
  0x82   : > { %1078 = vmatpush1.bf16.msra.mxu0 %v1785_v18  ;;  %v2102_v18 = vsub.s32 (!%p1635_p11), 2, %v1151_v10 }
  0x83   : > { %1079 = vmatprep.subr.bf16.mxu0 %v1793_v19  ;;  %v2104_v19 = vsub.s32 (!%p1635_p11), 3, %v1151_v10 }
  0x86   : > { %1080 = vmatpush1.bf16.msra.mxu0 %v1791_v20 }
  0x87   : > { %1081 = vmatprep.subr.bf16.mxu0 %v1799_v21 }
  0x8a   : > { %1082 = vmatpush1.bf16.msra.mxu0 %v1797_v22 }
  0x8b   : > { %1083 = vmatprep.subr.bf16.mxu0 %v1805_v23  ;;  %v2106_v23 = vsub.s32 (!%p1635_p11), 4, %v1151_v10 }
  0x8e   : > { %1084 = vmatpush1.bf16.msra.mxu0 %v1803_v24  ;;  %v2108_v24 = vsub.s32 (!%p1635_p11), 5, %v1151_v10 }
  0x8f   : > { %1085 = vmatprep.subr.bf16.mxu0 %v1811_v25  ;;  %v1199_v25 = vunpack.c.h.bf16 (!%p1635_p11), %v1192_v11 }
  0x92   : > { %1086 = vmatpush1.bf16.msra.mxu0 %v1809_v26  ;;  %v1200_v26 = vunpack.c.l.bf16 (!%p1635_p11), %v1193_v12 }
  0x93   : > { %1087 = vmatprep.subr.bf16.mxu0 %v1817_v27  ;;  %v1153_v27 = vrot.slane (!%p1635_p11), %v1148_v13, %v2098_v16 }
  0x96   : > { %1088 = vmatpush1.bf16.msra.mxu0 %v1815_v28  ;;  %v1157_v28 = vrot.slane (!%p1635_p11), %v1148_v13, %v2100_v17 }
  0x97   : > { %1089 = vmatprep.subr.bf16.mxu0 %v1823_v29  ;;  %v1161_v29 = vrot.slane (!%p1635_p11), %v1148_v13, %v2102_v18 }
  0x9a   : > { %1090 = vmatpush1.bf16.msra.mxu0 %v1821_v30  ;;  %v1165_v30 = vrot.slane (!%p1635_p11), %v1148_v13, %v2104_v19 }
  0x9b   : > { %1091 = vmatprep.subr.bf16.mxu0 %v1829_v31  ;;  %v1194_v31 = vld [vmem:[%s2207_s3 + $0x10] sm:$0xff] (!%p1635_p11) }
  0x9e   : > { %1092 = vmatpush1.bf16.msra.mxu0 %v1827_v32 }
  0x9f   : > { %1093 = vmatprep.subr.bf16.mxu0 %v1835_v33  ;;  %v1169_v33 = vrot.slane (!%p1635_p11), %v1148_v13, %v2106_v23 }
  0xa2   : > { %1094 = vmatpush1.bf16.msra.mxu0 %v1833_v34  ;;  %v1173_v34 = vrot.slane (!%p1635_p11), %v1148_v13, %v2108_v24 }
  0xa3   : > { %1095 = vmatprep.subr.bf16.mxu0 %v1841_v35  ;;  %v1201_v35 = vunpack.c.h.bf16 (!%p1635_p11), %v1193_v12 }
  0xa6   : > { %1096 = vmatpush1.bf16.msra.mxu0 %v1839_v36 }
  0xa9   : > { %1098 = vmatmul.mubr.bf16.vlgmr.msra.gmra.mrb[4].mxu0 %v2041_v59 }
 0x13c   : > { %v1013_v39 = vpop.f32.mrb[0].mxu0 }
 0x13d   : > { %v1108_v41 = vadd.f32 %v1013_v39, %v379_v37  ;;  %v1015_v42 = vpop.f32.mrb[1].mxu0 }
 0x13e   : > { %v1109_v44 = vadd.f32 %v1015_v42, %v380_v38  ;;  %v1017_v45 = vpop.f32.mrb[2].mxu0 }
 0x13f   : > { %1120 = vst [vmem:[#allocation2] sm:$0xff] %v1108_v41  ;;  %v1114_v46 = vadd.f32 %v1017_v45, %v385_v40  ;;  %v1019_v47 = vpop.f32.mrb[3].mxu0  ;;  %v1202_v41 = vunpack.c.l.bf16 (!%p1635_p11), %v1194_v31 }
 0x140   : > { %1121 = vst [vmem:[#allocation2 + $0x8] sm:$0xff] %v1109_v44  ;;  %v1115_v48 = vadd.f32 %v1019_v47, %v386_v43 }
 0x141   : > { %1126 = vst [vmem:[#allocation2 + $0x30] sm:$0xff] %v1114_v46  ;;  %v1056_v51 = vpop.f32.mrb[0].mxu1 }
 0x142   : > { %1127 = vst [vmem:[#allocation2 + $0x38] sm:$0xff] %v1115_v48  ;;  %v1110_v53 = vadd.f32 %v1056_v51, %v381_v49  ;;  %v1058_v54 = vpop.f32.mrb[1].mxu1 }
 0x143   : > { %v1111_v56 = vadd.f32 %v1058_v54, %v382_v50  ;;  %v1060_v57 = vpop.f32.mrb[2].mxu1  ;;  %v1203_v50 = vunpack.c.h.bf16 (!%p1635_p11), %v1194_v31  ;;  %v1195_v54 = vld [vmem:[%s2207_s3 + $0x18] sm:$0xff] (!%p1635_p11) }
 0x144   : > { %1122 = vst [vmem:[#allocation2 + $0x10] sm:$0xff] %v1110_v53  ;;  %v1116_v58 = vadd.f32 %v1060_v57, %v387_v52  ;;  %v1062_v59 = vpop.f32.mrb[3].mxu1 }
 0x145   : > { %1123 = vst [vmem:[#allocation2 + $0x18] sm:$0xff] %v1111_v56  ;;  %v1117_v60 = vadd.f32 %v1062_v59, %v388_v55  ;;  %v1196_v56 = vld [vmem:[%s2207_s3 + $0x20] sm:$0xff] (!%p1635_p11) }
 0x146   : > { %1128 = vst [vmem:[#allocation2 + $0x40] sm:$0xff] %v1116_v58  ;;  %v1136_v15 = vld [vmem:[#allocation2] sm:$0xff] (!%p1635_p11) }
 0x147   : > { %1129 = vst [vmem:[#allocation2 + $0x48] sm:$0xff] %v1117_v60  ;;  %v1137_v20 = vld [vmem:[#allocation2 + $0x8] sm:$0xff] (!%p1635_p11)  ;;  %v1180_v36 = vadd.f32 (!%p1635_p11), %v1153_v27, %v1136_v15 }
 0x148   : > { %v1181_v37 = vadd.f32 (!%p1635_p11), %v1157_v28, %v1137_v20  ;;  %v1142_v46 = vld [vmem:[#allocation2 + $0x30] sm:$0xff] (!%p1635_p11) }
 0x149   : > { %v1210_v43 = vadd.f32 (!%p1635_p11), %v1198_v14, %v1180_v36  ;;  %v1143_v47 = vld [vmem:[#allocation2 + $0x38] sm:$0xff] (!%p1635_p11)  ;;  %v1186_v55 = vadd.f32 (!%p1635_p11), %v1153_v27, %v1142_v46 }
 0x14a   : > { %v1211_v44 = vadd.f32 (!%p1635_p11), %v1199_v25, %v1181_v37  ;;  %v1187_v60 = vadd.f32 (!%p1635_p11), %v1157_v28, %v1143_v47 }
 0x14b   : > { %v1138_v21 = vld [vmem:[#allocation2 + $0x10] sm:$0xff] (!%p1635_p11) }
 0x14c   : > { %v1139_v22 = vld [vmem:[#allocation2 + $0x18] sm:$0xff] (!%p1635_p11)  ;;  %v1182_v38 = vadd.f32 (!%p1635_p11), %v1161_v29, %v1138_v21  ;;  %v1222_v52 = vadd.f32 (!%p1635_p11), %v1211_v44, %v1210_v43 }
 0x14d   : > { %v1183_v39 = vadd.f32 (!%p1635_p11), %v1165_v30, %v1139_v22  ;;  %v1144_v48 = vld [vmem:[#allocation2 + $0x40] sm:$0xff] (!%p1635_p11) }
 0x14e   : > { %v1212_v45 = vadd.f32 (!%p1635_p11), %v1200_v26, %v1182_v38  ;;  %v1145_v53 = vld [vmem:[#allocation2 + $0x48] sm:$0xff] (!%p1635_p11) }
 0x14f   : > { %v1213_v51 = vadd.f32 (!%p1635_p11), %v1201_v35, %v1183_v39 }
 0x150   : > { %v1223_v58 = vadd.f32 (!%p1635_p11), %v1222_v52, %v1212_v45 }
 0x17c   : > { %v1099_v63 = vpop.f32.mrb[4].mxu0  ;;  %1135 = sbr.rel (%p1635_p11) target bundleno = 730 (0x2da), region = 90 }
 0x17d   : > { %v1112_v1 = vadd.f32 %v1099_v63, %v383_v61  ;;  %v1101_v2 = vpop.f32.mrb[5].mxu0  ;;  %v1188_v61 = vadd.f32 (!%p1635_p11), %v1161_v29, %v1144_v48  ;;  %v1189_v63 = vadd.f32 (!%p1635_p11), %v1165_v30, %v1145_v53 }
 0x17e   : > { %v1113_v4 = vadd.f32 %v1101_v2, %v384_v62  ;;  %v1103_v5 = vpop.f32.mrb[6].mxu0  ;;  %v1197_v62 = vld [vmem:[%s2207_s3 + $0x28] sm:$0xff] (!%p1635_p11) }
 0x17f   : > { %1124 = vst [vmem:[#allocation2 + $0x20] sm:$0xff] %v1112_v1  ;;  %v1118_v6 = vadd.f32 %v1103_v5, %v389_v0  ;;  %v1105_v7 = vpop.f32.mrb[7].mxu0  ;;  %v1204_v0 = vunpack.c.l.bf16 (!%p1635_p11), %v1195_v54  ;;  %v1205_v1 = vunpack.c.h.bf16 (!%p1635_p11), %v1195_v54  ;;  %v1206_v5 = vunpack.c.l.bf16 (!%p1635_p11), %v1196_v56 }
 0x180   : > { %1125 = vst [vmem:[#allocation2 + $0x28] sm:$0xff] %v1113_v4  ;;  %v1119_v8 = vadd.f32 %v1105_v7, %v390_v3  ;;  %v1224_v3 = vadd.f32 (!%p1635_p11), %v1223_v58, %v1213_v51  ;;  %v1209_v14 = vunpack.c.h.bf16 (!%p1635_p11), %v1197_v62 }
 0x181   : > { %1130 = vst [vmem:[#allocation2 + $0x50] sm:$0xff] %v1118_v6  ;;  %v1207_v6 = vunpack.c.h.bf16 (!%p1635_p11), %v1196_v56  ;;  %v1216_v9 = vadd.f32 (!%p1635_p11), %v1204_v0, %v1186_v55  ;;  %v1217_v10 = vadd.f32 (!%p1635_p11), %v1205_v1, %v1187_v60  ;;  %v1218_v12 = vadd.f32 (!%p1635_p11), %v1206_v5, %v1188_v61 }
 0x182   : > { %1131 = vst [vmem:[#allocation2 + $0x58] sm:$0xff] %v1119_v8  ;;  %v1208_v8 = vunpack.c.l.bf16 (!%p1635_p11), %v1197_v62 }
 0x183   : > { %v1219_v15 = vadd.f32 %v1207_v6, %v1189_v63  ;;  %v1229_v20 = vadd.f32 %v1217_v10, %v1216_v9 }
 0x185   : > { %v1230_v25 = vadd.f32 %v1229_v20, %v1218_v12 }
 0x186   : > { %v1140_v32 = vld [vmem:[#allocation2 + $0x20] sm:$0xff] }
 0x187   : > { %v1141_v40 = vld [vmem:[#allocation2 + $0x28] sm:$0xff]  ;;  %v1184_v42 = vadd.f32 %v1169_v33, %v1140_v32  ;;  %v1231_v27 = vadd.f32 %v1230_v25, %v1219_v15 }
 0x188   : > { %v1185_v49 = vadd.f32 %v1173_v34, %v1141_v40  ;;  %v1146_v59 = vld [vmem:[#allocation2 + $0x50] sm:$0xff] }
 0x189   : > { %v1214_v57 = vadd.f32 %v1202_v41, %v1184_v42  ;;  %v1147_v4 = vld [vmem:[#allocation2 + $0x58] sm:$0xff]  ;;  %v1190_v7 = vadd.f32 %v1169_v33, %v1146_v59 }
 0x18a   : > { %v1215_v2 = vadd.f32 %v1203_v50, %v1185_v49  ;;  %v1191_v13 = vadd.f32 %v1173_v34, %v1147_v4 }
 0x18b   : > { %v1225_v11 = vadd.f32 %v1224_v3, %v1214_v57  ;;  %v1220_v22 = vadd.f32 %v1208_v8, %v1190_v7 }
 0x18c   : > { %v1221_v26 = vadd.f32 %v1209_v14, %v1191_v13 }
 0x18d   : > { %v1226_v21 = vadd.f32 %v1225_v11, %v1215_v2  ;;  %v1232_v28 = vadd.f32 %v1231_v27, %v1220_v22  ;;  %v1339_v11 = vld [vmem:[%s2209_s5] sm:$0x3f] }
 0x18e   : > { %v1344_v25 = vrot.slane %v1339_v11, %v2098_v16  ;;  %v1352_v27 = vrot.slane %v1339_v11, %v2102_v18 }
 0x18f   : > { %1227 = vadd.xlane.f32.xlu0 %v1226_v21  ;;  %v1233_v29 = vadd.f32 %v1232_v28, %v1221_v26  ;;  %v1356_v28 = vrot.slane %v1339_v11, %v2104_v19 }
 0x193   : > { %1234 = vadd.xlane.f32.xlu0 %v1233_v29 }
 0x21c   : > { %v1228_v30 = vpop.xlane.xlu0 %1227 }
 0x21d   : > { %v1237_v31 = vmul.f32 0.0013020834, %v1228_v30 }
 0x21f   : > { %v1239_v32 = vsub.f32 %v1210_v43, %v1237_v31  ;;  %v1240_v33 = vsub.f32 %v1211_v44, %v1237_v31  ;;  %v1241_v35 = vsub.f32 %v1212_v45, %v1237_v31  ;;  %v1242_v36 = vsub.f32 %v1213_v51, %v1237_v31 }
 0x220   : > { %v1235_v38 = vpop.xlane.xlu0 %1234  ;;  %v1243_v39 = vsub.f32 %v1214_v57, %v1237_v31  ;;  %v1244_v46 = vsub.f32 %v1215_v2, %v1237_v31 }
 0x221   : > { %v1251_v37 = vmul.f32 %v1239_v32, %v1239_v32  ;;  %v1252_v34 = vmul.f32 %v1240_v33, %v1240_v33  ;;  %v1253_v40 = vmul.f32 %v1241_v35, %v1241_v35  ;;  %v1238_v42 = vmul.f32 0.0013020834, %v1235_v38 }
 0x222   : > { %v1254_v47 = vmul.f32 %v1242_v36, %v1242_v36  ;;  %v1255_v43 = vmul.f32 %v1243_v39, %v1243_v39  ;;  %v1256_v54 = vmul.f32 %v1244_v46, %v1244_v46  ;;  %v1364_v38 = vrot.slane %v1339_v11, %v2108_v24 }
 0x223   : > { %v1263_v41 = vadd.f32 %v1252_v34, %v1251_v37  ;;  %v2128_v49 = vsub.f32 %v1216_v9, %v1238_v42  ;;  %v2130_v50 = vsub.f32 %v1217_v10, %v1238_v42  ;;  %v2132_v52 = vsub.f32 %v1218_v12, %v1238_v42  ;;  %v1295_v9 = vld [vmem:[%s2208_s4] sm:$0x3f] }
 0x224   : > { %v2134_v45 = vsub.f32 %v1219_v15, %v1238_v42  ;;  %v2140_v56 = vsub.f32 %v1220_v22, %v1238_v42  ;;  %v1250_v60 = vsub.f32 %v1221_v26, %v1238_v42  ;;  %v1300_v12 = vrot.slane %v1295_v9, %v2098_v16 }
 0x225   : > { %v1264_v48 = vadd.f32 %v1263_v41, %v1253_v40  ;;  %v1257_v51 = vmul.f32 %v2128_v49, %v2128_v49  ;;  %v1258_v53 = vmul.f32 %v2130_v50, %v2130_v50  ;;  %v1259_v57 = vmul.f32 %v2132_v52, %v2132_v52 }
 0x226   : > { %v1260_v61 = vmul.f32 %v2134_v45, %v2134_v45  ;;  %v1261_v63 = vmul.f32 %v2140_v56, %v2140_v56  ;;  %v1262_v1 = vmul.f32 %v1250_v60, %v1250_v60  ;;  %v1304_v13 = vrot.slane %v1295_v9, %v2100_v17 }
 0x227   : > { %v1265_v44 = vadd.f32 %v1264_v48, %v1254_v47  ;;  %v1270_v58 = vadd.f32 %v1258_v53, %v1257_v51  ;;  %v1308_v14 = vrot.slane %v1295_v9, %v2102_v18  ;;  %v1312_v15 = vrot.slane %v1295_v9, %v2104_v19 }
 0x228   : > { %v1316_v20 = vrot.slane %v1295_v9, %v2106_v23  ;;  %v1320_v21 = vrot.slane %v1295_v9, %v2108_v24  ;;  %v1348_v26 = vrot.slane %v1339_v11, %v2100_v17  ;;  %v1360_v34 = vrot.slane %v1339_v11, %v2106_v23 }
 0x229   : > { %v1266_v55 = vadd.f32 %v1265_v44, %v1255_v43  ;;  %v1271_v62 = vadd.f32 %v1270_v58, %v1259_v57 }
 0x22b   : > { %v1267_v59 = vadd.f32 %v1266_v55, %v1256_v54  ;;  %v1272_v0 = vadd.f32 %v1271_v62, %v1260_v61 }
 0x22d   : > { %1268 = vadd.xlane.f32.xlu1 %v1267_v59  ;;  %v1273_v2 = vadd.f32 %v1272_v0, %v1261_v63 }
 0x22f   : > { %v1274_v3 = vadd.f32 %v1273_v2, %v1262_v1 }
 0x231   : > { %1275 = vadd.xlane.f32.xlu1 %v1274_v3 }
 0x2ba   : > { %v1269_v4 = vpop.xlane.xlu1 %1268 }
 0x2bb   : > { %v1277_v5 = vmul.f32 0.0013020834, %v1269_v4 }
 0x2bd   : > { %v1279_v6 = vadd.f32 1e-12, %v1277_v5 }
 0x2be   : > { %v1276_v7 = vpop.xlane.xlu1 %1275 }
 0x2bf   : > { %1842 = vrsqrt.f32 %v1279_v6  ;;  %v1278_v8 = vmul.f32 0.0013020834, %v1276_v7 }
 0x2c1   : > { %v1280_v10 = vadd.f32 1e-12, %v1278_v8 }
 0x2c3   : > { %1844 = vrsqrt.f32 %v1280_v10 }
 0x2c9   : > { %v1843_v22 = vpop.eup %1842 }
 0x2ca   : > { %v1283_v29 = vmul.f32 %v1843_v22, %v1239_v32  ;;  %v1284_v30 = vmul.f32 %v1843_v22, %v1240_v33  ;;  %v1285_v31 = vmul.f32 %v1843_v22, %v1241_v35  ;;  %v1286_v37 = vmul.f32 %v1843_v22, %v1242_v36 }
 0x2cb   : > { %v1287_v40 = vmul.f32 %v1843_v22, %v1243_v39  ;;  %v1288_v41 = vmul.f32 %v1843_v22, %v1244_v46 }
 0x2cc   : > { %v1327_v42 = vmul.f32 %v1300_v12, %v1283_v29  ;;  %v1328_v47 = vmul.f32 %v1304_v13, %v1284_v30  ;;  %v1329_v48 = vmul.f32 %v1308_v14, %v1285_v31  ;;  %v1330_v16 = vmul.f32 %v1312_v15, %v1286_v37 }
 0x2cd   : > { %v1331_v43 = vmul.f32 %v1316_v20, %v1287_v40  ;;  %v1332_v17 = vmul.f32 %v1320_v21, %v1288_v41  ;;  %v1845_v35 = vpop.eup %1844 }
 0x2ce   : > { %v1371_v44 = vadd.f32 %v1344_v25, %v1327_v42  ;;  %v1372_v18 = vadd.f32 %v1348_v26, %v1328_v47  ;;  %v1373_v51 = vadd.f32 %v1352_v27, %v1329_v48  ;;  %v1374_v19 = vadd.f32 %v1356_v28, %v1330_v16 }
 0x2cf   : > { %v1375_v32 = vadd.f32 %v1360_v34, %v1331_v43  ;;  %v1376_v33 = vadd.f32 %v1364_v38, %v1332_v17  ;;  %v1289_v24 = vmul.f32 %v1845_v35, %v2128_v49  ;;  %v1290_v39 = vmul.f32 %v1845_v35, %v2130_v50 }
 0x2d0   : > { %v1647_v36 = vpack.c.bf16 %v1372_v18, %v1371_v44  ;;  %v1648_v53 = vpack.c.bf16 %v1374_v19, %v1373_v51  ;;  %v1291_v46 = vmul.f32 %v1845_v35, %v2132_v52  ;;  %v1292_v54 = vmul.f32 %v1845_v35, %v2134_v45 }
 0x2d1   : > { %v1649_v23 = vpack.c.bf16 %v1376_v33, %v1375_v32  ;;  %v1293_v55 = vmul.f32 %v1845_v35, %v2140_v56  ;;  %v1294_v57 = vmul.f32 %v1845_v35, %v1250_v60  ;;  %v1333_v49 = vmul.f32 %v1300_v12, %v1289_v24 }
 0x2d2   : > { %1419 = vst [vmem:[%s2210_s6] sm:$0xff] %v1647_v36  ;;  %1420 = vst [vmem:[%s2210_s6 + $0x8] sm:$0xff] %v1648_v53  ;;  %v1334_v50 = vmul.f32 %v1304_v13, %v1290_v39  ;;  %v1335_v52 = vmul.f32 %v1308_v14, %v1291_v46  ;;  %v1336_v58 = vmul.f32 %v1312_v15, %v1292_v54 }
 0x2d3   : > { %1421 = vst [vmem:[%s2210_s6 + $0x10] sm:$0xff] %v1649_v23  ;;  %v1337_v59 = vmul.f32 %v1316_v20, %v1293_v55  ;;  %v1338_v61 = vmul.f32 %v1320_v21, %v1294_v57  ;;  %v1377_v62 = vadd.f32 %v1344_v25, %v1333_v49 }
 0x2d4   : > { %v1378_v63 = vadd.f32 %v1348_v26, %v1334_v50  ;;  %v1379_v0 = vadd.f32 %v1352_v27, %v1335_v52  ;;  %v1380_v1 = vadd.f32 %v1356_v28, %v1336_v58 }
 0x2d5   : > { %v1381_v2 = vadd.f32 %v1360_v34, %v1337_v59  ;;  %v1382_v3 = vadd.f32 %v1364_v38, %v1338_v61 }
 0x2d6   : > { %v1650_v45 = vpack.c.bf16 %v1378_v63, %v1377_v62  ;;  %v1651_v4 = vpack.c.bf16 %v1380_v1, %v1379_v0 }
 0x2d7   : > { %v1652_v56 = vpack.c.bf16 %v1382_v3, %v1381_v2 }
 0x2d8   : > { %1422 = vst [vmem:[%s2210_s6 + $0x18] sm:$0xff] %v1650_v45  ;;  %1423 = vst [vmem:[%s2210_s6 + $0x20] sm:$0xff] %v1651_v4 }
 0x2d9   : > { %1424 = vst [vmem:[%s2210_s6 + $0x28] sm:$0xff] %v1652_v56 }
 0x2da PF: > { %s16_s25 = sadd.s32 1, %s1884_s25   ;;  %s2211_s21 = smov %s1872_s22 }
 0x2db   : > { %p13_p12 = scmp.ge.s32.totalorder %s16_s25, 5   ;;  %s2212_s22 = smov %s1957_s29 }
 0x2dc   : > { %s2213_s23 = smov %s1880_s24  ;;  %s2214_s24 = smov %s2216_s26 }
 0x2dd   :  { %15 = sbr.rel (!%p13_p12) target bundleno = 3 (0x3), region = 131 }

// kernel: closed_call.20
= control target key start
LH: loop header
LB: loop body
LE: loop exit
PB: predicated region body
PF: predicated region fallthrough
CT: control target
= control target key end

     0   :  { %s2883_s21 = smov 0   ;;  %s2885_s22 = smov 0   ;;  %s3265_s0 = inlined_call_operand.vmem [shape: bf16[16,3072], index: 0, kind: input, shape index: {}]   ;;  %s3266_s1 = inlined_call_operand.vmem [shape: bf16[3072,768], index: 1, kind: input, shape index: {}]   ;;  %s3267_s2 = inlined_call_operand.vmem [shape: f32[1,768], index: 2, kind: input, shape index: {}]   ;;  %s3268_s3 = inlined_call_operand.vmem [shape: bf16[16,768], index: 3, kind: input, shape index: {}]   ;;  %s3269_s4 = inlined_call_operand.vmem [shape: f32[1,768], index: 4, kind: input, shape index: {}]   ;;  %s3270_s5 = inlined_call_operand.vmem [shape: f32[1,768], index: 5, kind: input, shape index: {}]   ;;  %s3271_s6 = inlined_call_operand.vmem [shape: bf16[16,768], index: 6, kind: output, shape index: {}]  }
   0x1   :  { %s2887_s23 = smov 0   ;;  %s2889_s24 = smov 0  }
   0x2   :  { %s2891_s25 = smov 0  }
   0x3 LB: > { %s25_s26 = sadd.s32 1, %s2841_s24  ;;  %p44_p1 = scmp.ne.s32.totalorder %s2833_s22, %s2829_s21  ;;  %s2845_s25 = sphi %s2891_s25, %s16_s25   ;;  %s2841_s24 = sphi %s2889_s24, %s3275_s24   ;;  %s2837_s23 = sphi %s2887_s23, %s3274_s23   ;;  %s2833_s22 = sphi %s2885_s22, %s3273_s22   ;;  %s2829_s21 = sphi %s2883_s21, %s3272_s21  }
   0x4   : > { %p26_p0 = scmp.ge.s32.totalorder %s25_s26, 6  ;;  %p45_p2 = scmp.eq.s32.totalorder %s2845_s25, 0 }
   0x5   : > { %s37_s28 = sadd.s32 1, %s2833_s22  ;;  %p2232_p5 = scmp.ge.s32.totalorder %s2845_s25, 6 }
   0x6   : > { %s3277_s26 = smov (%p26_p0, %s25_s26), 0  ;;  %p46_p3 = por %p45_p2, %p44_p1 }
   0x7   : > { %s33_s27 = ssub.s32 %s2841_s24, %s3277_s26  ;;  %230 = sbr.rel (%p2232_p5) target bundleno = 21 (0x15), region = 32 }
   0x8   : > { %p35_p4 = scmp.eq.s32.totalorder %s33_s27, 0 }
   0xa   : > { %s2918_s29 = scalar_select %p35_p4, %s2833_s22, %s37_s28  }
   0xe   : > { %233 = sbr.rel (!%p46_p3) target bundleno = 21 (0x15), region = 36  ;;  %s235_s30 = sand.u32 (%p46_p3), 1, %s2833_s22  }
   0xf   : > { %s2448_s7 = sshll.u32 (%p46_p3), %s2841_s24, 4  ;;  %s2233_s8 = sshll.u32 (%p46_p3), %s235_s30, 5 }
  0x10   : > { %s243_s11 = scalar_lea.vmem (%p46_p3), %s3265_s0, %s2448_s7  ;;  %s237_s12 = scalar_lea.vmem (%p46_p3), [#allocation3], %s2233_s8 }
  0x11   : > { %v256_v0 = vld [vmem:[%s243_s11] sm:$0xff] (%p46_p3)  ;;  %v258_v1 = vld [vmem:[%s243_s11 + $0x8] sm:$0xff] (%p46_p3) }
  0x12   : > { %v260_v2 = vld [vmem:[%s243_s11 + $0x60] sm:$0xff] (%p46_p3)  ;;  %257 = vst [vmem:[%s237_s12] sm:$0xff] (%p46_p3), %v256_v0  ;;  %259 = vst [vmem:[%s237_s12 + $0x8] sm:$0xff] (%p46_p3), %v258_v1  ;;  %v262_v3 = vld [vmem:[%s243_s11 + $0x68] sm:$0xff] (%p46_p3) }
  0x13   : > { %261 = vst [vmem:[%s237_s12 + $0x10] sm:$0xff] (%p46_p3), %v260_v2  ;;  %263 = vst [vmem:[%s237_s12 + $0x18] sm:$0xff] (%p46_p3), %v262_v3 }
  0x15 PF: > { %p2236_p6 = scmp.ge.s32.totalorder %s2845_s25, 1  ;;  %p278_p7 = scmp.lt.s32.totalorder %s2845_s25, 7 }
  0x17   : > { %p279_p8 = pnand %p2236_p6, %p278_p7 }
  0x18   : > { %s285_s13 = sand.u32 (!%p279_p8), 1, %s2829_s21   ;;  %s2238_s14 = sshll.u32 (!%p279_p8), %s2837_s23, 6 }
  0x19   : > { %282 = sbr.rel (%p279_p8) target bundleno = 798 (0x31e), region = 63  ;;  %s2237_s15 = sshll.u32 (!%p279_p8), %s285_s13, 5 }
  0x1a   : > { %p330_p9 = scmp.lt.s32.totalorder (!%p279_p8), %s2238_s14, 383  ;;  %s2935_s20 = scalar_lea.vmem (!%p279_p8), [#allocation3], %s2237_s15 }
  0x1b   : > { %p2240_p10 = scmp.ne.s32.totalorder (!%p279_p8), %s2837_s23, 0 }
  0x20   : > { %s3279_s14 = smov (!%p330_p9, %s2238_s14), 383  ;;  %353 = sbr.rel (%p2240_p10) target bundleno = 40 (0x28), region = 71 }
  0x21   : > { %s2467_s16 = smul.u32 24, %s3279_s14  ;;  %v2847_v4 = vmov (!%p2240_p10), 0.0  }
  0x22   : > { %354 = vst [vmem:[#allocation2] sm:$0xff] (!%p2240_p10), %v2847_v4  ;;  %355 = vst [vmem:[#allocation2 + $0x8] sm:$0xff] (!%p2240_p10), %v2847_v4 }
  0x23   : > { %s2933_s19 = scalar_lea.vmem %s3266_s1, %s2467_s16  ;;  %356 = vst [vmem:[#allocation2 + $0x10] sm:$0xff] (!%p2240_p10), %v2847_v4  ;;  %357 = vst [vmem:[#allocation2 + $0x18] sm:$0xff] (!%p2240_p10), %v2847_v4 }
  0x24   : > { %358 = vst [vmem:[#allocation2 + $0x20] sm:$0xff] (!%p2240_p10), %v2847_v4  ;;  %359 = vst [vmem:[#allocation2 + $0x28] sm:$0xff] (!%p2240_p10), %v2847_v4 }
  0x25   : > { %360 = vst [vmem:[#allocation2 + $0x30] sm:$0xff] (!%p2240_p10), %v2847_v4  ;;  %361 = vst [vmem:[#allocation2 + $0x38] sm:$0xff] (!%p2240_p10), %v2847_v4 }
  0x26   : > { %362 = vst [vmem:[#allocation2 + $0x40] sm:$0xff] (!%p2240_p10), %v2847_v4  ;;  %363 = vst [vmem:[#allocation2 + $0x48] sm:$0xff] (!%p2240_p10), %v2847_v4 }
  0x27   : > { %364 = vst [vmem:[#allocation2 + $0x50] sm:$0xff] %v2847_v4  ;;  %365 = vst [vmem:[#allocation2 + $0x58] sm:$0xff] %v2847_v4 }
  0x28 PF: > { %v2509_v5 = vld [vmem:[%s2933_s19 + $0x4] ss:$24 sps:$4 sm:$0xff]   ;;  %v2513_v7 = vld [vmem:[%s2933_s19] ss:$24 sps:$4 sm:$0xff]   ;;  %v2515_v9 = vld [vmem:[%s2933_s19 + $0x34] ss:$24 sps:$4 sm:$0xff]  }
  0x29   : > { %v2511_v6 = vld [vmem:[%s2933_s19 + $0x304] ss:$24 sps:$4 sm:$0xff]   ;;  %1554 = vmatprep.subr.bf16.mxu1 %v2509_v5  ;;  %v2514_v8 = vld [vmem:[%s2933_s19 + $0x300] ss:$24 sps:$4 sm:$0xff]   ;;  %v2517_v10 = vld [vmem:[%s2933_s19 + $0x334] ss:$24 sps:$4 sm:$0xff]  }
  0x2a   : > { %1597 = vmatprep.subr.bf16.mxu0 %v2511_v6  ;;  %1555 = vmatpush1.bf16.msra.mxu1 %v2513_v7  ;;  %v2519_v11 = vld [vmem:[%s2933_s19 + $0x30] ss:$24 sps:$4 sm:$0xff]   ;;  %v2521_v13 = vld [vmem:[%s2933_s19 + $0x64] ss:$24 sps:$4 sm:$0xff]   ;;  %v2525_v15 = vld [vmem:[%s2933_s19 + $0x60] ss:$24 sps:$4 sm:$0xff]  }
  0x2b   : > { %1598 = vmatpush1.bf16.msra.mxu0 %v2514_v8  ;;  %1556 = vmatprep.subr.bf16.mxu1 %v2515_v9  ;;  %v2520_v12 = vld [vmem:[%s2933_s19 + $0x330] ss:$24 sps:$4 sm:$0xff]   ;;  %v2523_v14 = vld [vmem:[%s2933_s19 + $0x364] ss:$24 sps:$4 sm:$0xff]   ;;  %v2526_v16 = vld [vmem:[%s2933_s19 + $0x360] ss:$24 sps:$4 sm:$0xff]  }
  0x2c   : > { %1599 = vmatprep.subr.bf16.mxu0 %v2517_v10  ;;  %v2527_v17 = vld [vmem:[%s2933_s19 + $0x94] ss:$24 sps:$4 sm:$0xff]   ;;  %v2531_v19 = vld [vmem:[%s2933_s19 + $0x90] ss:$24 sps:$4 sm:$0xff]   ;;  %v2533_v21 = vld [vmem:[%s2933_s19 + $0xc4] ss:$24 sps:$4 sm:$0xff]  }
  0x2d   : > { %v2529_v18 = vld [vmem:[%s2933_s19 + $0x394] ss:$24 sps:$4 sm:$0xff]   ;;  %v2532_v20 = vld [vmem:[%s2933_s19 + $0x390] ss:$24 sps:$4 sm:$0xff]   ;;  %v2535_v22 = vld [vmem:[%s2933_s19 + $0x3c4] ss:$24 sps:$4 sm:$0xff]  }
  0x2e   : > { %1557 = vmatpush1.bf16.msra.mxu1 %v2519_v11  ;;  %v2537_v23 = vld [vmem:[%s2933_s19 + $0xc0] ss:$24 sps:$4 sm:$0xff]   ;;  %v2539_v25 = vld [vmem:[%s2933_s19 + $0xf4] ss:$24 sps:$4 sm:$0xff]   ;;  %v2543_v27 = vld [vmem:[%s2933_s19 + $0xf0] ss:$24 sps:$4 sm:$0xff]  }
  0x2f   : > { %1600 = vmatpush1.bf16.msra.mxu0 %v2520_v12  ;;  %1558 = vmatprep.subr.bf16.mxu1 %v2521_v13  ;;  %v2538_v24 = vld [vmem:[%s2933_s19 + $0x3c0] ss:$24 sps:$4 sm:$0xff]   ;;  %v2541_v26 = vld [vmem:[%s2933_s19 + $0x3f4] ss:$24 sps:$4 sm:$0xff]   ;;  %v2544_v28 = vld [vmem:[%s2933_s19 + $0x3f0] ss:$24 sps:$4 sm:$0xff]  }
  0x30   : > { %1601 = vmatprep.subr.bf16.mxu0 %v2523_v14  ;;  %v2545_v29 = vld [vmem:[%s2933_s19 + $0x124] ss:$24 sps:$4 sm:$0xff]   ;;  %v2549_v31 = vld [vmem:[%s2933_s19 + $0x120] ss:$24 sps:$4 sm:$0xff]   ;;  %v2551_v33 = vld [vmem:[%s2933_s19 + $0x154] ss:$24 sps:$4 sm:$0xff]  }
  0x31   : > { %v2547_v30 = vld [vmem:[%s2933_s19 + $0x424] ss:$24 sps:$4 sm:$0xff]   ;;  %v2550_v32 = vld [vmem:[%s2933_s19 + $0x420] ss:$24 sps:$4 sm:$0xff]   ;;  %v2553_v34 = vld [vmem:[%s2933_s19 + $0x454] ss:$24 sps:$4 sm:$0xff]  }
  0x32   : > { %1559 = vmatpush1.bf16.msra.mxu1 %v2525_v15  ;;  %v2555_v35 = vld [vmem:[%s2933_s19 + $0x150] ss:$24 sps:$4 sm:$0xff]   ;;  %v2557_v37 = vld [vmem:[%s2933_s19 + $0x184] ss:$24 sps:$4 sm:$0xff]   ;;  %v2561_v39 = vld [vmem:[%s2933_s19 + $0x180] ss:$24 sps:$4 sm:$0xff]  }
  0x33   : > { %1602 = vmatpush1.bf16.msra.mxu0 %v2526_v16  ;;  %1560 = vmatprep.subr.bf16.mxu1 %v2527_v17  ;;  %v2556_v36 = vld [vmem:[%s2933_s19 + $0x450] ss:$24 sps:$4 sm:$0xff]   ;;  %v2559_v38 = vld [vmem:[%s2933_s19 + $0x484] ss:$24 sps:$4 sm:$0xff]   ;;  %v2562_v40 = vld [vmem:[%s2933_s19 + $0x480] ss:$24 sps:$4 sm:$0xff]  }
  0x34   : > { %1603 = vmatprep.subr.bf16.mxu0 %v2529_v18  ;;  %v2563_v41 = vld [vmem:[%s2933_s19 + $0x1b4] ss:$24 sps:$4 sm:$0xff]   ;;  %v2567_v43 = vld [vmem:[%s2933_s19 + $0x1b0] ss:$24 sps:$4 sm:$0xff]   ;;  %v2569_v45 = vld [vmem:[%s2933_s19 + $0x1e4] ss:$24 sps:$4 sm:$0xff]  }
  0x35   : > { %v2565_v42 = vld [vmem:[%s2933_s19 + $0x4b4] ss:$24 sps:$4 sm:$0xff]   ;;  %v2568_v44 = vld [vmem:[%s2933_s19 + $0x4b0] ss:$24 sps:$4 sm:$0xff]   ;;  %v2571_v46 = vld [vmem:[%s2933_s19 + $0x4e4] ss:$24 sps:$4 sm:$0xff]  }
  0x36   : > { %1561 = vmatpush1.bf16.msra.mxu1 %v2531_v19  ;;  %v2573_v47 = vld [vmem:[%s2933_s19 + $0x1e0] ss:$24 sps:$4 sm:$0xff]   ;;  %v2575_v49 = vld [vmem:[%s2933_s19 + $0x214] ss:$24 sps:$4 sm:$0xff]   ;;  %v2579_v51 = vld [vmem:[%s2933_s19 + $0x210] ss:$24 sps:$4 sm:$0xff]  }
  0x37   : > { %1604 = vmatpush1.bf16.msra.mxu0 %v2532_v20  ;;  %1562 = vmatprep.subr.bf16.mxu1 %v2533_v21  ;;  %v2574_v48 = vld [vmem:[%s2933_s19 + $0x4e0] ss:$24 sps:$4 sm:$0xff]   ;;  %v2577_v50 = vld [vmem:[%s2933_s19 + $0x514] ss:$24 sps:$4 sm:$0xff]   ;;  %v2580_v52 = vld [vmem:[%s2933_s19 + $0x510] ss:$24 sps:$4 sm:$0xff]  }
  0x38   : > { %1605 = vmatprep.subr.bf16.mxu0 %v2535_v22  ;;  %v2605_v53 = vld [vmem:[%s2935_s20 + $0x4] ss:$16 sps:$4 sm:$0xff]   ;;  %v2989_v55 = vld [vmem:[%s2935_s20 + $0xc] ss:$16 sps:$4 sm:$0xff]   ;;  %v2585_v57 = vld [vmem:[%s2933_s19 + $0x240] ss:$24 sps:$4 sm:$0xff]  }
  0x39   : > { %v2581_v54 = vld [vmem:[%s2933_s19 + $0x244] ss:$24 sps:$4 sm:$0xff]   ;;  %1586 = vmatprep.mubr.bf16.mxu1 %v2605_v53  ;;  %1629 = vmatprep.mubr.bf16.mxu0 %v2989_v55  ;;  %v2586_v58 = vld [vmem:[%s2933_s19 + $0x540] ss:$24 sps:$4 sm:$0xff]   ;;  %v2587_v59 = vld [vmem:[%s2933_s19 + $0x274] ss:$24 sps:$4 sm:$0xff]  }
  0x3a   : > { %1563 = vmatpush1.bf16.msra.mxu1 %v2537_v23  ;;  %v2583_v56 = vld [vmem:[%s2933_s19 + $0x544] ss:$24 sps:$4 sm:$0xff]   ;;  %v2589_v60 = vld [vmem:[%s2933_s19 + $0x574] ss:$24 sps:$4 sm:$0xff]   ;;  %v2591_v61 = vld [vmem:[%s2933_s19 + $0x270] ss:$24 sps:$4 sm:$0xff]  }
  0x3b   : > { %1606 = vmatpush1.bf16.msra.mxu0 %v2538_v24  ;;  %1564 = vmatprep.subr.bf16.mxu1 %v2539_v25  ;;  %v2592_v62 = vld [vmem:[%s2933_s19 + $0x570] ss:$24 sps:$4 sm:$0xff]   ;;  %v2593_v63 = vld [vmem:[%s2933_s19 + $0x2a4] ss:$24 sps:$4 sm:$0xff]   ;;  %v2597_v1 = vld [vmem:[%s2933_s19 + $0x2a0] ss:$24 sps:$4 sm:$0xff]  }
  0x3c   : > { %1607 = vmatprep.subr.bf16.mxu0 %v2541_v26  ;;  %v2595_v0 = vld [vmem:[%s2933_s19 + $0x5a4] ss:$24 sps:$4 sm:$0xff]   ;;  %v2598_v2 = vld [vmem:[%s2933_s19 + $0x5a0] ss:$24 sps:$4 sm:$0xff]   ;;  %v2599_v3 = vld [vmem:[%s2933_s19 + $0x2d4] ss:$24 sps:$4 sm:$0xff]  }
  0x3d   : > { %v2601_v4 = vld [vmem:[%s2933_s19 + $0x5d4] ss:$24 sps:$4 sm:$0xff]   ;;  %v2603_v5 = vld [vmem:[%s2933_s19 + $0x2d0] ss:$24 sps:$4 sm:$0xff]   ;;  %v2622_v14 = vld [vmem:[%s2933_s19 + $0x44] ss:$24 sps:$4 sm:$0xff]  }
  0x3e   : > { %1565 = vmatpush1.bf16.msra.mxu1 %v2543_v27  ;;  %v2604_v6 = vld [vmem:[%s2933_s19 + $0x5d0] ss:$24 sps:$4 sm:$0xff]   ;;  %v2613_v7 = vld [vmem:[%s2933_s19 + $0xc] ss:$24 sps:$4 sm:$0xff]   ;;  %v2619_v13 = vld [vmem:[%s2933_s19 + $0x3c] ss:$24 sps:$4 sm:$0xff]  }
  0x3f   : > { %1608 = vmatpush1.bf16.msra.mxu0 %v2544_v28  ;;  %1566 = vmatprep.subr.bf16.mxu1 %v2545_v29  ;;  %v2616_v8 = vld [vmem:[%s2933_s19 + $0x14] ss:$24 sps:$4 sm:$0xff]   ;;  %v3010_v9 = vld [vmem:[%s2935_s20] ss:$16 sps:$4 sm:$0xff]   ;;  %v3013_v10 = vld [vmem:[%s2935_s20 + $0x8] ss:$16 sps:$4 sm:$0xff]  }
  0x40   : > { %1609 = vmatprep.subr.bf16.mxu0 %v2547_v30  ;;  %v2611_v11 = vld [vmem:[%s2933_s19 + $0x8] ss:$24 sps:$4 sm:$0xff]   ;;  %v2617_v15 = vld [vmem:[%s2933_s19 + $0x38] ss:$24 sps:$4 sm:$0xff]   ;;  %v2625_v17 = vld [vmem:[%s2933_s19 + $0x6c] ss:$24 sps:$4 sm:$0xff]  }
  0x41   : > { %v2614_v12 = vld [vmem:[%s2933_s19 + $0x10] ss:$24 sps:$4 sm:$0xff]   ;;  %v2620_v16 = vld [vmem:[%s2933_s19 + $0x40] ss:$24 sps:$4 sm:$0xff]   ;;  %v2628_v18 = vld [vmem:[%s2933_s19 + $0x74] ss:$24 sps:$4 sm:$0xff]  }
  0x42   : > { %1567 = vmatpush1.bf16.msra.mxu1 %v2549_v31  ;;  %v2623_v19 = vld [vmem:[%s2933_s19 + $0x68] ss:$24 sps:$4 sm:$0xff]   ;;  %v2631_v21 = vld [vmem:[%s2933_s19 + $0x9c] ss:$24 sps:$4 sm:$0xff]   ;;  %v2629_v23 = vld [vmem:[%s2933_s19 + $0x98] ss:$24 sps:$4 sm:$0xff]  }
  0x43   : > { %1610 = vmatpush1.bf16.msra.mxu0 %v2550_v32  ;;  %1568 = vmatprep.subr.bf16.mxu1 %v2551_v33  ;;  %v2626_v20 = vld [vmem:[%s2933_s19 + $0x70] ss:$24 sps:$4 sm:$0xff]   ;;  %v2634_v22 = vld [vmem:[%s2933_s19 + $0xa4] ss:$24 sps:$4 sm:$0xff]   ;;  %v2632_v24 = vld [vmem:[%s2933_s19 + $0xa0] ss:$24 sps:$4 sm:$0xff]  }
  0x44   : > { %1611 = vmatprep.subr.bf16.mxu0 %v2553_v34  ;;  %v2637_v25 = vld [vmem:[%s2933_s19 + $0xcc] ss:$24 sps:$4 sm:$0xff]   ;;  %v2635_v27 = vld [vmem:[%s2933_s19 + $0xc8] ss:$24 sps:$4 sm:$0xff]   ;;  %v2643_v29 = vld [vmem:[%s2933_s19 + $0xfc] ss:$24 sps:$4 sm:$0xff]  }
  0x45   : > { %v2640_v26 = vld [vmem:[%s2933_s19 + $0xd4] ss:$24 sps:$4 sm:$0xff]   ;;  %v2638_v28 = vld [vmem:[%s2933_s19 + $0xd0] ss:$24 sps:$4 sm:$0xff]   ;;  %v2646_v30 = vld [vmem:[%s2933_s19 + $0x104] ss:$24 sps:$4 sm:$0xff]  }
  0x46   : > { %1569 = vmatpush1.bf16.msra.mxu1 %v2555_v35  ;;  %v2641_v31 = vld [vmem:[%s2933_s19 + $0xf8] ss:$24 sps:$4 sm:$0xff]   ;;  %v2649_v33 = vld [vmem:[%s2933_s19 + $0x12c] ss:$24 sps:$4 sm:$0xff]   ;;  %v2647_v35 = vld [vmem:[%s2933_s19 + $0x128] ss:$24 sps:$4 sm:$0xff]  }
  0x47   : > { %1612 = vmatpush1.bf16.msra.mxu0 %v2556_v36  ;;  %1570 = vmatprep.subr.bf16.mxu1 %v2557_v37  ;;  %v2644_v32 = vld [vmem:[%s2933_s19 + $0x100] ss:$24 sps:$4 sm:$0xff]   ;;  %v2652_v34 = vld [vmem:[%s2933_s19 + $0x134] ss:$24 sps:$4 sm:$0xff]   ;;  %v2650_v36 = vld [vmem:[%s2933_s19 + $0x130] ss:$24 sps:$4 sm:$0xff]  }
  0x48   : > { %1613 = vmatprep.subr.bf16.mxu0 %v2559_v38  ;;  %v2655_v37 = vld [vmem:[%s2933_s19 + $0x15c] ss:$24 sps:$4 sm:$0xff]   ;;  %p2437_p11 = scmp.ne.s32.totalorder %s2837_s23, 5 }
  0x49   : > { %v2658_v38 = vld [vmem:[%s2933_s19 + $0x164] ss:$24 sps:$4 sm:$0xff]  }
  0x4a   : > { %1571 = vmatpush1.bf16.msra.mxu1 %v2561_v39  ;;  %v2653_v39 = vld [vmem:[%s2933_s19 + $0x158] ss:$24 sps:$4 sm:$0xff]  }
  0x4b   : > { %1614 = vmatpush1.bf16.msra.mxu0 %v2562_v40  ;;  %1572 = vmatprep.subr.bf16.mxu1 %v2563_v41  ;;  %v2656_v40 = vld [vmem:[%s2933_s19 + $0x160] ss:$24 sps:$4 sm:$0xff]   ;;  %v2661_v41 = vld [vmem:[%s2933_s19 + $0x18c] ss:$24 sps:$4 sm:$0xff]  }
  0x4c   : > { %1615 = vmatprep.subr.bf16.mxu0 %v2565_v42  ;;  %v2664_v42 = vld [vmem:[%s2933_s19 + $0x194] ss:$24 sps:$4 sm:$0xff]  }
  0x4e   : > { %1573 = vmatpush1.bf16.msra.mxu1 %v2567_v43  ;;  %v2659_v43 = vld [vmem:[%s2933_s19 + $0x188] ss:$24 sps:$4 sm:$0xff]  }
  0x4f   : > { %1616 = vmatpush1.bf16.msra.mxu0 %v2568_v44  ;;  %1574 = vmatprep.subr.bf16.mxu1 %v2569_v45  ;;  %v2662_v44 = vld [vmem:[%s2933_s19 + $0x190] ss:$24 sps:$4 sm:$0xff]   ;;  %v2667_v45 = vld [vmem:[%s2933_s19 + $0x1bc] ss:$24 sps:$4 sm:$0xff]  }
  0x50   : > { %1617 = vmatprep.subr.bf16.mxu0 %v2571_v46  ;;  %v2670_v46 = vld [vmem:[%s2933_s19 + $0x1c4] ss:$24 sps:$4 sm:$0xff]  }
  0x52   : > { %1575 = vmatpush1.bf16.msra.mxu1 %v2573_v47  ;;  %v2665_v47 = vld [vmem:[%s2933_s19 + $0x1b8] ss:$24 sps:$4 sm:$0xff]  }
  0x53   : > { %1618 = vmatpush1.bf16.msra.mxu0 %v2574_v48  ;;  %1576 = vmatprep.subr.bf16.mxu1 %v2575_v49  ;;  %v2668_v48 = vld [vmem:[%s2933_s19 + $0x1c0] ss:$24 sps:$4 sm:$0xff]   ;;  %v2673_v49 = vld [vmem:[%s2933_s19 + $0x1ec] ss:$24 sps:$4 sm:$0xff]  }
  0x54   : > { %1619 = vmatprep.subr.bf16.mxu0 %v2577_v50  ;;  %v2676_v50 = vld [vmem:[%s2933_s19 + $0x1f4] ss:$24 sps:$4 sm:$0xff]  }
  0x56   : > { %1577 = vmatpush1.bf16.msra.mxu1 %v2579_v51  ;;  %v2671_v51 = vld [vmem:[%s2933_s19 + $0x1e8] ss:$24 sps:$4 sm:$0xff]  }
  0x57   : > { %1620 = vmatpush1.bf16.msra.mxu0 %v2580_v52  ;;  %1578 = vmatprep.subr.bf16.mxu1 %v2581_v54  ;;  %v2674_v52 = vld [vmem:[%s2933_s19 + $0x1f0] ss:$24 sps:$4 sm:$0xff]   ;;  %v2682_v54 = vld [vmem:[%s2933_s19 + $0x224] ss:$24 sps:$4 sm:$0xff]  }
  0x58   : > { %1621 = vmatprep.subr.bf16.mxu0 %v2583_v56  ;;  %v2677_v56 = vld [vmem:[%s2933_s19 + $0x218] ss:$24 sps:$4 sm:$0xff]  }
  0x5a   : > { %1579 = vmatpush1.bf16.msra.mxu1 %v2585_v57  ;;  %v2680_v57 = vld [vmem:[%s2933_s19 + $0x220] ss:$24 sps:$4 sm:$0xff]  }
  0x5b   : > { %1622 = vmatpush1.bf16.msra.mxu0 %v2586_v58  ;;  %1580 = vmatprep.subr.bf16.mxu1 %v2587_v59  ;;  %v2685_v58 = vld [vmem:[%s2933_s19 + $0x24c] ss:$24 sps:$4 sm:$0xff]  }
  0x5c   : > { %1623 = vmatprep.subr.bf16.mxu0 %v2589_v60  ;;  %v2688_v59 = vld [vmem:[%s2933_s19 + $0x254] ss:$24 sps:$4 sm:$0xff]   ;;  %v2683_v60 = vld [vmem:[%s2933_s19 + $0x248] ss:$24 sps:$4 sm:$0xff]  }
  0x5e   : > { %1581 = vmatpush1.bf16.msra.mxu1 %v2591_v61  ;;  %v2686_v61 = vld [vmem:[%s2933_s19 + $0x250] ss:$24 sps:$4 sm:$0xff]  }
  0x5f   : > { %1624 = vmatpush1.bf16.msra.mxu0 %v2592_v62  ;;  %1582 = vmatprep.subr.bf16.mxu1 %v2593_v63  ;;  %v2691_v62 = vld [vmem:[%s2933_s19 + $0x27c] ss:$24 sps:$4 sm:$0xff]  }
  0x60   : > { %1625 = vmatprep.subr.bf16.mxu0 %v2595_v0  ;;  %v2694_v63 = vld [vmem:[%s2933_s19 + $0x284] ss:$24 sps:$4 sm:$0xff]   ;;  %v2689_v0 = vld [vmem:[%s2933_s19 + $0x278] ss:$24 sps:$4 sm:$0xff]  }
  0x62   : > { %1583 = vmatpush1.bf16.msra.mxu1 %v2597_v1  ;;  %v2692_v1 = vld [vmem:[%s2933_s19 + $0x280] ss:$24 sps:$4 sm:$0xff]  }
  0x63   : > { %1626 = vmatpush1.bf16.msra.mxu0 %v2598_v2  ;;  %1584 = vmatprep.subr.bf16.mxu1 %v2599_v3  ;;  %v2697_v2 = vld [vmem:[%s2933_s19 + $0x2ac] ss:$24 sps:$4 sm:$0xff]  }
  0x64   : > { %1627 = vmatprep.subr.bf16.mxu0 %v2601_v4  ;;  %v2700_v3 = vld [vmem:[%s2933_s19 + $0x2b4] ss:$24 sps:$4 sm:$0xff]   ;;  %v2695_v4 = vld [vmem:[%s2933_s19 + $0x2a8] ss:$24 sps:$4 sm:$0xff]  }
  0x66   : > { %1585 = vmatpush1.bf16.msra.mxu1 %v2603_v5  ;;  %v2698_v5 = vld [vmem:[%s2933_s19 + $0x2b0] ss:$24 sps:$4 sm:$0xff]  }
  0x67   : > { %1628 = vmatpush1.bf16.msra.mxu0 %v2604_v6  ;;  %1640 = vmatprep.subr.bf16.mxu1 %v2613_v7  ;;  %v2703_v6 = vld [vmem:[%s2933_s19 + $0x2dc] ss:$24 sps:$4 sm:$0xff]  }
  0x68   : > { %1726 = vmatprep.subr.bf16.mxu0 %v2616_v8  ;;  %v2706_v7 = vld [vmem:[%s2933_s19 + $0x2e4] ss:$24 sps:$4 sm:$0xff]   ;;  %v2701_v8 = vld [vmem:[%s2933_s19 + $0x2d8] ss:$24 sps:$4 sm:$0xff]  }
  0x69   : > { %1587 = vmatmul.mubr.bf16.vlgmr.msra.gmra.mrb[0].mxu1 %v3010_v9 }
  0x6a   : > { %1630 = vmatmul.mubr.bf16.vlgmr.msra.gmra.mrb[0].mxu0 %v3013_v10  ;;  %1641 = vmatpush1.bf16.msra.mxu1 %v2611_v11  ;;  %v2704_v11 = vld [vmem:[%s2933_s19 + $0x2e0] ss:$24 sps:$4 sm:$0xff]  }
  0x6b   : > { %1727 = vmatpush1.bf16.msra.mxu0 %v2614_v12  ;;  %1642 = vmatprep.subr.bf16.mxu1 %v2619_v13  ;;  %v2709_v12 = vld [vmem:[%s2933_s19 + $0x30c] ss:$24 sps:$4 sm:$0xff]  }
  0x6c   : > { %1728 = vmatprep.subr.bf16.mxu0 %v2622_v14  ;;  %1672 = vmatprep.mubr.bf16.mxu1 %v2605_v53  ;;  %v2712_v13 = vld [vmem:[%s2933_s19 + $0x314] ss:$24 sps:$4 sm:$0xff]   ;;  %v2707_v14 = vld [vmem:[%s2933_s19 + $0x308] ss:$24 sps:$4 sm:$0xff]  }
  0x6d   : > { %1758 = vmatprep.mubr.bf16.mxu0 %v2605_v53  ;;  %v2679_v53 = vld [vmem:[%s2933_s19 + $0x21c] ss:$24 sps:$4 sm:$0xff]  }
  0x6e   : > { %1643 = vmatpush1.bf16.msra.mxu1 %v2617_v15  ;;  %v2710_v15 = vld [vmem:[%s2933_s19 + $0x310] ss:$24 sps:$4 sm:$0xff]  }
  0x6f   : > { %1729 = vmatpush1.bf16.msra.mxu0 %v2620_v16  ;;  %1644 = vmatprep.subr.bf16.mxu1 %v2625_v17  ;;  %v2715_v16 = vld [vmem:[%s2933_s19 + $0x33c] ss:$24 sps:$4 sm:$0xff]  }
  0x70   : > { %1730 = vmatprep.subr.bf16.mxu0 %v2628_v18  ;;  %v2718_v17 = vld [vmem:[%s2933_s19 + $0x344] ss:$24 sps:$4 sm:$0xff]   ;;  %v2713_v18 = vld [vmem:[%s2933_s19 + $0x338] ss:$24 sps:$4 sm:$0xff]  }
  0x72   : > { %1645 = vmatpush1.bf16.msra.mxu1 %v2623_v19  ;;  %v2716_v19 = vld [vmem:[%s2933_s19 + $0x340] ss:$24 sps:$4 sm:$0xff]  }
  0x73   : > { %1731 = vmatpush1.bf16.msra.mxu0 %v2626_v20  ;;  %1646 = vmatprep.subr.bf16.mxu1 %v2631_v21  ;;  %v2721_v20 = vld [vmem:[%s2933_s19 + $0x36c] ss:$24 sps:$4 sm:$0xff]  }
  0x74   : > { %1732 = vmatprep.subr.bf16.mxu0 %v2634_v22  ;;  %v2724_v21 = vld [vmem:[%s2933_s19 + $0x374] ss:$24 sps:$4 sm:$0xff]   ;;  %v2722_v22 = vld [vmem:[%s2933_s19 + $0x370] ss:$24 sps:$4 sm:$0xff]  }
  0x76   : > { %1647 = vmatpush1.bf16.msra.mxu1 %v2629_v23  ;;  %v2727_v23 = vld [vmem:[%s2933_s19 + $0x39c] ss:$24 sps:$4 sm:$0xff]  }
  0x77   : > { %1733 = vmatpush1.bf16.msra.mxu0 %v2632_v24  ;;  %1648 = vmatprep.subr.bf16.mxu1 %v2637_v25  ;;  %v2730_v24 = vld [vmem:[%s2933_s19 + $0x3a4] ss:$24 sps:$4 sm:$0xff]   ;;  %v2725_v25 = vld [vmem:[%s2933_s19 + $0x398] ss:$24 sps:$4 sm:$0xff]  }
  0x78   : > { %1734 = vmatprep.subr.bf16.mxu0 %v2640_v26  ;;  %v2728_v26 = vld [vmem:[%s2933_s19 + $0x3a0] ss:$24 sps:$4 sm:$0xff]  }
  0x7a   : > { %1649 = vmatpush1.bf16.msra.mxu1 %v2635_v27  ;;  %v2736_v27 = vld [vmem:[%s2933_s19 + $0x3d4] ss:$24 sps:$4 sm:$0xff]  }
  0x7b   : > { %1735 = vmatpush1.bf16.msra.mxu0 %v2638_v28  ;;  %1650 = vmatprep.subr.bf16.mxu1 %v2643_v29  ;;  %v2731_v28 = vld [vmem:[%s2933_s19 + $0x3c8] ss:$24 sps:$4 sm:$0xff]  }
  0x7c   : > { %1736 = vmatprep.subr.bf16.mxu0 %v2646_v30  ;;  %v2734_v29 = vld [vmem:[%s2933_s19 + $0x3d0] ss:$24 sps:$4 sm:$0xff]   ;;  %v2739_v30 = vld [vmem:[%s2933_s19 + $0x3fc] ss:$24 sps:$4 sm:$0xff]  }
  0x7e   : > { %1651 = vmatpush1.bf16.msra.mxu1 %v2641_v31  ;;  %v2742_v31 = vld [vmem:[%s2933_s19 + $0x404] ss:$24 sps:$4 sm:$0xff]  }
  0x7f   : > { %1737 = vmatpush1.bf16.msra.mxu0 %v2644_v32  ;;  %1652 = vmatprep.subr.bf16.mxu1 %v2649_v33  ;;  %v2737_v32 = vld [vmem:[%s2933_s19 + $0x3f8] ss:$24 sps:$4 sm:$0xff]  }
  0x80   : > { %1738 = vmatprep.subr.bf16.mxu0 %v2652_v34  ;;  %v2740_v33 = vld [vmem:[%s2933_s19 + $0x400] ss:$24 sps:$4 sm:$0xff]   ;;  %v2745_v34 = vld [vmem:[%s2933_s19 + $0x42c] ss:$24 sps:$4 sm:$0xff]  }
  0x82   : > { %1653 = vmatpush1.bf16.msra.mxu1 %v2647_v35  ;;  %v2748_v35 = vld [vmem:[%s2933_s19 + $0x434] ss:$24 sps:$4 sm:$0xff]  }
  0x83   : > { %1739 = vmatpush1.bf16.msra.mxu0 %v2650_v36  ;;  %1654 = vmatprep.subr.bf16.mxu1 %v2655_v37  ;;  %v2743_v36 = vld [vmem:[%s2933_s19 + $0x428] ss:$24 sps:$4 sm:$0xff]  }
  0x84   : > { %1740 = vmatprep.subr.bf16.mxu0 %v2658_v38  ;;  %v2746_v37 = vld [vmem:[%s2933_s19 + $0x430] ss:$24 sps:$4 sm:$0xff]   ;;  %v2751_v38 = vld [vmem:[%s2933_s19 + $0x45c] ss:$24 sps:$4 sm:$0xff]  }
  0x86   : > { %1655 = vmatpush1.bf16.msra.mxu1 %v2653_v39  ;;  %v2754_v39 = vld [vmem:[%s2933_s19 + $0x464] ss:$24 sps:$4 sm:$0xff]  }
  0x87   : > { %1741 = vmatpush1.bf16.msra.mxu0 %v2656_v40  ;;  %1656 = vmatprep.subr.bf16.mxu1 %v2661_v41  ;;  %v2749_v40 = vld [vmem:[%s2933_s19 + $0x458] ss:$24 sps:$4 sm:$0xff]  }
  0x88   : > { %1742 = vmatprep.subr.bf16.mxu0 %v2664_v42  ;;  %v2752_v41 = vld [vmem:[%s2933_s19 + $0x460] ss:$24 sps:$4 sm:$0xff]   ;;  %v2757_v42 = vld [vmem:[%s2933_s19 + $0x48c] ss:$24 sps:$4 sm:$0xff]  }
  0x8a   : > { %1657 = vmatpush1.bf16.msra.mxu1 %v2659_v43  ;;  %v2760_v43 = vld [vmem:[%s2933_s19 + $0x494] ss:$24 sps:$4 sm:$0xff]  }
  0x8b   : > { %1743 = vmatpush1.bf16.msra.mxu0 %v2662_v44  ;;  %1658 = vmatprep.subr.bf16.mxu1 %v2667_v45  ;;  %v2755_v44 = vld [vmem:[%s2933_s19 + $0x488] ss:$24 sps:$4 sm:$0xff]  }
  0x8c   : > { %1744 = vmatprep.subr.bf16.mxu0 %v2670_v46  ;;  %v2758_v45 = vld [vmem:[%s2933_s19 + $0x490] ss:$24 sps:$4 sm:$0xff]   ;;  %v2763_v46 = vld [vmem:[%s2933_s19 + $0x4bc] ss:$24 sps:$4 sm:$0xff]  }
  0x8e   : > { %1659 = vmatpush1.bf16.msra.mxu1 %v2665_v47  ;;  %v2766_v47 = vld [vmem:[%s2933_s19 + $0x4c4] ss:$24 sps:$4 sm:$0xff]  }
  0x8f   : > { %1745 = vmatpush1.bf16.msra.mxu0 %v2668_v48  ;;  %1660 = vmatprep.subr.bf16.mxu1 %v2673_v49  ;;  %v2761_v48 = vld [vmem:[%s2933_s19 + $0x4b8] ss:$24 sps:$4 sm:$0xff]  }
  0x90   : > { %1746 = vmatprep.subr.bf16.mxu0 %v2676_v50  ;;  %v2764_v49 = vld [vmem:[%s2933_s19 + $0x4c0] ss:$24 sps:$4 sm:$0xff]   ;;  %v2769_v50 = vld [vmem:[%s2933_s19 + $0x4ec] ss:$24 sps:$4 sm:$0xff]  }
  0x92   : > { %1661 = vmatpush1.bf16.msra.mxu1 %v2671_v51  ;;  %v2772_v51 = vld [vmem:[%s2933_s19 + $0x4f4] ss:$24 sps:$4 sm:$0xff]  }
  0x93   : > { %1747 = vmatpush1.bf16.msra.mxu0 %v2674_v52  ;;  %1662 = vmatprep.subr.bf16.mxu1 %v2679_v53  ;;  %v2767_v52 = vld [vmem:[%s2933_s19 + $0x4e8] ss:$24 sps:$4 sm:$0xff]  }
  0x94   : > { %1748 = vmatprep.subr.bf16.mxu0 %v2682_v54  ;;  %v2770_v53 = vld [vmem:[%s2933_s19 + $0x4f0] ss:$24 sps:$4 sm:$0xff]   ;;  %v2775_v54 = vld [vmem:[%s2933_s19 + $0x51c] ss:$24 sps:$4 sm:$0xff]  }
  0x96   : > { %1663 = vmatpush1.bf16.msra.mxu1 %v2677_v56  ;;  %v2778_v56 = vld [vmem:[%s2933_s19 + $0x524] ss:$24 sps:$4 sm:$0xff]  }
  0x97   : > { %1749 = vmatpush1.bf16.msra.mxu0 %v2680_v57  ;;  %1664 = vmatprep.subr.bf16.mxu1 %v2685_v58  ;;  %v2773_v57 = vld [vmem:[%s2933_s19 + $0x518] ss:$24 sps:$4 sm:$0xff]  }
  0x98   : > { %1750 = vmatprep.subr.bf16.mxu0 %v2688_v59  ;;  %v2776_v58 = vld [vmem:[%s2933_s19 + $0x520] ss:$24 sps:$4 sm:$0xff]   ;;  %v2781_v59 = vld [vmem:[%s2933_s19 + $0x54c] ss:$24 sps:$4 sm:$0xff]  }
  0x9a   : > { %1665 = vmatpush1.bf16.msra.mxu1 %v2683_v60  ;;  %v2784_v60 = vld [vmem:[%s2933_s19 + $0x554] ss:$24 sps:$4 sm:$0xff]  }
  0x9b   : > { %1751 = vmatpush1.bf16.msra.mxu0 %v2686_v61  ;;  %1666 = vmatprep.subr.bf16.mxu1 %v2691_v62  ;;  %v2779_v61 = vld [vmem:[%s2933_s19 + $0x548] ss:$24 sps:$4 sm:$0xff]  }
  0x9c   : > { %1752 = vmatprep.subr.bf16.mxu0 %v2694_v63  ;;  %v2782_v62 = vld [vmem:[%s2933_s19 + $0x550] ss:$24 sps:$4 sm:$0xff]   ;;  %v2787_v63 = vld [vmem:[%s2933_s19 + $0x57c] ss:$24 sps:$4 sm:$0xff]  }
  0x9e   : > { %1667 = vmatpush1.bf16.msra.mxu1 %v2689_v0  ;;  %v2790_v0 = vld [vmem:[%s2933_s19 + $0x584] ss:$24 sps:$4 sm:$0xff]  }
  0x9f   : > { %1753 = vmatpush1.bf16.msra.mxu0 %v2692_v1  ;;  %1668 = vmatprep.subr.bf16.mxu1 %v2697_v2  ;;  %v2785_v1 = vld [vmem:[%s2933_s19 + $0x578] ss:$24 sps:$4 sm:$0xff]  }
  0xa0   : > { %1754 = vmatprep.subr.bf16.mxu0 %v2700_v3  ;;  %v2788_v2 = vld [vmem:[%s2933_s19 + $0x580] ss:$24 sps:$4 sm:$0xff]   ;;  %v2793_v3 = vld [vmem:[%s2933_s19 + $0x5ac] ss:$24 sps:$4 sm:$0xff]  }
  0xa2   : > { %1669 = vmatpush1.bf16.msra.mxu1 %v2695_v4  ;;  %v2796_v4 = vld [vmem:[%s2933_s19 + $0x5b4] ss:$24 sps:$4 sm:$0xff]  }
  0xa3   : > { %1755 = vmatpush1.bf16.msra.mxu0 %v2698_v5  ;;  %1670 = vmatprep.subr.bf16.mxu1 %v2703_v6  ;;  %v2791_v5 = vld [vmem:[%s2933_s19 + $0x5a8] ss:$24 sps:$4 sm:$0xff]  }
  0xa4   : > { %1756 = vmatprep.subr.bf16.mxu0 %v2706_v7  ;;  %v2794_v6 = vld [vmem:[%s2933_s19 + $0x5b0] ss:$24 sps:$4 sm:$0xff]   ;;  %v2799_v7 = vld [vmem:[%s2933_s19 + $0x5dc] ss:$24 sps:$4 sm:$0xff]  }
  0xa6   : > { %1671 = vmatpush1.bf16.msra.mxu1 %v2701_v8  ;;  %v2802_v8 = vld [vmem:[%s2933_s19 + $0x5e4] ss:$24 sps:$4 sm:$0xff]  }
  0xa7   : > { %1757 = vmatpush1.bf16.msra.mxu0 %v2704_v11  ;;  %1683 = vmatprep.subr.bf16.mxu1 %v2709_v12  ;;  %v2797_v11 = vld [vmem:[%s2933_s19 + $0x5d8] ss:$24 sps:$4 sm:$0xff]  }
  0xa8   : > { %1769 = vmatprep.subr.bf16.mxu0 %v2712_v13  ;;  %v2800_v12 = vld [vmem:[%s2933_s19 + $0x5e0] ss:$24 sps:$4 sm:$0xff]  }
  0xa9   : > { %1673 = vmatmul.mubr.bf16.vlgmr.msra.gmra.mrb[4].mxu1 %v3010_v9 }
  0xaa   : > { %1759 = vmatmul.mubr.bf16.vlgmr.msra.gmra.mrb[4].mxu0 %v3010_v9  ;;  %1684 = vmatpush1.bf16.msra.mxu1 %v2707_v14  ;;  %v2719_v9 = vld [vmem:[%s2933_s19 + $0x368] ss:$24 sps:$4 sm:$0xff]  }
  0xab   : > { %1770 = vmatpush1.bf16.msra.mxu0 %v2710_v15  ;;  %1685 = vmatprep.subr.bf16.mxu1 %v2715_v16  ;;  %v366_v14 = vld [vmem:[#allocation2] sm:$0xff] }
  0xac   : > { %1771 = vmatprep.subr.bf16.mxu0 %v2718_v17  ;;  %1715 = vmatprep.mubr.bf16.mxu1 %v2989_v55 }
  0xad   : > { %1801 = vmatprep.mubr.bf16.mxu0 %v2989_v55  ;;  %v2733_v55 = vld [vmem:[%s2933_s19 + $0x3cc] ss:$24 sps:$4 sm:$0xff]  }
  0xae   : > { %1686 = vmatpush1.bf16.msra.mxu1 %v2713_v18  ;;  %v367_v18 = vld [vmem:[#allocation2 + $0x8] sm:$0xff] }
  0xaf   : > { %1772 = vmatpush1.bf16.msra.mxu0 %v2716_v19  ;;  %1687 = vmatprep.subr.bf16.mxu1 %v2721_v20 }
  0xb0   : > { %1773 = vmatprep.subr.bf16.mxu0 %v2724_v21 }
  0xb2   : > { %1688 = vmatpush1.bf16.msra.mxu1 %v2719_v9  ;;  %v372_v9 = vld [vmem:[#allocation2 + $0x30] sm:$0xff] }
  0xb3   : > { %1774 = vmatpush1.bf16.msra.mxu0 %v2722_v22  ;;  %1689 = vmatprep.subr.bf16.mxu1 %v2727_v23 }
  0xb4   : > { %1775 = vmatprep.subr.bf16.mxu0 %v2730_v24 }
  0xb6   : > { %1690 = vmatpush1.bf16.msra.mxu1 %v2725_v25 }
  0xb7   : > { %1776 = vmatpush1.bf16.msra.mxu0 %v2728_v26  ;;  %1691 = vmatprep.subr.bf16.mxu1 %v2733_v55  ;;  %v373_v26 = vld [vmem:[#allocation2 + $0x38] sm:$0xff] }
  0xb8   : > { %1777 = vmatprep.subr.bf16.mxu0 %v2736_v27 }
  0xba   : > { %1692 = vmatpush1.bf16.msra.mxu1 %v2731_v28 }
  0xbb   : > { %1778 = vmatpush1.bf16.msra.mxu0 %v2734_v29  ;;  %1693 = vmatprep.subr.bf16.mxu1 %v2739_v30  ;;  %v368_v30 = vld [vmem:[#allocation2 + $0x10] sm:$0xff] }
  0xbc   : > { %1779 = vmatprep.subr.bf16.mxu0 %v2742_v31  ;;  %v370_v31 = vld [vmem:[#allocation2 + $0x20] sm:$0xff] }
  0xbe   : > { %1694 = vmatpush1.bf16.msra.mxu1 %v2737_v32  ;;  %v369_v32 = vld [vmem:[#allocation2 + $0x18] sm:$0xff] }
  0xbf   : > { %1780 = vmatpush1.bf16.msra.mxu0 %v2740_v33  ;;  %1695 = vmatprep.subr.bf16.mxu1 %v2745_v34  ;;  %v371_v33 = vld [vmem:[#allocation2 + $0x28] sm:$0xff] }
  0xc0   : > { %1781 = vmatprep.subr.bf16.mxu0 %v2748_v35 }
  0xc2   : > { %1696 = vmatpush1.bf16.msra.mxu1 %v2743_v36  ;;  %v374_v36 = vld [vmem:[#allocation2 + $0x40] sm:$0xff] }
  0xc3   : > { %1782 = vmatpush1.bf16.msra.mxu0 %v2746_v37  ;;  %1697 = vmatprep.subr.bf16.mxu1 %v2751_v38  ;;  %v376_v37 = vld [vmem:[#allocation2 + $0x50] sm:$0xff] }
  0xc4   : > { %1783 = vmatprep.subr.bf16.mxu0 %v2754_v39 }
  0xc6   : > { %1698 = vmatpush1.bf16.msra.mxu1 %v2749_v40 }
  0xc7   : > { %1784 = vmatpush1.bf16.msra.mxu0 %v2752_v41  ;;  %1699 = vmatprep.subr.bf16.mxu1 %v2757_v42  ;;  %v375_v42 = vld [vmem:[#allocation2 + $0x48] sm:$0xff] }
  0xc8   : > { %1785 = vmatprep.subr.bf16.mxu0 %v2760_v43  ;;  %v377_v43 = vld [vmem:[#allocation2 + $0x58] sm:$0xff] }
  0xca   : > { %1700 = vmatpush1.bf16.msra.mxu1 %v2755_v44 }
  0xcb   : > { %1786 = vmatpush1.bf16.msra.mxu0 %v2758_v45  ;;  %1701 = vmatprep.subr.bf16.mxu1 %v2763_v46 }
  0xcc   : > { %1787 = vmatprep.subr.bf16.mxu0 %v2766_v47 }
  0xce   : > { %1702 = vmatpush1.bf16.msra.mxu1 %v2761_v48 }
  0xcf   : > { %1788 = vmatpush1.bf16.msra.mxu0 %v2764_v49  ;;  %1703 = vmatprep.subr.bf16.mxu1 %v2769_v50 }
  0xd0   : > { %1789 = vmatprep.subr.bf16.mxu0 %v2772_v51 }
  0xd2   : > { %1704 = vmatpush1.bf16.msra.mxu1 %v2767_v52 }
  0xd3   : > { %1790 = vmatpush1.bf16.msra.mxu0 %v2770_v53  ;;  %1705 = vmatprep.subr.bf16.mxu1 %v2775_v54  ;;  %v1854_v54 = vlaneseq (!%p2437_p11) }
  0xd4   : > { %1791 = vmatprep.subr.bf16.mxu0 %v2778_v56 }
  0xd5   : > { %v1855_v56 = vshrl.u32 (!%p2437_p11), %v1854_v54, 7 }
  0xd6   : > { %1706 = vmatpush1.bf16.msra.mxu1 %v2773_v57  ;;  %v1896_v57 = vld [vmem:[%s3268_s3] sm:$0xff] (!%p2437_p11) }
  0xd7   : > { %1792 = vmatpush1.bf16.msra.mxu0 %v2776_v58  ;;  %1707 = vmatprep.subr.bf16.mxu1 %v2781_v59  ;;  %v1897_v58 = vld [vmem:[%s3268_s3 + $0x8] sm:$0xff] (!%p2437_p11)  ;;  %v1852_v59 = vld [vmem:[%s3267_s2] sm:$0x3f] (!%p2437_p11) }
  0xd8   : > { %1793 = vmatprep.subr.bf16.mxu0 %v2784_v60  ;;  %v1902_v60 = vunpack.c.l.bf16 (!%p2437_p11), %v1896_v57 }
  0xda   : > { %1708 = vmatpush1.bf16.msra.mxu1 %v2779_v61 }
  0xdb   : > { %1794 = vmatpush1.bf16.msra.mxu0 %v2782_v62  ;;  %1709 = vmatprep.subr.bf16.mxu1 %v2787_v63  ;;  %v3159_v62 = vsub.s32 (!%p2437_p11), 0, %v1855_v56  ;;  %v3161_v63 = vsub.s32 (!%p2437_p11), 1, %v1855_v56 }
  0xdc   : > { %1795 = vmatprep.subr.bf16.mxu0 %v2790_v0  ;;  %v3163_v0 = vsub.s32 (!%p2437_p11), 2, %v1855_v56 }
  0xde   : > { %1710 = vmatpush1.bf16.msra.mxu1 %v2785_v1  ;;  %v3165_v1 = vsub.s32 (!%p2437_p11), 3, %v1855_v56 }
  0xdf   : > { %1796 = vmatpush1.bf16.msra.mxu0 %v2788_v2  ;;  %1711 = vmatprep.subr.bf16.mxu1 %v2793_v3 }
  0xe0   : > { %1797 = vmatprep.subr.bf16.mxu0 %v2796_v4 }
  0xe2   : > { %1712 = vmatpush1.bf16.msra.mxu1 %v2791_v5  ;;  %v3167_v5 = vsub.s32 (!%p2437_p11), 4, %v1855_v56 }
  0xe3   : > { %1798 = vmatpush1.bf16.msra.mxu0 %v2794_v6  ;;  %1713 = vmatprep.subr.bf16.mxu1 %v2799_v7  ;;  %v3169_v6 = vsub.s32 (!%p2437_p11), 5, %v1855_v56  ;;  %v1903_v7 = vunpack.c.h.bf16 (!%p2437_p11), %v1896_v57 }
  0xe4   : > { %1799 = vmatprep.subr.bf16.mxu0 %v2802_v8  ;;  %v1904_v8 = vunpack.c.l.bf16 (!%p2437_p11), %v1897_v58 }
  0xe6   : > { %1714 = vmatpush1.bf16.msra.mxu1 %v2797_v11  ;;  %v1857_v11 = vrot.slane (!%p2437_p11), %v1852_v59, %v3159_v62 }
  0xe7   : > { %1800 = vmatpush1.bf16.msra.mxu0 %v2800_v12  ;;  %v1861_v12 = vrot.slane (!%p2437_p11), %v1852_v59, %v3161_v63 }
  0xe9   : > { %1716 = vmatmul.mubr.bf16.vlgmr.msra.gmra.mrb[4].mxu1 %v3013_v10 }
  0xea   : > { %1802 = vmatmul.mubr.bf16.vlgmr.msra.gmra.mrb[4].mxu0 %v3013_v10 }
 0x13c   : > { %v1588_v13 = vpop.f32.mrb[0].mxu1 }
 0x13d   : > { %v1631_v15 = vpop.f32.mrb[0].mxu0  ;;  %v1590_v17 = vpop.f32.mrb[1].mxu1 }
 0x13e   : > { %v1632_v16 = vadd.f32 %v1631_v15, %v1588_v13  ;;  %v1633_v19 = vpop.f32.mrb[1].mxu0  ;;  %v1592_v21 = vpop.f32.mrb[2].mxu1  ;;  %v1865_v13 = vrot.slane (!%p2437_p11), %v1852_v59, %v3163_v0  ;;  %v1898_v15 = vld [vmem:[%s3268_s3 + $0x10] sm:$0xff] (!%p2437_p11) }
 0x13f   : > { %v1634_v20 = vadd.f32 %v1633_v19, %v1590_v17  ;;  %v1635_v22 = vpop.f32.mrb[2].mxu0  ;;  %v1594_v25 = vpop.f32.mrb[3].mxu1  ;;  %v1873_v17 = vrot.slane (!%p2437_p11), %v1852_v59, %v3167_v5  ;;  %v1905_v19 = vunpack.c.h.bf16 (!%p2437_p11), %v1897_v58 }
 0x140   : > { %v1812_v23 = vadd.f32 %v1632_v16, %v366_v14  ;;  %v1636_v24 = vadd.f32 %v1635_v22, %v1592_v21  ;;  %v1637_v55 = vpop.f32.mrb[3].mxu0  ;;  %v1869_v14 = vrot.slane (!%p2437_p11), %v1852_v59, %v3165_v1 }
 0x141   : > { %v1813_v27 = vadd.f32 %v1634_v20, %v367_v18  ;;  %v1638_v28 = vadd.f32 %v1637_v55, %v1594_v25  ;;  %v1877_v18 = vrot.slane (!%p2437_p11), %v1852_v59, %v3169_v6 }
 0x142   : > { %1824 = vst [vmem:[#allocation2] sm:$0xff] %v1812_v23  ;;  %v1818_v10 = vadd.f32 %v1636_v24, %v372_v9  ;;  %v1906_v24 = vunpack.c.l.bf16 (!%p2437_p11), %v1898_v15 }
 0x143   : > { %1825 = vst [vmem:[#allocation2 + $0x8] sm:$0xff] %v1813_v27  ;;  %v1819_v29 = vadd.f32 %v1638_v28, %v373_v26 }
 0x144   : > { %1830 = vst [vmem:[#allocation2 + $0x30] sm:$0xff] %v1818_v10 }
 0x145   : > { %1831 = vst [vmem:[#allocation2 + $0x38] sm:$0xff] %v1819_v29 }
 0x149   : > { %v1840_v61 = vld [vmem:[#allocation2] sm:$0xff] (!%p2437_p11) }
 0x14a   : > { %v1841_v2 = vld [vmem:[#allocation2 + $0x8] sm:$0xff] (!%p2437_p11)  ;;  %v1884_v20 = vadd.f32 (!%p2437_p11), %v1857_v11, %v1840_v61 }
 0x14b   : > { %v1885_v21 = vadd.f32 (!%p2437_p11), %v1861_v12, %v1841_v2  ;;  %v1846_v28 = vld [vmem:[#allocation2 + $0x30] sm:$0xff] (!%p2437_p11) }
 0x14c   : > { %v1914_v26 = vadd.f32 (!%p2437_p11), %v1902_v60, %v1884_v20  ;;  %v1847_v10 = vld [vmem:[#allocation2 + $0x38] sm:$0xff] (!%p2437_p11) }
 0x14d   : > { %v1915_v55 = vadd.f32 (!%p2437_p11), %v1903_v7, %v1885_v21 }
 0x1bc   : > { %v1717_v34 = vpop.f32.mrb[4].mxu1 }
 0x1bd   : > { %v1803_v35 = vpop.f32.mrb[4].mxu0  ;;  %v1814_v38 = vadd.f32 %v1717_v34, %v368_v30  ;;  %v1719_v40 = vpop.f32.mrb[5].mxu1  ;;  %1839 = sbr.rel (%p2437_p11) target bundleno = 798 (0x31e), region = 75 }
 0x1be   : > { %v1816_v39 = vadd.f32 %v1803_v35, %v370_v31  ;;  %v1805_v41 = vpop.f32.mrb[5].mxu0  ;;  %v1815_v44 = vadd.f32 %v1719_v40, %v369_v32  ;;  %v1721_v46 = vpop.f32.mrb[6].mxu1  ;;  %v1907_v31 = vunpack.c.h.bf16 (!%p2437_p11), %v1898_v15  ;;  %v1899_v35 = vld [vmem:[%s3268_s3 + $0x18] sm:$0xff] (!%p2437_p11) }
 0x1bf   : > { %v1817_v45 = vadd.f32 %v1805_v41, %v371_v33  ;;  %v1807_v47 = vpop.f32.mrb[6].mxu0  ;;  %1826 = vst [vmem:[#allocation2 + $0x10] sm:$0xff] %v1814_v38  ;;  %v1820_v48 = vadd.f32 %v1721_v46, %v374_v36  ;;  %v1723_v50 = vpop.f32.mrb[7].mxu1  ;;  %v1926_v33 = vadd.f32 (!%p2437_p11), %v1915_v55, %v1914_v26  ;;  %v1890_v36 = vadd.f32 (!%p2437_p11), %v1857_v11, %v1846_v28 }
 0x1c0   : > { %1828 = vst [vmem:[#allocation2 + $0x20] sm:$0xff] %v1816_v39  ;;  %v1822_v49 = vadd.f32 %v1807_v47, %v376_v37  ;;  %v1809_v51 = vpop.f32.mrb[7].mxu0  ;;  %1827 = vst [vmem:[#allocation2 + $0x18] sm:$0xff] %v1815_v44  ;;  %v1821_v52 = vadd.f32 %v1723_v50, %v375_v42  ;;  %v1900_v37 = vld [vmem:[%s3268_s3 + $0x20] sm:$0xff] (!%p2437_p11)  ;;  %v1891_v41 = vadd.f32 (!%p2437_p11), %v1861_v12, %v1847_v10  ;;  %v1909_v46 = vunpack.c.h.bf16 (!%p2437_p11), %v1899_v35 }
 0x1c1   : > { %1829 = vst [vmem:[#allocation2 + $0x28] sm:$0xff] %v1817_v45  ;;  %v1823_v53 = vadd.f32 %v1809_v51, %v377_v43  ;;  %1832 = vst [vmem:[#allocation2 + $0x40] sm:$0xff] %v1820_v48  ;;  %v1901_v43 = vld [vmem:[%s3268_s3 + $0x28] sm:$0xff] (!%p2437_p11)  ;;  %v1908_v45 = vunpack.c.l.bf16 (!%p2437_p11), %v1899_v35  ;;  %v1910_v50 = vunpack.c.l.bf16 (!%p2437_p11), %v1900_v37  ;;  %v1911_v51 = vunpack.c.h.bf16 (!%p2437_p11), %v1900_v37 }
 0x1c2   : > { %1834 = vst [vmem:[#allocation2 + $0x50] sm:$0xff] %v1822_v49  ;;  %1833 = vst [vmem:[#allocation2 + $0x48] sm:$0xff] %v1821_v52  ;;  %v1921_v56 = vadd.f32 (!%p2437_p11), %v1909_v46, %v1891_v41  ;;  %v1913_v60 = vunpack.c.h.bf16 (!%p2437_p11), %v1901_v43 }
 0x1c3   : > { %1835 = vst [vmem:[#allocation2 + $0x58] sm:$0xff] %v1823_v53  ;;  %v1912_v53 = vunpack.c.l.bf16 (!%p2437_p11), %v1901_v43  ;;  %v1920_v54 = vadd.f32 (!%p2437_p11), %v1908_v45, %v1890_v36 }
 0x1c5   : > { %v1933_v2 = vadd.f32 %v1921_v56, %v1920_v54 }
 0x1c6   : > { %v1842_v3 = vld [vmem:[#allocation2 + $0x10] sm:$0xff] }
 0x1c7   : > { %v1843_v4 = vld [vmem:[#allocation2 + $0x18] sm:$0xff]  ;;  %v1844_v16 = vld [vmem:[#allocation2 + $0x20] sm:$0xff]  ;;  %v1886_v9 = vadd.f32 %v1865_v13, %v1842_v3 }
 0x1c8   : > { %v1887_v22 = vadd.f32 %v1869_v14, %v1843_v4  ;;  %v1845_v23 = vld [vmem:[#allocation2 + $0x28] sm:$0xff]  ;;  %v1888_v25 = vadd.f32 %v1873_v17, %v1844_v16  ;;  %v1848_v29 = vld [vmem:[#allocation2 + $0x40] sm:$0xff] }
 0x1c9   : > { %v1916_v27 = vadd.f32 %v1904_v8, %v1886_v9  ;;  %v1889_v30 = vadd.f32 %v1877_v18, %v1845_v23  ;;  %v1849_v34 = vld [vmem:[#allocation2 + $0x48] sm:$0xff]  ;;  %v1850_v40 = vld [vmem:[#allocation2 + $0x50] sm:$0xff]  ;;  %v1892_v42 = vadd.f32 %v1865_v13, %v1848_v29 }
 0x1ca   : > { %v1917_v32 = vadd.f32 %v1905_v19, %v1887_v22  ;;  %v1918_v38 = vadd.f32 %v1906_v24, %v1888_v25  ;;  %v1893_v44 = vadd.f32 %v1869_v14, %v1849_v34  ;;  %v1851_v49 = vld [vmem:[#allocation2 + $0x58] sm:$0xff]  ;;  %v1894_v52 = vadd.f32 %v1873_v17, %v1850_v40 }
 0x1cb   : > { %v1927_v39 = vadd.f32 %v1926_v33, %v1916_v27  ;;  %v1919_v47 = vadd.f32 %v1907_v31, %v1889_v30  ;;  %v1922_v58 = vadd.f32 %v1910_v50, %v1892_v42  ;;  %v1895_v59 = vadd.f32 %v1877_v18, %v1851_v49 }
 0x1cc   : > { %v1923_v61 = vadd.f32 %v1911_v51, %v1893_v44  ;;  %v1924_v4 = vadd.f32 %v1912_v53, %v1894_v52 }
 0x1cd   : > { %v1928_v48 = vadd.f32 %v1927_v39, %v1917_v32  ;;  %v1934_v7 = vadd.f32 %v1933_v2, %v1922_v58  ;;  %v1925_v8 = vadd.f32 %v1913_v60, %v1895_v59 }
 0x1cf   : > { %v1929_v57 = vadd.f32 %v1928_v48, %v1918_v38  ;;  %v1935_v11 = vadd.f32 %v1934_v7, %v1923_v61 }
 0x1d1   : > { %v1930_v3 = vadd.f32 %v1929_v57, %v1919_v47  ;;  %v1936_v12 = vadd.f32 %v1935_v11, %v1924_v4  ;;  %v2043_v57 = vld [vmem:[%s3270_s5] sm:$0x3f] }
 0x1d2   : > { %v2048_v7 = vrot.slane %v2043_v57, %v3159_v62  ;;  %v2056_v11 = vrot.slane %v2043_v57, %v3163_v0 }
 0x1d3   : > { %1931 = vadd.xlane.f32.xlu0 %v1930_v3  ;;  %v1937_v13 = vadd.f32 %v1936_v12, %v1925_v8  ;;  %v2060_v12 = vrot.slane %v2043_v57, %v3165_v1 }
 0x1d7   : > { %1938 = vadd.xlane.f32.xlu0 %v1937_v13 }
 0x260   : > { %v1932_v14 = vpop.xlane.xlu0 %1931 }
 0x261   : > { %v1941_v15 = vmul.f32 0.0013020834, %v1932_v14 }
 0x263   : > { %v1943_v16 = vsub.f32 %v1914_v26, %v1941_v15  ;;  %v1944_v17 = vsub.f32 %v1915_v55, %v1941_v15  ;;  %v1945_v19 = vsub.f32 %v1916_v27, %v1941_v15  ;;  %v1946_v20 = vsub.f32 %v1917_v32, %v1941_v15 }
 0x264   : > { %v1939_v9 = vpop.xlane.xlu0 %1938  ;;  %v1947_v22 = vsub.f32 %v1918_v38, %v1941_v15  ;;  %v1948_v28 = vsub.f32 %v1919_v47, %v1941_v15 }
 0x265   : > { %v1955_v21 = vmul.f32 %v1943_v16, %v1943_v16  ;;  %v1956_v18 = vmul.f32 %v1944_v17, %v1944_v17  ;;  %v1957_v23 = vmul.f32 %v1945_v19, %v1945_v19  ;;  %v1942_v25 = vmul.f32 0.0013020834, %v1939_v9 }
 0x266   : > { %v1958_v10 = vmul.f32 %v1946_v20, %v1946_v20  ;;  %v1959_v26 = vmul.f32 %v1947_v22, %v1947_v22  ;;  %v1960_v35 = vmul.f32 %v1948_v28, %v1948_v28  ;;  %v2068_v9 = vrot.slane %v2043_v57, %v3169_v6 }
 0x267   : > { %v1967_v24 = vadd.f32 %v1956_v18, %v1955_v21  ;;  %v3189_v30 = vsub.f32 %v1920_v54, %v1942_v25  ;;  %v3191_v31 = vsub.f32 %v1921_v56, %v1942_v25  ;;  %v3193_v33 = vsub.f32 %v1922_v58, %v1942_v25  ;;  %v1999_v54 = vld [vmem:[%s3269_s4] sm:$0x3f] }
 0x268   : > { %v3195_v27 = vsub.f32 %v1923_v61, %v1942_v25  ;;  %v3201_v37 = vsub.f32 %v1924_v4, %v1942_v25  ;;  %v1954_v41 = vsub.f32 %v1925_v8, %v1942_v25  ;;  %v2004_v58 = vrot.slane %v1999_v54, %v3159_v62 }
 0x269   : > { %v1968_v29 = vadd.f32 %v1967_v24, %v1957_v23  ;;  %v1961_v32 = vmul.f32 %v3189_v30, %v3189_v30  ;;  %v1962_v34 = vmul.f32 %v3191_v31, %v3191_v31  ;;  %v1963_v38 = vmul.f32 %v3193_v33, %v3193_v33 }
 0x26a   : > { %v1964_v42 = vmul.f32 %v3195_v27, %v3195_v27  ;;  %v1965_v44 = vmul.f32 %v3201_v37, %v3201_v37  ;;  %v1966_v46 = vmul.f32 %v1954_v41, %v1954_v41  ;;  %v2008_v59 = vrot.slane %v1999_v54, %v3161_v63 }
 0x26b   : > { %v1969_v55 = vadd.f32 %v1968_v29, %v1958_v10  ;;  %v1974_v39 = vadd.f32 %v1962_v34, %v1961_v32  ;;  %v2012_v60 = vrot.slane %v1999_v54, %v3163_v0  ;;  %v2016_v61 = vrot.slane %v1999_v54, %v3165_v1 }
 0x26c   : > { %v2020_v2 = vrot.slane %v1999_v54, %v3167_v5  ;;  %v2024_v3 = vrot.slane %v1999_v54, %v3169_v6  ;;  %v2052_v8 = vrot.slane %v2043_v57, %v3161_v63  ;;  %v2064_v18 = vrot.slane %v2043_v57, %v3167_v5 }
 0x26d   : > { %v1970_v36 = vadd.f32 %v1969_v55, %v1959_v26  ;;  %v1975_v43 = vadd.f32 %v1974_v39, %v1963_v38 }
 0x26f   : > { %v1971_v40 = vadd.f32 %v1970_v36, %v1960_v35  ;;  %v1976_v45 = vadd.f32 %v1975_v43, %v1964_v42 }
 0x271   : > { %1972 = vadd.xlane.f32.xlu1 %v1971_v40  ;;  %v1977_v47 = vadd.f32 %v1976_v45, %v1965_v44 }
 0x273   : > { %v1978_v48 = vadd.f32 %v1977_v47, %v1966_v46 }
 0x275   : > { %1979 = vadd.xlane.f32.xlu1 %v1978_v48 }
 0x2fe   : > { %v1973_v49 = vpop.xlane.xlu1 %1972 }
 0x2ff   : > { %v1981_v50 = vmul.f32 0.0013020834, %v1973_v49 }
 0x301   : > { %v1983_v51 = vadd.f32 1e-12, %v1981_v50 }
 0x302   : > { %v1980_v52 = vpop.xlane.xlu1 %1979 }
 0x303   : > { %2803 = vrsqrt.f32 %v1983_v51  ;;  %v1982_v53 = vmul.f32 0.0013020834, %v1980_v52 }
 0x305   : > { %v1984_v56 = vadd.f32 1e-12, %v1982_v53 }
 0x307   : > { %2805 = vrsqrt.f32 %v1984_v56 }
 0x30d   : > { %v2804_v4 = vpop.eup %2803 }
 0x30e   : > { %v1987_v13 = vmul.f32 %v2804_v4, %v1943_v16  ;;  %v1988_v14 = vmul.f32 %v2804_v4, %v1944_v17  ;;  %v1989_v15 = vmul.f32 %v2804_v4, %v1945_v19  ;;  %v1990_v21 = vmul.f32 %v2804_v4, %v1946_v20 }
 0x30f   : > { %v1991_v23 = vmul.f32 %v2804_v4, %v1947_v22  ;;  %v1992_v24 = vmul.f32 %v2804_v4, %v1948_v28 }
 0x310   : > { %v2031_v25 = vmul.f32 %v2004_v58, %v1987_v13  ;;  %v2032_v10 = vmul.f32 %v2008_v59, %v1988_v14  ;;  %v2033_v29 = vmul.f32 %v2012_v60, %v1989_v15  ;;  %v2034_v62 = vmul.f32 %v2016_v61, %v1990_v21 }
 0x311   : > { %v2035_v26 = vmul.f32 %v2020_v2, %v1991_v23  ;;  %v2036_v63 = vmul.f32 %v2024_v3, %v1992_v24  ;;  %v2806_v19 = vpop.eup %2805 }
 0x312   : > { %v2075_v55 = vadd.f32 %v2048_v7, %v2031_v25  ;;  %v2076_v0 = vadd.f32 %v2052_v8, %v2032_v10  ;;  %v2077_v32 = vadd.f32 %v2056_v11, %v2033_v29  ;;  %v2078_v1 = vadd.f32 %v2060_v12, %v2034_v62 }
 0x313   : > { %v2079_v16 = vadd.f32 %v2064_v18, %v2035_v26  ;;  %v2080_v17 = vadd.f32 %v2068_v9, %v2036_v63  ;;  %v1993_v6 = vmul.f32 %v2806_v19, %v3189_v30  ;;  %v1994_v22 = vmul.f32 %v2806_v19, %v3191_v31 }
 0x314   : > { %v2449_v20 = vpack.c.bf16 %v2076_v0, %v2075_v55  ;;  %v2450_v34 = vpack.c.bf16 %v2078_v1, %v2077_v32  ;;  %v1995_v28 = vmul.f32 %v2806_v19, %v3193_v33  ;;  %v1996_v35 = vmul.f32 %v2806_v19, %v3195_v27 }
 0x315   : > { %v2451_v5 = vpack.c.bf16 %v2080_v17, %v2079_v16  ;;  %v1997_v36 = vmul.f32 %v2806_v19, %v3201_v37  ;;  %v1998_v38 = vmul.f32 %v2806_v19, %v1954_v41  ;;  %v2037_v30 = vmul.f32 %v2004_v58, %v1993_v6 }
 0x316   : > { %2123 = vst [vmem:[%s3271_s6] sm:$0xff] %v2449_v20  ;;  %2124 = vst [vmem:[%s3271_s6 + $0x8] sm:$0xff] %v2450_v34  ;;  %v2038_v31 = vmul.f32 %v2008_v59, %v1994_v22  ;;  %v2039_v33 = vmul.f32 %v2012_v60, %v1995_v28  ;;  %v2040_v39 = vmul.f32 %v2016_v61, %v1996_v35 }
 0x317   : > { %2125 = vst [vmem:[%s3271_s6 + $0x10] sm:$0xff] %v2451_v5  ;;  %v2041_v40 = vmul.f32 %v2020_v2, %v1997_v36  ;;  %v2042_v42 = vmul.f32 %v2024_v3, %v1998_v38  ;;  %v2081_v43 = vadd.f32 %v2048_v7, %v2037_v30 }
 0x318   : > { %v2082_v44 = vadd.f32 %v2052_v8, %v2038_v31  ;;  %v2083_v45 = vadd.f32 %v2056_v11, %v2039_v33  ;;  %v2084_v46 = vadd.f32 %v2060_v12, %v2040_v39 }
 0x319   : > { %v2085_v47 = vadd.f32 %v2064_v18, %v2041_v40  ;;  %v2086_v48 = vadd.f32 %v2068_v9, %v2042_v42 }
 0x31a   : > { %v2452_v27 = vpack.c.bf16 %v2082_v44, %v2081_v43  ;;  %v2453_v49 = vpack.c.bf16 %v2084_v46, %v2083_v45 }
 0x31b   : > { %v2454_v37 = vpack.c.bf16 %v2086_v48, %v2085_v47 }
 0x31c   : > { %2126 = vst [vmem:[%s3271_s6 + $0x18] sm:$0xff] %v2452_v27  ;;  %2127 = vst [vmem:[%s3271_s6 + $0x20] sm:$0xff] %v2453_v49 }
 0x31d   : > { %2128 = vst [vmem:[%s3271_s6 + $0x28] sm:$0xff] %v2454_v37 }
 0x31e PF: > { %s16_s25 = sadd.s32 1, %s2845_s25   ;;  %s3272_s21 = smov %s2833_s22 }
 0x31f   : > { %p13_p12 = scmp.ge.s32.totalorder %s16_s25, 8   ;;  %s3273_s22 = smov %s2918_s29 }
 0x320   : > { %s3274_s23 = smov %s2841_s24  ;;  %s3275_s24 = smov %s3277_s26 }
 0x321   :  { %15 = sbr.rel (!%p13_p12) target bundleno = 3 (0x3), region = 116 }

// kernel: forward.3
= control target key start
LH: loop header
LB: loop body
LE: loop exit
PB: predicated region body
PF: predicated region fallthrough
CT: control target
= control target key end

     0   :  { %s3715_s0 = inlined_call_operand.vmem [shape: bf16[2,8,768], index: 0, kind: input, shape index: {}]   ;;  %s3716_s1 = inlined_call_operand.vmem [shape: bf16[3,768,128], index: 1, kind: input, shape index: {}]   ;;  %s3717_s2 = inlined_call_operand.vmem [shape: f32[1,128], index: 2, kind: input, shape index: {}]   ;;  %s3718_s3 = inlined_call_operand.vmem [shape: bf16[3,128,64], index: 3, kind: input, shape index: {}]   ;;  %s3719_s4 = inlined_call_operand.vmem [shape: f32[1,64], index: 4, kind: input, shape index: {}]   ;;  %s3720_s5 = inlined_call_operand.vmem [shape: bf16[64,128], index: 5, kind: input, shape index: {}]   ;;  %s3721_s6 = inlined_call_operand.vmem [shape: f32[1,128], index: 6, kind: input, shape index: {}]   ;;  %s3722_s7 = inlined_call_operand.hbm [shape: f32[2,128], index: 7, kind: output, shape index: {}]  }
   0x1   :  { %v2836_v0 = vld [vmem:[%s3716_s1 + $0x40] sm:$0xff]   ;;  %v2840_v4 = vld [vmem:[%s3716_s1 + $0x48] sm:$0xff]   ;;  %v2844_v8 = vld [vmem:[%s3716_s1 + $0x50] sm:$0xff]  }
   0x2   :  { %v2837_v1 = vld [vmem:[%s3716_s1 + $0xc0] sm:$0xff]   ;;  %2531 = vmatprep.subr.bf16.mxu0 %v2836_v0  ;;  %v2841_v5 = vld [vmem:[%s3716_s1 + $0xc8] sm:$0xff]   ;;  %v2845_v9 = vld [vmem:[%s3716_s1 + $0xd0] sm:$0xff]  }
   0x3   :  { %v2838_v2 = vld [vmem:[%s3716_s1] sm:$0xff]   ;;  %2553 = vmatprep.subr.bf16.mxu1 %v2837_v1  ;;  %v2842_v6 = vld [vmem:[%s3716_s1 + $0x8] sm:$0xff]   ;;  %v2846_v10 = vld [vmem:[%s3716_s1 + $0x10] sm:$0xff]  }
   0x4   :  { %v2839_v3 = vld [vmem:[%s3716_s1 + $0x80] sm:$0xff]   ;;  %2532 = vmatpush3.bf16.msra.mxu0 %v2838_v2  ;;  %v2843_v7 = vld [vmem:[%s3716_s1 + $0x88] sm:$0xff]   ;;  %v2847_v11 = vld [vmem:[%s3716_s1 + $0x90] sm:$0xff]  }
   0x5   :  { %2554 = vmatpush3.bf16.msra.mxu1 %v2839_v3  ;;  %2533 = vmatprep.subr.bf16.mxu0 %v2840_v4  ;;  %v2848_v12 = vld [vmem:[%s3716_s1 + $0x58] sm:$0xff]   ;;  %v2852_v16 = vld [vmem:[%s3716_s1 + $0x60] sm:$0xff]   ;;  %v2856_v20 = vld [vmem:[%s3716_s1 + $0x68] sm:$0xff]  }
   0x6   :  { %2555 = vmatprep.subr.bf16.mxu1 %v2841_v5  ;;  %v2849_v13 = vld [vmem:[%s3716_s1 + $0xd8] sm:$0xff]   ;;  %v2853_v17 = vld [vmem:[%s3716_s1 + $0xe0] sm:$0xff]   ;;  %v2857_v21 = vld [vmem:[%s3716_s1 + $0xe8] sm:$0xff]  }
   0x7   :  { %v2850_v14 = vld [vmem:[%s3716_s1 + $0x18] sm:$0xff]   ;;  %v2854_v18 = vld [vmem:[%s3716_s1 + $0x20] sm:$0xff]   ;;  %v2858_v22 = vld [vmem:[%s3716_s1 + $0x28] sm:$0xff]  }
   0x8   :  { %2534 = vmatpush3.bf16.msra.mxu0 %v2842_v6  ;;  %v2851_v15 = vld [vmem:[%s3716_s1 + $0x98] sm:$0xff]   ;;  %v2855_v19 = vld [vmem:[%s3716_s1 + $0xa0] sm:$0xff]   ;;  %v2859_v23 = vld [vmem:[%s3716_s1 + $0xa8] sm:$0xff]  }
   0x9   :  { %2556 = vmatpush3.bf16.msra.mxu1 %v2843_v7  ;;  %2535 = vmatprep.subr.bf16.mxu0 %v2844_v8  ;;  %v2860_v24 = vld [vmem:[%s3716_s1 + $0x70] sm:$0xff]   ;;  %v2864_v28 = vld [vmem:[%s3716_s1 + $0x78] sm:$0xff]   ;;  %v3188_v33 = vld [vmem:[%s3715_s0 + $0xc] ss:$24 sps:$4 sm:$0xff]  }
   0xa   :  { %2557 = vmatprep.subr.bf16.mxu1 %v2845_v9  ;;  %v2861_v25 = vld [vmem:[%s3716_s1 + $0xf0] sm:$0xff]   ;;  %v2865_v29 = vld [vmem:[%s3716_s1 + $0xf8] sm:$0xff]   ;;  %v3199_v35 = vld [vmem:[%s3715_s0 + $0x8] ss:$24 sps:$4 sm:$0xff]   ;;  %521 = vmatprep.mubr.bf16.mxu1 %v3188_v33 }
   0xb   :  { %v2862_v26 = vld [vmem:[%s3716_s1 + $0x30] sm:$0xff]   ;;  %v2866_v30 = vld [vmem:[%s3716_s1 + $0x38] sm:$0xff]   ;;  %v2874_v36 = vld [vmem:[%s3716_s1 + $0x140] sm:$0xff]  }
   0xc   :  { %2536 = vmatpush3.bf16.msra.mxu0 %v2846_v10  ;;  %v2863_v27 = vld [vmem:[%s3716_s1 + $0xb0] sm:$0xff]   ;;  %v2867_v31 = vld [vmem:[%s3716_s1 + $0xb8] sm:$0xff]   ;;  %v2875_v37 = vld [vmem:[%s3716_s1 + $0x1c0] sm:$0xff]  }
   0xd   :  { %2558 = vmatpush3.bf16.msra.mxu1 %v2847_v11  ;;  %2537 = vmatprep.subr.bf16.mxu0 %v2848_v12  ;;  %v3183_v32 = vld [vmem:[%s3715_s0 + $0x4] ss:$24 sps:$4 sm:$0xff]   ;;  %v3194_v34 = vld [vmem:[%s3715_s0] ss:$24 sps:$4 sm:$0xff]   ;;  %v2878_v40 = vld [vmem:[%s3716_s1 + $0x148] sm:$0xff]  }
   0xe   :  { %2559 = vmatprep.subr.bf16.mxu1 %v2849_v13  ;;  %480 = vmatprep.mubr.bf16.mxu0 %v3183_v32  ;;  %v2876_v38 = vld [vmem:[%s3716_s1 + $0x100] sm:$0xff]   ;;  %v2879_v41 = vld [vmem:[%s3716_s1 + $0x1c8] sm:$0xff]   ;;  %v2882_v44 = vld [vmem:[%s3716_s1 + $0x150] sm:$0xff]  }
   0xf   :  { %v2877_v39 = vld [vmem:[%s3716_s1 + $0x180] sm:$0xff]   ;;  %v2880_v42 = vld [vmem:[%s3716_s1 + $0x108] sm:$0xff]   ;;  %v2883_v45 = vld [vmem:[%s3716_s1 + $0x1d0] sm:$0xff]  }
  0x10   :  { %2538 = vmatpush3.bf16.msra.mxu0 %v2850_v14  ;;  %v2881_v43 = vld [vmem:[%s3716_s1 + $0x188] sm:$0xff]   ;;  %v2884_v46 = vld [vmem:[%s3716_s1 + $0x110] sm:$0xff]   ;;  %v2886_v48 = vld [vmem:[%s3716_s1 + $0x158] sm:$0xff]  }
  0x11   :  { %2560 = vmatpush3.bf16.msra.mxu1 %v2851_v15  ;;  %2539 = vmatprep.subr.bf16.mxu0 %v2852_v16  ;;  %v2885_v47 = vld [vmem:[%s3716_s1 + $0x190] sm:$0xff]   ;;  %v2887_v49 = vld [vmem:[%s3716_s1 + $0x1d8] sm:$0xff]   ;;  %v2890_v52 = vld [vmem:[%s3716_s1 + $0x160] sm:$0xff]  }
  0x12   :  { %2561 = vmatprep.subr.bf16.mxu1 %v2853_v17  ;;  %v2888_v50 = vld [vmem:[%s3716_s1 + $0x118] sm:$0xff]   ;;  %v2891_v53 = vld [vmem:[%s3716_s1 + $0x1e0] sm:$0xff]   ;;  %v2894_v56 = vld [vmem:[%s3716_s1 + $0x168] sm:$0xff]  }
  0x13   :  { %v2889_v51 = vld [vmem:[%s3716_s1 + $0x198] sm:$0xff]   ;;  %v2892_v54 = vld [vmem:[%s3716_s1 + $0x120] sm:$0xff]   ;;  %v2895_v57 = vld [vmem:[%s3716_s1 + $0x1e8] sm:$0xff]  }
  0x14   :  { %2540 = vmatpush3.bf16.msra.mxu0 %v2854_v18  ;;  %v2893_v55 = vld [vmem:[%s3716_s1 + $0x1a0] sm:$0xff]   ;;  %v2896_v58 = vld [vmem:[%s3716_s1 + $0x128] sm:$0xff]   ;;  %v2898_v60 = vld [vmem:[%s3716_s1 + $0x170] sm:$0xff]  }
  0x15   :  { %2562 = vmatpush3.bf16.msra.mxu1 %v2855_v19  ;;  %2541 = vmatprep.subr.bf16.mxu0 %v2856_v20  ;;  %v2897_v59 = vld [vmem:[%s3716_s1 + $0x1a8] sm:$0xff]   ;;  %v2899_v61 = vld [vmem:[%s3716_s1 + $0x1f0] sm:$0xff]   ;;  %v2902_v0 = vld [vmem:[%s3716_s1 + $0x178] sm:$0xff]  }
  0x16   :  { %2563 = vmatprep.subr.bf16.mxu1 %v2857_v21  ;;  %v2900_v62 = vld [vmem:[%s3716_s1 + $0x130] sm:$0xff]   ;;  %v2903_v1 = vld [vmem:[%s3716_s1 + $0x1f8] sm:$0xff]   ;;  %v2909_v6 = vld [vmem:[%s3716_s1 + $0x240] sm:$0xff]  }
  0x17   :  { %v2901_v63 = vld [vmem:[%s3716_s1 + $0x1b0] sm:$0xff]   ;;  %v2904_v2 = vld [vmem:[%s3716_s1 + $0x138] sm:$0xff]   ;;  %v2910_v7 = vld [vmem:[%s3716_s1 + $0x2c0] sm:$0xff]  }
  0x18   :  { %2542 = vmatpush3.bf16.msra.mxu0 %v2858_v22  ;;  %v2905_v3 = vld [vmem:[%s3716_s1 + $0x1b8] sm:$0xff]   ;;  %v3304_v4 = vld [vmem:[%s3715_s0 + $0x10] ss:$24 sps:$4 sm:$0xff]   ;;  %v3309_v5 = vld [vmem:[%s3715_s0 + $0x14] ss:$24 sps:$4 sm:$0xff]  }
  0x19   :  { %2564 = vmatpush3.bf16.msra.mxu1 %v2859_v23  ;;  %2543 = vmatprep.subr.bf16.mxu0 %v2860_v24  ;;  %v2911_v8 = vld [vmem:[%s3716_s1 + $0x200] sm:$0xff]   ;;  %v2913_v10 = vld [vmem:[%s3716_s1 + $0x248] sm:$0xff]   ;;  %v2917_v14 = vld [vmem:[%s3716_s1 + $0x250] sm:$0xff]  }
  0x1a   :  { %2565 = vmatprep.subr.bf16.mxu1 %v2861_v25  ;;  %v2912_v9 = vld [vmem:[%s3716_s1 + $0x280] sm:$0xff]   ;;  %v2914_v11 = vld [vmem:[%s3716_s1 + $0x2c8] sm:$0xff]   ;;  %v2918_v15 = vld [vmem:[%s3716_s1 + $0x2d0] sm:$0xff]  }
  0x1b   :  { %v2915_v12 = vld [vmem:[%s3716_s1 + $0x208] sm:$0xff]   ;;  %v2919_v16 = vld [vmem:[%s3716_s1 + $0x210] sm:$0xff]   ;;  %v2921_v18 = vld [vmem:[%s3716_s1 + $0x258] sm:$0xff]  }
  0x1c   :  { %2544 = vmatpush3.bf16.msra.mxu0 %v2862_v26  ;;  %v2916_v13 = vld [vmem:[%s3716_s1 + $0x288] sm:$0xff]   ;;  %v2920_v17 = vld [vmem:[%s3716_s1 + $0x290] sm:$0xff]   ;;  %v2922_v19 = vld [vmem:[%s3716_s1 + $0x2d8] sm:$0xff]  }
  0x1d   :  { %2566 = vmatpush3.bf16.msra.mxu1 %v2863_v27  ;;  %2545 = vmatprep.subr.bf16.mxu0 %v2864_v28  ;;  %v2923_v20 = vld [vmem:[%s3716_s1 + $0x218] sm:$0xff]   ;;  %v2925_v22 = vld [vmem:[%s3716_s1 + $0x260] sm:$0xff]   ;;  %v2929_v26 = vld [vmem:[%s3716_s1 + $0x268] sm:$0xff]  }
  0x1e   :  { %2567 = vmatprep.subr.bf16.mxu1 %v2865_v29  ;;  %v2924_v21 = vld [vmem:[%s3716_s1 + $0x298] sm:$0xff]   ;;  %v2926_v23 = vld [vmem:[%s3716_s1 + $0x2e0] sm:$0xff]   ;;  %v2930_v27 = vld [vmem:[%s3716_s1 + $0x2e8] sm:$0xff]  }
  0x1f   :  { %v2927_v24 = vld [vmem:[%s3716_s1 + $0x220] sm:$0xff]   ;;  %v2931_v28 = vld [vmem:[%s3716_s1 + $0x228] sm:$0xff]  }
  0x20   :  { %2546 = vmatpush3.bf16.msra.mxu0 %v2866_v30  ;;  %v2928_v25 = vld [vmem:[%s3716_s1 + $0x2a0] sm:$0xff]   ;;  %v2932_v29 = vld [vmem:[%s3716_s1 + $0x2a8] sm:$0xff]   ;;  %v2933_v30 = vld [vmem:[%s3716_s1 + $0x270] sm:$0xff]  }
  0x21   :  { %2568 = vmatpush3.bf16.msra.mxu1 %v2867_v31  ;;  %2575 = vmatprep.subr.bf16.mxu0 %v2874_v36  ;;  %v2934_v31 = vld [vmem:[%s3716_s1 + $0x2f0] sm:$0xff]  }
  0x22   :  { %2597 = vmatprep.subr.bf16.mxu1 %v2875_v37  ;;  %v2935_v36 = vld [vmem:[%s3716_s1 + $0x230] sm:$0xff]  }
  0x23   :  { %481 = vmatmul.mubr.bf16.vlgmr.msra.gmra.mrb[0].mxu0 %v3194_v34  ;;  %v2936_v37 = vld [vmem:[%s3716_s1 + $0x2b0] sm:$0xff]  }
  0x24   :  { %522 = vmatmul.mubr.bf16.vlgmr.msra.gmra.mrb[0].mxu1 %v3199_v35  ;;  %2576 = vmatpush3.bf16.msra.mxu0 %v2876_v38  ;;  %v2937_v38 = vld [vmem:[%s3716_s1 + $0x278] sm:$0xff]  }
  0x25   :  { %988 = vmatprep.mubr.bf16.mxu1 %v3183_v32  ;;  %2598 = vmatpush3.bf16.msra.mxu1 %v2877_v39  ;;  %v2938_v39 = vld [vmem:[%s3716_s1 + $0x2f8] sm:$0xff]  }
  0x26   :  { %2577 = vmatprep.subr.bf16.mxu0 %v2878_v40  ;;  %2599 = vmatprep.subr.bf16.mxu1 %v2879_v41  ;;  %v2939_v40 = vld [vmem:[%s3716_s1 + $0x238] sm:$0xff]  }
  0x27   :  { %562 = vmatprep.mubr.bf16.mxu0 %v3309_v5  ;;  %v2940_v41 = vld [vmem:[%s3716_s1 + $0x2b8] sm:$0xff]  }
  0x28   :  { %2578 = vmatpush3.bf16.msra.mxu0 %v2880_v42  ;;  %v2941_v42 = vld [vmem:[%s3716_s1 + $0x340] sm:$0xff]  }
  0x29   :  { %2600 = vmatpush3.bf16.msra.mxu1 %v2881_v43  ;;  %2579 = vmatprep.subr.bf16.mxu0 %v2882_v44  ;;  %v2942_v43 = vld [vmem:[%s3716_s1 + $0x3c0] sm:$0xff]  }
  0x2a   :  { %2601 = vmatprep.subr.bf16.mxu1 %v2883_v45  ;;  %v2943_v44 = vld [vmem:[%s3716_s1 + $0x300] sm:$0xff]  }
  0x2b   :  { %v2944_v45 = vld [vmem:[%s3716_s1 + $0x380] sm:$0xff]  }
  0x2c   :  { %2580 = vmatpush3.bf16.msra.mxu0 %v2884_v46  ;;  %v2945_v46 = vld [vmem:[%s3716_s1 + $0x348] sm:$0xff]  }
  0x2d   :  { %2602 = vmatpush3.bf16.msra.mxu1 %v2885_v47  ;;  %2581 = vmatprep.subr.bf16.mxu0 %v2886_v48  ;;  %v2946_v47 = vld [vmem:[%s3716_s1 + $0x3c8] sm:$0xff]  }
  0x2e   :  { %2603 = vmatprep.subr.bf16.mxu1 %v2887_v49  ;;  %v2947_v48 = vld [vmem:[%s3716_s1 + $0x308] sm:$0xff]  }
  0x2f   :  { %v2948_v49 = vld [vmem:[%s3716_s1 + $0x388] sm:$0xff]  }
  0x30   :  { %2582 = vmatpush3.bf16.msra.mxu0 %v2888_v50  ;;  %v2949_v50 = vld [vmem:[%s3716_s1 + $0x350] sm:$0xff]  }
  0x31   :  { %2604 = vmatpush3.bf16.msra.mxu1 %v2889_v51  ;;  %2583 = vmatprep.subr.bf16.mxu0 %v2890_v52  ;;  %v2952_v51 = vld [vmem:[%s3716_s1 + $0x390] sm:$0xff]   ;;  %v2953_v52 = vld [vmem:[%s3716_s1 + $0x358] sm:$0xff]  }
  0x32   :  { %2605 = vmatprep.subr.bf16.mxu1 %v2891_v53  ;;  %v2954_v53 = vld [vmem:[%s3716_s1 + $0x3d8] sm:$0xff]  }
  0x34   :  { %2584 = vmatpush3.bf16.msra.mxu0 %v2892_v54  ;;  %v2955_v54 = vld [vmem:[%s3716_s1 + $0x318] sm:$0xff]  }
  0x35   :  { %2606 = vmatpush3.bf16.msra.mxu1 %v2893_v55  ;;  %2585 = vmatprep.subr.bf16.mxu0 %v2894_v56  ;;  %v2956_v55 = vld [vmem:[%s3716_s1 + $0x398] sm:$0xff]   ;;  %v2957_v56 = vld [vmem:[%s3716_s1 + $0x360] sm:$0xff]  }
  0x36   :  { %2607 = vmatprep.subr.bf16.mxu1 %v2895_v57  ;;  %v2958_v57 = vld [vmem:[%s3716_s1 + $0x3e0] sm:$0xff]  }
  0x38   :  { %2586 = vmatpush3.bf16.msra.mxu0 %v2896_v58  ;;  %v2959_v58 = vld [vmem:[%s3716_s1 + $0x320] sm:$0xff]  }
  0x39   :  { %2608 = vmatpush3.bf16.msra.mxu1 %v2897_v59  ;;  %2587 = vmatprep.subr.bf16.mxu0 %v2898_v60  ;;  %v2960_v59 = vld [vmem:[%s3716_s1 + $0x3a0] sm:$0xff]   ;;  %v2961_v60 = vld [vmem:[%s3716_s1 + $0x368] sm:$0xff]  }
  0x3a   :  { %2609 = vmatprep.subr.bf16.mxu1 %v2899_v61  ;;  %v2962_v61 = vld [vmem:[%s3716_s1 + $0x3e8] sm:$0xff]  }
  0x3c   :  { %2588 = vmatpush3.bf16.msra.mxu0 %v2900_v62  ;;  %v2963_v62 = vld [vmem:[%s3716_s1 + $0x328] sm:$0xff]  }
  0x3d   :  { %2610 = vmatpush3.bf16.msra.mxu1 %v2901_v63  ;;  %2589 = vmatprep.subr.bf16.mxu0 %v2902_v0  ;;  %v2964_v63 = vld [vmem:[%s3716_s1 + $0x3a8] sm:$0xff]   ;;  %v2965_v0 = vld [vmem:[%s3716_s1 + $0x370] sm:$0xff]  }
  0x3e   :  { %2611 = vmatprep.subr.bf16.mxu1 %v2903_v1  ;;  %v2966_v1 = vld [vmem:[%s3716_s1 + $0x3f0] sm:$0xff]  }
  0x40   :  { %2590 = vmatpush3.bf16.msra.mxu0 %v2904_v2  ;;  %v2967_v2 = vld [vmem:[%s3716_s1 + $0x330] sm:$0xff]  }
  0x41   :  { %2612 = vmatpush3.bf16.msra.mxu1 %v2905_v3  ;;  %2619 = vmatprep.subr.bf16.mxu0 %v2909_v6  ;;  %v2968_v3 = vld [vmem:[%s3716_s1 + $0x3b0] sm:$0xff]   ;;  %v2969_v6 = vld [vmem:[%s3716_s1 + $0x378] sm:$0xff]  }
  0x42   :  { %2641 = vmatprep.subr.bf16.mxu1 %v2910_v7  ;;  %v2970_v7 = vld [vmem:[%s3716_s1 + $0x3f8] sm:$0xff]  }
  0x43   :  { %563 = vmatmul.mubr.bf16.vlgmr.msra.gmra.mrb[4].mxu0 %v3304_v4 }
  0x44   :  { %989 = vmatmul.mubr.bf16.vlgmr.msra.gmra.mrb[4].mxu1 %v3194_v34  ;;  %2620 = vmatpush3.bf16.msra.mxu0 %v2911_v8  ;;  %v2971_v8 = vld [vmem:[%s3716_s1 + $0x338] sm:$0xff]  }
  0x45   :  { %1029 = vmatprep.mubr.bf16.mxu0 %v3188_v33  ;;  %2642 = vmatpush3.bf16.msra.mxu1 %v2912_v9  ;;  %v2972_v9 = vld [vmem:[%s3716_s1 + $0x3b8] sm:$0xff]  }
  0x46   :  { %1070 = vmatprep.mubr.bf16.mxu1 %v3309_v5  ;;  %2621 = vmatprep.subr.bf16.mxu0 %v2913_v10  ;;  %v2973_v10 = vld [vmem:[%s3716_s1 + $0x440] sm:$0xff]  }
  0x47   :  { %2643 = vmatprep.subr.bf16.mxu1 %v2914_v11  ;;  %v2974_v11 = vld [vmem:[%s3716_s1 + $0x400] sm:$0xff]  }
  0x48   :  { %2622 = vmatpush3.bf16.msra.mxu0 %v2915_v12  ;;  %v2975_v12 = vld [vmem:[%s3716_s1 + $0x448] sm:$0xff]  }
  0x49   :  { %2644 = vmatpush3.bf16.msra.mxu1 %v2916_v13  ;;  %2623 = vmatprep.subr.bf16.mxu0 %v2917_v14  ;;  %v2976_v13 = vld [vmem:[%s3716_s1 + $0x408] sm:$0xff]   ;;  %v2977_v14 = vld [vmem:[%s3716_s1 + $0x450] sm:$0xff]  }
  0x4a   :  { %2645 = vmatprep.subr.bf16.mxu1 %v2918_v15  ;;  %v2978_v15 = vld [vmem:[%s3716_s1 + $0x410] sm:$0xff]  }
  0x4c   :  { %2624 = vmatpush3.bf16.msra.mxu0 %v2919_v16  ;;  %v2982_v16 = vld [vmem:[%s3716_s1 + $0x420] sm:$0xff]  }
  0x4d   :  { %2646 = vmatpush3.bf16.msra.mxu1 %v2920_v17  ;;  %2625 = vmatprep.subr.bf16.mxu0 %v2921_v18  ;;  %v2983_v17 = vld [vmem:[%s3716_s1 + $0x468] sm:$0xff]  }
  0x4e   :  { %2647 = vmatprep.subr.bf16.mxu1 %v2922_v19  ;;  %v2984_v18 = vld [vmem:[%s3716_s1 + $0x428] sm:$0xff]   ;;  %v2985_v19 = vld [vmem:[%s3716_s1 + $0x470] sm:$0xff]  }
  0x50   :  { %2626 = vmatpush3.bf16.msra.mxu0 %v2923_v20  ;;  %v2986_v20 = vld [vmem:[%s3716_s1 + $0x430] sm:$0xff]  }
  0x51   :  { %2648 = vmatpush3.bf16.msra.mxu1 %v2924_v21  ;;  %2627 = vmatprep.subr.bf16.mxu0 %v2925_v22  ;;  %v2987_v21 = vld [vmem:[%s3716_s1 + $0x478] sm:$0xff]  }
  0x52   :  { %2649 = vmatprep.subr.bf16.mxu1 %v2926_v23  ;;  %v2988_v22 = vld [vmem:[%s3716_s1 + $0x438] sm:$0xff]  }
  0x54   :  { %2628 = vmatpush3.bf16.msra.mxu0 %v2927_v24 }
  0x55   :  { %2650 = vmatpush3.bf16.msra.mxu1 %v2928_v25  ;;  %2629 = vmatprep.subr.bf16.mxu0 %v2929_v26 }
  0x56   :  { %2651 = vmatprep.subr.bf16.mxu1 %v2930_v27 }
  0x58   :  { %2630 = vmatpush3.bf16.msra.mxu0 %v2931_v28 }
  0x59   :  { %2652 = vmatpush3.bf16.msra.mxu1 %v2932_v29  ;;  %2631 = vmatprep.subr.bf16.mxu0 %v2933_v30 }
  0x5a   :  { %2653 = vmatprep.subr.bf16.mxu1 %v2934_v31 }
  0x5c   :  { %2632 = vmatpush3.bf16.msra.mxu0 %v2935_v36 }
  0x5d   :  { %2654 = vmatpush3.bf16.msra.mxu1 %v2936_v37  ;;  %2633 = vmatprep.subr.bf16.mxu0 %v2937_v38 }
  0x5e   :  { %2655 = vmatprep.subr.bf16.mxu1 %v2938_v39 }
  0x60   :  { %2634 = vmatpush3.bf16.msra.mxu0 %v2939_v40 }
  0x61   :  { %2656 = vmatpush3.bf16.msra.mxu1 %v2940_v41  ;;  %2663 = vmatprep.subr.bf16.mxu0 %v2941_v42 }
  0x62   :  { %2685 = vmatprep.subr.bf16.mxu1 %v2942_v43 }
  0x63   :  { %1030 = vmatmul.mubr.bf16.vlgmr.msra.gmra.mrb[8].mxu0 %v3199_v35 }
  0x64   :  { %1071 = vmatmul.mubr.bf16.vlgmr.msra.gmra.mrb[8].mxu1 %v3304_v4  ;;  %2664 = vmatpush3.bf16.msra.mxu0 %v2943_v44 }
  0x65   :  { %2686 = vmatpush3.bf16.msra.mxu1 %v2944_v45  ;;  %1496 = vmatprep.mubr.bf16.mxu0 %v3183_v32  ;;  %v2950_v32 = vld [vmem:[%s3716_s1 + $0x3d0] sm:$0xff]  }
  0x66   :  { %2665 = vmatprep.subr.bf16.mxu0 %v2945_v46  ;;  %1537 = vmatprep.mubr.bf16.mxu1 %v3188_v33  ;;  %v2951_v33 = vld [vmem:[%s3716_s1 + $0x310] sm:$0xff]  }
  0x67   :  { %2687 = vmatprep.subr.bf16.mxu1 %v2946_v47 }
  0x68   :  { %2666 = vmatpush3.bf16.msra.mxu0 %v2947_v48 }
  0x69   :  { %2688 = vmatpush3.bf16.msra.mxu1 %v2948_v49  ;;  %2667 = vmatprep.subr.bf16.mxu0 %v2949_v50 }
  0x6a   :  { %2689 = vmatprep.subr.bf16.mxu1 %v2950_v32 }
  0x6c   :  { %2668 = vmatpush3.bf16.msra.mxu0 %v2951_v33 }
  0x6d   :  { %2690 = vmatpush3.bf16.msra.mxu1 %v2952_v51  ;;  %2669 = vmatprep.subr.bf16.mxu0 %v2953_v52 }
  0x6e   :  { %2691 = vmatprep.subr.bf16.mxu1 %v2954_v53 }
  0x70   :  { %2670 = vmatpush3.bf16.msra.mxu0 %v2955_v54 }
  0x71   :  { %2692 = vmatpush3.bf16.msra.mxu1 %v2956_v55  ;;  %2671 = vmatprep.subr.bf16.mxu0 %v2957_v56 }
  0x72   :  { %2693 = vmatprep.subr.bf16.mxu1 %v2958_v57 }
  0x74   :  { %2672 = vmatpush3.bf16.msra.mxu0 %v2959_v58 }
  0x75   :  { %2694 = vmatpush3.bf16.msra.mxu1 %v2960_v59  ;;  %2673 = vmatprep.subr.bf16.mxu0 %v2961_v60 }
  0x76   :  { %2695 = vmatprep.subr.bf16.mxu1 %v2962_v61 }
  0x78   :  { %2674 = vmatpush3.bf16.msra.mxu0 %v2963_v62 }
  0x79   :  { %2696 = vmatpush3.bf16.msra.mxu1 %v2964_v63  ;;  %2675 = vmatprep.subr.bf16.mxu0 %v2965_v0 }
  0x7a   :  { %2697 = vmatprep.subr.bf16.mxu1 %v2966_v1 }
  0x7c   :  { %2676 = vmatpush3.bf16.msra.mxu0 %v2967_v2 }
  0x7d   :  { %2698 = vmatpush3.bf16.msra.mxu1 %v2968_v3  ;;  %2677 = vmatprep.subr.bf16.mxu0 %v2969_v6 }
  0x7e   :  { %2699 = vmatprep.subr.bf16.mxu1 %v2970_v7 }
  0x80   :  { %2678 = vmatpush3.bf16.msra.mxu0 %v2971_v8 }
  0x81   :  { %2700 = vmatpush3.bf16.msra.mxu1 %v2972_v9  ;;  %2707 = vmatprep.subr.bf16.mxu0 %v2973_v10 }
  0x83   :  { %1497 = vmatmul.mubr.bf16.vlgmr.msra.gmra.mrb[12].mxu0 %v3194_v34  ;;  %v2979_v34 = vld [vmem:[%s3716_s1 + $0x458] sm:$0xff]  }
  0x84   :  { %1538 = vmatmul.mubr.bf16.vlgmr.msra.gmra.mrb[12].mxu1 %v3199_v35  ;;  %2708 = vmatpush3.bf16.msra.mxu0 %v2974_v11  ;;  %v2980_v35 = vld [vmem:[%s3716_s1 + $0x418] sm:$0xff]  }
  0x85   :  { %2709 = vmatprep.subr.bf16.mxu0 %v2975_v12  ;;  %1578 = vmatprep.mubr.bf16.mxu0 %v3309_v5  ;;  %v2981_v5 = vld [vmem:[%s3716_s1 + $0x460] sm:$0xff]  }
  0x88   :  { %2710 = vmatpush3.bf16.msra.mxu0 %v2976_v13 }
  0x89   :  { %2711 = vmatprep.subr.bf16.mxu0 %v2977_v14 }
  0x8c   :  { %2712 = vmatpush3.bf16.msra.mxu0 %v2978_v15 }
  0x8d   :  { %2713 = vmatprep.subr.bf16.mxu0 %v2979_v34 }
  0x90   :  { %2714 = vmatpush3.bf16.msra.mxu0 %v2980_v35 }
  0x91   :  { %2715 = vmatprep.subr.bf16.mxu0 %v2981_v5 }
  0x94   :  { %2716 = vmatpush3.bf16.msra.mxu0 %v2982_v16 }
  0x95   :  { %2717 = vmatprep.subr.bf16.mxu0 %v2983_v17 }
  0x98   :  { %2718 = vmatpush3.bf16.msra.mxu0 %v2984_v18 }
  0x99   :  { %2719 = vmatprep.subr.bf16.mxu0 %v2985_v19 }
  0x9c   :  { %2720 = vmatpush3.bf16.msra.mxu0 %v2986_v20 }
  0x9d   :  { %2721 = vmatprep.subr.bf16.mxu0 %v2987_v21 }
  0xa0   :  { %2722 = vmatpush3.bf16.msra.mxu0 %v2988_v22 }
  0xa3   :  { %1579 = vmatmul.mubr.bf16.vlgmr.msra.gmra.mrb[16].mxu0 %v3304_v4 }
  0xa4   :  { %12 = vsyncpa [#allocation3], 0  ;;  %v2989_v23 = vld [vmem:[%s3718_s3] sm:$0xff]   ;;  %v3041_v25 = vmov 0.0   ;;  %v2991_v42 = vld [vmem:[%s3718_s3 + $0x8] sm:$0xff]   ;;  %vm3042_vm0 = vmmov 0  }
  0xa5   :  { %v2990_v24 = vld [vmem:[%s3718_s3 + $0x40] sm:$0xff]   ;;  %2761 = vmatprep.subr.bf16.mxu1 %v3041_v25  ;;  %2781 = vmatprep.subr.bf16.mxu0 %v3041_v25  ;;  %v2992_v43 = vld [vmem:[%s3718_s3 + $0x48] sm:$0xff]   ;;  %v2993_v45 = vld [vmem:[%s3718_s3 + $0x10] sm:$0xff]   ;;  %vm1593_vm1 = vcmask 1040384   ;;  %vm1604_vm2 = vcmask 1046528   ;;  %vm1644_vm3 = vcmask 1041408  }
  0xa6   :  { %2762 = vmatpush3.bf16.msra.mxu1 %v2989_v23  ;;  %2782 = vmatpush3.bf16.msra.mxu0 %v2990_v24  ;;  %v2994_v46 = vld [vmem:[%s3718_s3 + $0x50] sm:$0xff]   ;;  %v2995_v47 = vld [vmem:[%s3718_s3 + $0x18] sm:$0xff]   ;;  %v2997_v49 = vld [vmem:[%s3718_s3 + $0x20] sm:$0xff]   ;;  %vm1647_vm4 = vcmask 1042432   ;;  %vm2003_vm5 = vcmask 519168   ;;  %vm2039_vm6 = vcmask 1041409  }
  0xa7   :  { %2763 = vmatprep.subr.bf16.mxu1 %v3041_v25  ;;  %2783 = vmatprep.subr.bf16.mxu0 %v3041_v25  ;;  %v2996_v48 = vld [vmem:[%s3718_s3 + $0x58] sm:$0xff]   ;;  %v2998_v50 = vld [vmem:[%s3718_s3 + $0x60] sm:$0xff]   ;;  %v2999_v32 = vld [vmem:[%s3718_s3 + $0x28] sm:$0xff]   ;;  %vm2066_vm7 = vcmask 523264   ;;  %s3043_s25 = smov [#allocation2]  }
  0xa8   :  { %v3000_v33 = vld [vmem:[%s3718_s3 + $0x68] sm:$0xff]   ;;  %v3001_v51 = vld [vmem:[%s3718_s3 + $0x30] sm:$0xff]   ;;  %2777 = vmatprep.mubr.msk.bf16.mxu1 %vm3042_vm0, %v3041_v25  ;;  %2797 = vmatprep.mubr.msk.bf16.mxu0 %vm3042_vm0, %v3041_v25  ;;  %v3003_v53 = vld [vmem:[%s3718_s3 + $0x38] sm:$0xff]  }
  0xa9   :  { %v3002_v52 = vld [vmem:[%s3718_s3 + $0x70] sm:$0xff]   ;;  %v3004_v54 = vld [vmem:[%s3718_s3 + $0x78] sm:$0xff]  }
  0xaa   :  { %2764 = vmatpush3.bf16.msra.mxu1 %v2991_v42  ;;  %2784 = vmatpush3.bf16.msra.mxu0 %v2992_v43 }
  0xab   :  { %2765 = vmatprep.subr.bf16.mxu1 %v3041_v25  ;;  %2785 = vmatprep.subr.bf16.mxu0 %v3041_v25 }
  0xae   :  { %2766 = vmatpush3.bf16.msra.mxu1 %v2993_v45  ;;  %2786 = vmatpush3.bf16.msra.mxu0 %v2994_v46 }
  0xaf   :  { %2767 = vmatprep.subr.bf16.mxu1 %v3041_v25  ;;  %2787 = vmatprep.subr.bf16.mxu0 %v3041_v25 }
  0xb2   :  { %2768 = vmatpush3.bf16.msra.mxu1 %v2995_v47  ;;  %2788 = vmatpush3.bf16.msra.mxu0 %v2996_v48 }
  0xb3   :  { %2769 = vmatprep.subr.bf16.mxu1 %v3041_v25  ;;  %2789 = vmatprep.subr.bf16.mxu0 %v3041_v25 }
  0xb6   :  { %2770 = vmatpush3.bf16.msra.mxu1 %v2997_v49  ;;  %2790 = vmatpush3.bf16.msra.mxu0 %v2998_v50 }
  0xb7   :  { %2771 = vmatprep.subr.bf16.mxu1 %v3041_v25  ;;  %2791 = vmatprep.subr.bf16.mxu0 %v3041_v25 }
  0xba   :  { %2772 = vmatpush3.bf16.msra.mxu1 %v2999_v32  ;;  %2792 = vmatpush3.bf16.msra.mxu0 %v3000_v33 }
  0xbb   :  { %2773 = vmatprep.subr.bf16.mxu1 %v3041_v25  ;;  %2793 = vmatprep.subr.bf16.mxu0 %v3041_v25 }
  0xbe   :  { %2774 = vmatpush3.bf16.msra.mxu1 %v3001_v51  ;;  %2794 = vmatpush3.bf16.msra.mxu0 %v3002_v52  ;;  %v2467_v52 = vld [vmem:[%s3717_s2] ss:$0 sm:$0xff]  ;;  %s2117_s2 = sshll.u32 %s3043_s25, 4  ;;  %s2118_s2 = int_to_ptr.vmem [resolvable:$true] %s2117_s2 }
  0xbf   :  { %2775 = vmatprep.subr.bf16.mxu1 %v3041_v25  ;;  %2795 = vmatprep.subr.bf16.mxu0 %v3041_v25  ;;  %s3017_s26 = scalar_lea.vmem %s2118_s2, 32  ;;  %p3022_p1 = scmp.lt.s32.totalorder %s2118_s2, %s2118_s2 }
  0xc0   :  { %p3018_p0 = scmp.ne.s32.totalorder %s2118_s2, %s3017_s26  ;;  %p3023_p2 = scmp.lt.s32.totalorder %s3017_s26, %s3017_s26 }
  0xc2   :  { %2776 = vmatpush3.bf16.msra.mxu1 %v3003_v53  ;;  %2796 = vmatpush3.bf16.msra.mxu0 %v3004_v54  ;;  %p3024_p3 = por %p3023_p2, %p3022_p1 }
  0xc3   :  { %2801 = vmatprep.subr.bf16.mxu1 %v3041_v25  ;;  %2821 = vmatprep.subr.bf16.mxu0 %v3041_v25 }
  0xc4   :  { %p3025_p4 = pnand %p3024_p3, %p3018_p0 }
  0xf6   :  { %v2547_v4 = vpop.f32.mrb[0].mxu0 }
  0xf7   :  { %v2569_v26 = vpop.f32.mrb[0].mxu1  ;;  %v2548_v27 = vpop.f32.mrb[1].mxu0 }
  0xf8   :  { %v2570_v28 = vpop.f32.mrb[1].mxu1  ;;  %v2549_v29 = vadd.f32 %v2548_v27, %v2547_v4  ;;  %v2550_v31 = vpop.f32.mrb[2].mxu0 }
  0xf9   :  { %v2571_v30 = vadd.f32 %v2570_v28, %v2569_v26  ;;  %v2572_v36 = vpop.f32.mrb[2].mxu1  ;;  %v2551_v37 = vpop.f32.mrb[3].mxu0 }
  0xfa   :  { %v2573_v38 = vpop.f32.mrb[3].mxu1  ;;  %v2552_v40 = vadd.f32 %v2551_v37, %v2550_v31 }
  0xfb   :  { %v524_v39 = vadd.f32 %v2571_v30, %v2549_v29  ;;  %v2574_v41 = vadd.f32 %v2573_v38, %v2572_v36 }
  0xfd   :  { %v527_v44 = vadd.f32 %v2574_v41, %v2552_v40 }
 0x116   :  { %v2591_v55 = vpop.f32.mrb[4].mxu0 }
 0x117   :  { %v2592_v56 = vpop.f32.mrb[5].mxu0  ;;  %v2613_v57 = vpop.f32.mrb[4].mxu1 }
 0x118   :  { %v2593_v58 = vadd.f32 %v2592_v56, %v2591_v55  ;;  %v2594_v59 = vpop.f32.mrb[6].mxu0  ;;  %v2614_v60 = vpop.f32.mrb[5].mxu1 }
 0x119   :  { %v2595_v61 = vpop.f32.mrb[7].mxu0  ;;  %v2615_v62 = vadd.f32 %v2614_v60, %v2613_v57  ;;  %v2616_v63 = vpop.f32.mrb[6].mxu1 }
 0x11a   :  { %v565_v0 = vadd.f32 %v2593_v58, %v524_v39  ;;  %v2596_v1 = vadd.f32 %v2595_v61, %v2594_v59  ;;  %v2617_v2 = vpop.f32.mrb[7].mxu1 }
 0x11b   :  { %v2618_v3 = vadd.f32 %v2617_v2, %v2616_v63 }
 0x11c   :  { %v568_v6 = vadd.f32 %v2596_v1, %v527_v44  ;;  %v1589_v13 = vrot.slane %v565_v0, 7 }
 0x11e   :  { %v1590_v17 = vrot.slane %v568_v6, 7  ;;  %v1594_v21 = vsel %vm1593_vm1, 0.0, %v1589_v13 }
 0x120   :  { %v1595_v24 = vsel %vm1593_vm1, 0.0, %v1590_v17  ;;  %v3008_v17 = vld [vmem:[%s3718_s3 + $0x98] sm:$0xff]  }
 0x136   :  { %v2635_v7 = vpop.f32.mrb[8].mxu0 }
 0x137   :  { %v2636_v8 = vpop.f32.mrb[9].mxu0  ;;  %v2657_v9 = vpop.f32.mrb[8].mxu1 }
 0x138   :  { %v2637_v10 = vadd.f32 %v2636_v8, %v2635_v7  ;;  %v2638_v11 = vpop.f32.mrb[10].mxu0  ;;  %v2658_v12 = vpop.f32.mrb[9].mxu1 }
 0x139   :  { %v2639_v14 = vpop.f32.mrb[11].mxu0  ;;  %v2659_v15 = vadd.f32 %v2658_v12, %v2657_v9  ;;  %v2660_v34 = vpop.f32.mrb[10].mxu1 }
 0x13a   :  { %v1032_v35 = vadd.f32 %v2637_v10, %v2615_v62  ;;  %v2640_v5 = vadd.f32 %v2639_v14, %v2638_v11  ;;  %v2661_v16 = vpop.f32.mrb[11].mxu1 }
 0x13b   :  { %v2662_v18 = vadd.f32 %v2661_v16, %v2660_v34  ;;  %v3005_v34 = vld [vmem:[%s3718_s3 + $0x80] sm:$0xff]   ;;  %v3007_v16 = vld [vmem:[%s3718_s3 + $0x90] sm:$0xff]  }
 0x13c   :  { %v1035_v19 = vadd.f32 %v2640_v5, %v2618_v3  ;;  %v1073_v20 = vadd.f32 %v2659_v15, %v1032_v35  ;;  %v3006_v5 = vld [vmem:[%s3718_s3 + $0x88] sm:$0xff]  }
 0x13e   :  { %v1596_v22 = vadd.f32 %v1594_v21, %v1073_v20  ;;  %v1076_v23 = vadd.f32 %v2662_v18, %v1035_v19  ;;  %v3009_v18 = vld [vmem:[%s3718_s3 + $0xa0] sm:$0xff]   ;;  %v3010_v19 = vld [vmem:[%s3718_s3 + $0xa8] sm:$0xff]   ;;  %v3011_v20 = vld [vmem:[%s3718_s3 + $0xb0] sm:$0xff]  }
 0x13f   :  { %v3012_v21 = vld [vmem:[%s3718_s3 + $0xb8] sm:$0xff]  }
 0x140   :  { %v1597_v4 = vadd.f32 %v1595_v24, %v1076_v23  ;;  %v3014_v23 = vld [vmem:[%s3720_s5 + $0x8] sm:$0xff]   ;;  %v3015_v24 = vld [vmem:[%s3720_s5 + $0x10] sm:$0xff]  }
 0x156   :  { %v2679_v26 = vpop.f32.mrb[12].mxu0 }
 0x157   :  { %v2701_v27 = vpop.f32.mrb[12].mxu1  ;;  %v2680_v28 = vpop.f32.mrb[13].mxu0 }
 0x158   :  { %v2681_v29 = vadd.f32 %v2680_v28, %v2679_v26  ;;  %v2702_v30 = vpop.f32.mrb[13].mxu1  ;;  %v2682_v31 = vpop.f32.mrb[14].mxu0 }
 0x159   :  { %v2703_v36 = vadd.f32 %v2702_v30, %v2701_v27  ;;  %v2704_v37 = vpop.f32.mrb[14].mxu1  ;;  %v2683_v38 = vpop.f32.mrb[15].mxu0 }
 0x15a   :  { %v2684_v39 = vadd.f32 %v2683_v38, %v2682_v31  ;;  %v2705_v40 = vpop.f32.mrb[15].mxu1 }
 0x15b   :  { %v1540_v41 = vadd.f32 %v2703_v36, %v2681_v29  ;;  %v2706_v42 = vadd.f32 %v2705_v40, %v2704_v37 }
 0x15d   :  { %v1543_v43 = vadd.f32 %v2706_v42, %v2684_v39 }
 0x176   :  { %v2723_v44 = vpop.f32.mrb[16].mxu0 }
 0x177   :  { %v2724_v45 = vpop.f32.mrb[17].mxu0 }
 0x178   :  { %v2725_v46 = vadd.f32 %v2724_v45, %v2723_v44  ;;  %v2726_v47 = vpop.f32.mrb[18].mxu0 }
 0x179   :  { %v2727_v48 = vpop.f32.mrb[19].mxu0 }
 0x17a   :  { %v1581_v49 = vadd.f32 %v2725_v46, %v1540_v41  ;;  %v2728_v50 = vadd.f32 %v2727_v48, %v2726_v47 }
 0x17c   :  { %v1600_v32 = vrot.slane %v1581_v49, 1  ;;  %v1584_v33 = vadd.f32 %v2728_v50, %v1543_v43 }
 0x17e   :  { %v1605_v51 = vsel %vm1604_vm2, %v1600_v32, 0.0  ;;  %v1601_v53 = vrot.slane %v1584_v33, 1  ;;  %v2524_v33 = vld [vmem:[%s3719_s4] ss:$0 sm:$0xff] }
 0x17f   :  { %v1607_v54 = vadd.f32 %v1605_v51, %v1596_v22  ;;  %v3013_v22 = vld [vmem:[%s3720_s5] sm:$0xff]  }
 0x180   :  { %v1606_v55 = vsel %vm1604_vm2, %v1601_v53, 0.0 }
 0x181   :  { %v1616_v56 = vadd.f32 %v2467_v52, %v1607_v54  ;;  %v1608_v57 = vadd.f32 %v1606_v55, %v1597_v4  ;;  %v3016_v4 = vld [vmem:[%s3720_s5 + $0x18] sm:$0xff]  }
 0x183   :  { %v1618_v58 = vmax.f32 %v1616_v56, 0.0  ;;  %v1617_v59 = vadd.f32 %v2467_v52, %v1608_v57 }
 0x185   :  { %v1622_v60 = vrot.slane %v1618_v58, 1  ;;  %v1619_v61 = vmax.f32 %v1617_v59, 0.0 }
 0x187   :  { %v1626_v62 = vmax.f32 %v1618_v58, %v1622_v60  ;;  %v1623_v63 = vrot.slane %v1619_v61, 1 }
 0x189   :  { %v1627_v0 = vmax.f32 %v1619_v61, %v1623_v63  ;;  %v1630_v1 = vrot.slane %v1626_v62, 1  ;;  %v1634_v2 = vrot.slane %v1626_v62, 2  ;;  %v1638_v9 = vrot.slane %v1626_v62, 3 }
 0x18b   :  { %v1631_v3 = vrot.slane %v1627_v0, 1  ;;  %v1635_v6 = vrot.slane %v1627_v0, 2  ;;  %v1642_v7 = vsel %vm1593_vm1, %v1626_v62, %v1630_v1  ;;  %v1639_v10 = vrot.slane %v1627_v0, 3 }
 0x18c   :  { %v1645_v8 = vsel %vm1644_vm3, %v1642_v7, %v1634_v2 }
 0x18d   :  { %v1643_v11 = vsel %vm1593_vm1, %v1627_v0, %v1631_v3  ;;  %v1648_v13 = vsel %vm1647_vm4, %v1645_v8, %v1638_v9 }
 0x18e   :  { %v1646_v12 = vsel %vm1644_vm3, %v1643_v11, %v1635_v6 }
 0x18f   :  { %v1649_v14 = vsel %vm1647_vm4, %v1646_v12, %v1639_v10 }
 0x190   :  { %v1652_v15 = vcombine.low %v1648_v13, %v1649_v14 }
 0x192   :  { %v1654_v35 = vpack.c.bf16 %v1652_v15, %v1652_v15 }
 0x194   :  { %2778 = vmatmul.mubr.bf16.vlgmr.msra.gmra.mrb[16].mxu1 %v1654_v35  ;;  %2798 = vmatmul.mubr.bf16.vlgmr.msra.gmra.mrb[20].mxu0 %v1654_v35 }
 0x195   :  { %2802 = vmatpush3.bf16.msra.mxu1 %v3005_v34  ;;  %2817 = vmatprep.mubr.msk.bf16.mxu1 %vm3042_vm0, %v3041_v25 }
 0x196   :  { %2803 = vmatprep.subr.bf16.mxu1 %v3041_v25  ;;  %2829 = vmatprep.mubr.msk.bf16.mxu0 %vm3042_vm0, %v3041_v25 }
 0x197   :  { %2822 = vmatpush3.bf16.msra.mxu0 %v3013_v22 }
 0x198   :  { %2823 = vmatprep.subr.bf16.mxu0 %v3041_v25 }
 0x199   :  { %2804 = vmatpush3.bf16.msra.mxu1 %v3006_v5 }
 0x19a   :  { %2805 = vmatprep.subr.bf16.mxu1 %v3041_v25 }
 0x19b   :  { %2824 = vmatpush3.bf16.msra.mxu0 %v3014_v23 }
 0x19c   :  { %2825 = vmatprep.subr.bf16.mxu0 %v3041_v25 }
 0x19d   :  { %2806 = vmatpush3.bf16.msra.mxu1 %v3007_v16 }
 0x19e   :  { %2807 = vmatprep.subr.bf16.mxu1 %v3041_v25 }
 0x19f   :  { %2826 = vmatpush3.bf16.msra.mxu0 %v3015_v24 }
 0x1a0   :  { %2827 = vmatprep.subr.bf16.mxu0 %v3041_v25 }
 0x1a1   :  { %2808 = vmatpush3.bf16.msra.mxu1 %v3008_v17 }
 0x1a2   :  { %2809 = vmatprep.subr.bf16.mxu1 %v3041_v25 }
 0x1a3   :  { %2828 = vmatpush3.bf16.msra.mxu0 %v3016_v4 }
 0x1a5   :  { %2810 = vmatpush3.bf16.msra.mxu1 %v3009_v18 }
 0x1a6   :  { %2811 = vmatprep.subr.bf16.mxu1 %v3041_v25 }
 0x1a9   :  { %2812 = vmatpush3.bf16.msra.mxu1 %v3010_v19 }
 0x1aa   :  { %2813 = vmatprep.subr.bf16.mxu1 %v3041_v25 }
 0x1ad   :  { %2814 = vmatpush3.bf16.msra.mxu1 %v3011_v20 }
 0x1ae   :  { %2815 = vmatprep.subr.bf16.mxu1 %v3041_v25 }
 0x1b1   :  { %2816 = vmatpush3.bf16.msra.mxu1 %v3012_v21 }
 0x1b4   :  { %2818 = vmatmul.mubr.bf16.vlgmr.msra.gmra.mrb[20].mxu1 %v1654_v35  ;;  %v2525_v35 = vld [vmem:[%s3721_s6] ss:$0 sm:$0xff] }
 0x267   :  { %v1753_v26 = vpop.f32.mrb[16].mxu1  ;;  %v1860_v27 = vpop.f32.mrb[20].mxu0 }
 0x268   :  { %v1760_v28 = vcombine.high %v1753_v26, %v1753_v26  ;;  %v1976_v29 = vrot.slane %v1753_v26, 7  ;;  %v2779_v30 = vpop.f32.mrb[17].mxu1  ;;  %v2799_v31 = vpop.f32.mrb[21].mxu0  ;;  %v1867_v42 = vcombine.high %v1860_v27, %v1860_v27 }
 0x269   :  { %v1756_v36 = vpop.f32.mrb[18].mxu1  ;;  %v1863_v37 = vpop.f32.mrb[22].mxu0 }
 0x26a   :  { %v1977_v38 = vrot.slane %v1760_v28, 7  ;;  %v1980_v39 = vsel %vm1593_vm1, 0.0, %v1976_v29  ;;  %v2780_v40 = vpop.f32.mrb[19].mxu1  ;;  %v2800_v41 = vpop.f32.mrb[23].mxu0 }
 0x26b   :  { %v1982_v25 = vadd.f32 %v1980_v39, %v1860_v27 }
 0x26c   :  { %v1981_v43 = vsel %vm1593_vm1, 0.0, %v1977_v38 }
 0x26d   :  { %v1983_v44 = vadd.f32 %v1981_v43, %v1867_v42 }
 0x287   :  { %v1968_v45 = vpop.f32.mrb[20].mxu1 }
 0x288   :  { %v1975_v46 = vcombine.high %v1968_v45, %v1968_v45  ;;  %v1984_v47 = vrot.slane %v1968_v45, 1  ;;  %v2819_v48 = vpop.f32.mrb[21].mxu1 }
 0x289   :  { %v1971_v49 = vpop.f32.mrb[22].mxu1 }
 0x28a   :  { %v1985_v50 = vrot.slane %v1975_v46, 1  ;;  %v1988_v32 = vsel %vm1647_vm4, %v1984_v47, 0.0  ;;  %v2820_v51 = vpop.f32.mrb[23].mxu1 }
 0x28b   :  { %v1990_v52 = vadd.f32 %v1988_v32, %v1982_v25 }
 0x28c   :  { %v1989_v53 = vsel %vm1647_vm4, %v1985_v50, 0.0 }
 0x28d   :  { %v1991_v54 = vadd.f32 %v1989_v53, %v1983_v44  ;;  %v1999_v55 = vadd.f32 %v2524_v33, %v1990_v52 }
 0x28f   :  { %v2000_v56 = vadd.f32 %v2524_v33, %v1991_v54  ;;  %v2001_v57 = vmax.f32 %v1999_v55, 0.0 }
 0x291   :  { %v2002_v58 = vmax.f32 %v2000_v56, 0.0  ;;  %v2004_v59 = vsel %vm2003_vm5, %v2001_v57, -inf }
 0x292   :  { %v2005_v60 = vrot.slane %v2004_v59, 4 }
 0x293   :  { %v2011_v61 = vsel %vm2003_vm5, %v2002_v58, -inf }
 0x294   :  { %v2006_v62 = vmax.f32 %v2004_v59, %v2005_v60  ;;  %v2012_v63 = vrot.slane %v2011_v61, 4 }
 0x296   :  { %v2007_v0 = vrot.slane %v2006_v62, 2  ;;  %v2013_v1 = vmax.f32 %v2011_v61, %v2012_v63 }
 0x298   :  { %v2008_v2 = vmax.f32 %v2006_v62, %v2007_v0  ;;  %v2014_v3 = vrot.slane %v2013_v1, 2 }
 0x29a   :  { %v2009_v6 = vrot.slane %v2008_v2, 1  ;;  %v2015_v7 = vmax.f32 %v2013_v1, %v2014_v3 }
 0x29c   :  { %v2010_v8 = vmax.f32 %v2008_v2, %v2009_v6  ;;  %v2016_v9 = vrot.slane %v2015_v7, 1 }
 0x29e   :  { %v2017_v10 = vmax.f32 %v2015_v7, %v2016_v9  ;;  %v2018_v11 = vpack.c.bf16 %v2010_v8, %v2010_v8 }
 0x2a0   :  { %v2019_v12 = vpack.c.bf16 %v2017_v10, %v2017_v10  ;;  %v2037_v13 = vunpack.c.l.b16 %v2018_v11 }
 0x2a2   :  { %v2038_v14 = vunpack.c.l.b16 %v2019_v12 }
 0x2a4   :  { %v2040_v15 = vsel %vm2039_vm6, %v2038_v14, %v2037_v13 }
 0x2a5   :  { %v2041_v34 = vpack.c.b16 %v2040_v15, %v2040_v15 }
 0x2a7   :  { %2830 = vmatmul.mubr.msk.bf16.vlgmr.msra.gmra.mrb[24].mxu0 %vm2066_vm7, %v2041_v34 }
 0x37a   :  { %v2104_v5 = vpop.f32.mrb[24].mxu0 }
 0x37b   :  { %v2105_v16 = vadd.f32 %v2525_v35, %v2104_v5  ;;  %v2831_v17 = vpop.f32.mrb[25].mxu0 }
 0x37c   :  { %v2107_v18 = vpop.f32.mrb[26].mxu0 }
 0x37d   :  { %2110 = vst [vmem:[#allocation2] sm:$0x3] %v2105_v16  ;;  %v2832_v19 = vpop.f32.mrb[27].mxu0 }
 0x37e   :  { %3028 = shalt.err (!%p3025_p4)
}
 0x37f   :  { %s3029_s6 = scalar_lea.hbm %s3722_s7, 32 }
 0x380   :  { %p3030_p5 = scmp.ne.s32.totalorder %s3722_s7, %s3029_s6  ;;  %p3033_p6 = scmp.lt.u32.totalorder %s3029_s6, %s3722_s7 }
 0x382   :  { %p3035_p7 = pnand %p3033_p6, %p3030_p5 }
 0x384   :  { %3038 = shalt.err (!%p3035_p7)
}
 0x385   :  { %2120 = dma.vmem_to_hbm [thread:$0]  %s2118_s2, 32, %s3722_s7, [#allocation3]  }
 0x386   :  { %3039 = dma.done.wait [#allocation3], 32  }
 0x387   :  { %3040 = vsyncadd [#allocation3], 4294967264 }
 0x388   :  { %2124 = vsyncpa [#allocation3], 1 }

</bundles_post_ra>
